<compile_context>
chip_gen: v6e
topology: v6e:2x2x1
jax: 0.10.0
libtpu: 0.0.40
codegen_flags: <defaults>
</compile_context>

<pallas_src>
import jax
import jax.numpy as jnp
import numpy as np
from jax.experimental import pallas as pl
from jax.experimental.pallas import tpu as pltpu

CIN, COUT, KH, KW, PAD = 3, 32, 5, 5, 2
H = W = 32                       # spatial size implied by fc1 = Linear(32*16*16, 64)
WPAD = W + 2 * PAD               # 36
KDIM = 128                       # zero-padded lanes per row window (>= WPAD*CIN = 108)
KFULL = KH * KDIM                # 640: fused conv contraction depth
POOLED = H // 2                  # 16
HALF = POOLED * COUT             # 512  (one w-parity half of a conv output row)
FLAT = COUT * POOLED * POOLED    # 8192
HID, NCLS = 64, 10
NB_MAX = 32                      # images per grid step


# -----------------------------------------------------------------------------
# Fused kernel: conv+ReLU -> 2x2 maxpool -> flatten -> fc1+ReLU -> fc2.
# -----------------------------------------------------------------------------
def net5_kernel(xp_ref, t_ref, cb_ref, w1_ref, b1_ref, w2_ref, b2_ref, o_ref):
    nb = xp_ref.shape[0]

    # --- conv + bias + ReLU: ONE bf16 MXU matmul, f32 accumulation ----------
    # Rows are (n, h%2, h//2); columns are col(w,co) = (w%2)*512 + (w//2)*32 + co.
    lhs = xp_ref[...].reshape(nb * H, KFULL)                       # (nb*32, 640) bf16
    y = jnp.dot(lhs, t_ref[...], preferred_element_type=jnp.float32)  # (nb*32, 1024)
    y = jnp.maximum(y + cb_ref[...], 0.0)

    # --- 2x2 max pool --------------------------------------------------------
    y3 = y.reshape(nb, H, W * COUT)                                # (nb, 32, 1024)
    yh = jnp.maximum(y3[:, :POOLED, :], y3[:, POOLED:, :])         # H pairs (nb,16,1024)
    yp = jnp.maximum(yh[:, :, :HALF], yh[:, :, HALF:])             # W pairs (nb,16,512)

    # --- flatten (torch order folded into w1) + fc1 + ReLU: ONE bf16 matmul --
    feat = jnp.concatenate([yp[:, hq, :] for hq in range(POOLED)], axis=-1)  # (nb,8192)
    h1 = jnp.dot(feat.astype(jnp.bfloat16), w1_ref[...],
                 preferred_element_type=jnp.float32) + b1_ref[...]
    h1 = jnp.maximum(h1, 0.0)

    # --- fc2 ------------------------------------------------------------------
    o_ref[...] = (jnp.dot(h1, w2_ref[...], preferred_element_type=jnp.float32)
                  + b2_ref[...])


# -----------------------------------------------------------------------------
# Wrapper
# -----------------------------------------------------------------------------
def net5_forward(x_nchw, kp):
    B = x_nchw.shape[0]
    # Glue (plain XLA): NCHW -> padded NHWC rows -> lane-aligned conv LHS.
    x_nhwc = jnp.transpose(x_nchw, (0, 2, 3, 1))
    xpad = jnp.pad(x_nhwc, ((0, 0), (PAD, PAD), (PAD, PAD), (0, 0)))   # (B,36,36,3)
    rows = xpad.reshape(B, WPAD, WPAD * CIN)
    rows = jnp.pad(rows, ((0, 0), (0, 0), (0, KDIM - WPAD * CIN)))     # (B,36,128)
    # 5 shifted row windows concatenated on lanes -> (B, 32, 640).
    lhs = jnp.stack([rows[:, kh:kh + H, :] for kh in range(KH)], axis=2)
    lhs = lhs.reshape(B, H, KFULL)
    # Permute output rows h -> (h%2)*16 + h//2 so the in-kernel H-pool is a max
    # of two sublane-aligned 16-row slabs.
    lhs = lhs.reshape(B, POOLED, 2, KFULL).transpose(0, 2, 1, 3).reshape(B, H, KFULL)
    lhs = lhs.astype(jnp.bfloat16)

    # Batch blocking (nb images per grid step).
    if B <= NB_MAX:
        nb, bp = B, B
    else:
        nb = NB_MAX
        bp = ((B + nb - 1) // nb) * nb
        if bp != B:
            lhs = jnp.pad(lhs, ((0, bp - B), (0, 0), (0, 0)))

    flops = bp * (2 * H * KFULL * (W * COUT) + 2 * FLAT * HID + 2 * HID * NCLS)
    bytes_accessed = (2 * bp * H * KFULL + 2 * KFULL * W * COUT + 4 * W * COUT
                      + 2 * FLAT * HID + 4 * HID + 4 * HID * NCLS + 4 * NCLS
                      + 4 * bp * NCLS)

    out = pl.pallas_call(
        net5_kernel,
        out_shape=jax.ShapeDtypeStruct((bp, NCLS), jnp.float32),
        grid_spec=pltpu.PrefetchScalarGridSpec(
            num_scalar_prefetch=0,
            grid=(bp // nb,),
            in_specs=[
                pl.BlockSpec((nb, H, KFULL), lambda i: (i, 0, 0)),      # conv LHS
                pl.BlockSpec((KFULL, W * COUT), lambda i: (0, 0)),      # conv Toeplitz
                pl.BlockSpec((1, W * COUT), lambda i: (0, 0)),          # conv bias row
                pl.BlockSpec((FLAT, HID), lambda i: (0, 0)),            # fc1 weights
                pl.BlockSpec((1, HID), lambda i: (0, 0)),               # fc1 bias
                pl.BlockSpec((HID, NCLS), lambda i: (0, 0)),            # fc2 weights
                pl.BlockSpec((1, NCLS), lambda i: (0, 0)),              # fc2 bias
            ],
            out_specs=pl.BlockSpec((nb, NCLS), lambda i: (i, 0)),
        ),
        compiler_params=pltpu.CompilerParams(
            dimension_semantics=("parallel",),
            vmem_limit_bytes=48 * 1024 * 1024),
        cost_estimate=pl.CostEstimate(
            flops=int(flops), transcendentals=0, bytes_accessed=int(bytes_accessed)),
    )(lhs, kp["t"], kp["cb"], kp["w1"], kp["b1"], kp["w2"], kp["b2"])
    return out[:B]


# -----------------------------------------------------------------------------
# Parameters (torch layouts) and one-time re-layout for the kernel
# -----------------------------------------------------------------------------
def init_torch_params(key):
    k = jax.random.split(key, 6)
    return {
        "conv_w": jax.random.normal(k[0], (COUT, CIN, KH, KW), jnp.float32) * 0.05,  # OIHW
        "conv_b": jax.random.normal(k[1], (COUT,), jnp.float32) * 0.05,
        "w1": jax.random.normal(k[2], (HID, FLAT), jnp.float32) * 0.02,  # (out,in), in=(c,h,w)
        "b1": jax.random.normal(k[3], (HID,), jnp.float32) * 0.02,
        "w2": jax.random.normal(k[4], (NCLS, HID), jnp.float32) * 0.05,
        "b2": jax.random.normal(k[5], (NCLS,), jnp.float32) * 0.05,
    }


def prepare_params(tp):
    """One-time (init) weight re-layout for the fused kernel (numpy glue)."""
    w_hwio = np.transpose(np.asarray(tp["conv_w"], np.float32), (2, 3, 1, 0))  # (5,5,3,32)
    # Toeplitz expansion: T[kh, wj*CIN+ci, col(w,co)] = W[kh, wj-w, ci, co]
    # with col(w,co) = (w%2)*512 + (w//2)*32 + co (w-parity major for the pool),
    # then fused over kh into a single (640, 1024) contraction.
    t = np.zeros((KH, KDIM, W * COUT), np.float32)
    for w in range(W):
        col0 = (w % 2) * HALF + (w // 2) * COUT
        for kw in range(KW):
            wj = w + kw
            t[:, wj * CIN:(wj + 1) * CIN, col0:col0 + COUT] = w_hwio[:, kw, :, :]
    t = t.reshape(KFULL, W * COUT)
    cb = np.tile(np.asarray(tp["conv_b"], np.float32), W).reshape(1, W * COUT)
    # fc1: fold torch's (c,h,w) flatten into rows ordered (h, w*32+c) -> (8192, 64).
    w1 = np.asarray(tp["w1"], np.float32).T                       # (8192, 64), rows (c,h,w)
    w1 = (w1.reshape(COUT, POOLED, POOLED, HID)
             .transpose(1, 2, 0, 3)                               # (h, w, c, HID)
             .reshape(FLAT, HID))
    return {
        "t": jnp.asarray(t, jnp.bfloat16),
        "cb": jnp.asarray(cb),
        "w1": jnp.asarray(w1, jnp.bfloat16),
        "b1": jnp.asarray(np.asarray(tp["b1"], np.float32).reshape(1, HID)),
        "w2": jnp.asarray(np.asarray(tp["w2"], np.float32).T),    # (64, 10)
        "b2": jnp.asarray(np.asarray(tp["b2"], np.float32).reshape(1, NCLS)),
    }


# -----------------------------------------------------------------------------
# Pure-JAX reference (torch semantics) for a correctness sanity check
# -----------------------------------------------------------------------------
def net5_reference(x_nchw, tp):
    prec = jax.lax.Precision.HIGHEST
    y = jax.lax.conv_general_dilated(
        x_nchw, tp["conv_w"], (1, 1), ((PAD, PAD), (PAD, PAD)),
        dimension_numbers=("NCHW", "OIHW", "NCHW"), precision=prec)
    y = jax.nn.relu(y + tp["conv_b"].reshape(1, COUT, 1, 1))
    y = jax.lax.reduce_window(y, -jnp.inf, jax.lax.max,
                              (1, 1, 2, 2), (1, 1, 2, 2), "VALID")
    xf = y.reshape(y.shape[0], FLAT)
    h = jax.nn.relu(jnp.dot(xf, tp["w1"].T, precision=prec) + tp["b1"])
    return jnp.dot(h, tp["w2"].T, precision=prec) + tp["b2"]


if __name__ == "__main__":
    key = jax.random.PRNGKey(0)
    kx, kparam = jax.random.split(key)
    torch_params = init_torch_params(kparam)
    kernel_params = prepare_params(torch_params)

    x = jax.random.normal(kx, (2, CIN, H, W), jnp.float32)   # NCHW, like PyTorch

    fwd = jax.jit(net5_forward)
    out = jax.block_until_ready(fwd(x, kernel_params))

    ref = net5_reference(x, torch_params)
    assert out.shape == (2, NCLS)
    assert bool(jnp.all(jnp.isfinite(out)))
    max_err = float(jnp.max(jnp.abs(out - ref)))
    assert max_err < 5e-2, max_err
    print("KERNEL_OK")
</pallas_src>

<mosaic_0001>
module attributes {stable_mosaic.version = 11 : i64} {
  func.func @net5_kernel(%arg0: i32, %arg1: memref<2x32x640xbf16, #tpu.memory_space<vmem>>, %arg2: memref<640x1024xbf16, #tpu.memory_space<vmem>>, %arg3: memref<1x1024xf32, #tpu.memory_space<vmem>>, %arg4: memref<8192x64xbf16, #tpu.memory_space<vmem>>, %arg5: memref<1x64xf32, #tpu.memory_space<vmem>>, %arg6: memref<64x10xf32, #tpu.memory_space<vmem>>, %arg7: memref<1x10xf32, #tpu.memory_space<vmem>>, %arg8: memref<2x10xf32, #tpu.memory_space<vmem>>) attributes {dimension_semantics = [#tpu.dimension_semantics<parallel>], iteration_bounds = array<i64: 1>, scalar_prefetch = 0 : i64, scratch_operands = 0 : i64, tpu.core_type = #tpu.core_type<tc>, window_params = [{transform_indices = @transform_0, window_bounds = array<i64: 2, 32, 640>}, {pipeline_mode = #tpu.pipeline_mode<synchronous>, transform_indices = @transform_1, window_bounds = array<i64: 640, 1024>}, {pipeline_mode = #tpu.pipeline_mode<synchronous>, transform_indices = @transform_2, window_bounds = array<i64: 1, 1024>}, {pipeline_mode = #tpu.pipeline_mode<synchronous>, transform_indices = @transform_3, window_bounds = array<i64: 8192, 64>}, {pipeline_mode = #tpu.pipeline_mode<synchronous>, transform_indices = @transform_4, window_bounds = array<i64: 1, 64>}, {pipeline_mode = #tpu.pipeline_mode<synchronous>, transform_indices = @transform_5, window_bounds = array<i64: 64, 10>}, {pipeline_mode = #tpu.pipeline_mode<synchronous>, transform_indices = @transform_6, window_bounds = array<i64: 1, 10>}, {transform_indices = @transform_7, window_bounds = array<i64: 2, 10>}]} {
    %c0 = arith.constant 0 : index
    %c0_0 = arith.constant 0 : index
    %c0_1 = arith.constant 0 : index
    %0 = vector.load %arg1[%c0, %c0_0, %c0_1] : memref<2x32x640xbf16, #tpu.memory_space<vmem>>, vector<2x32x640xbf16>
    %1 = vector.shape_cast %0 : vector<2x32x640xbf16> to vector<64x640xbf16>
    %c0_2 = arith.constant 0 : index
    %c0_3 = arith.constant 0 : index
    %2 = vector.load %arg2[%c0_2, %c0_3] : memref<640x1024xbf16, #tpu.memory_space<vmem>>, vector<640x1024xbf16>
    %cst = arith.constant dense<0.000000e+00> : vector<64x1024xf32>
    %3 = tpu.matmul %1, %2, %cst {dimension_numbers = #tpu.dot_dimension_numbers<[1], [0], [0], [1], [0, 0, 1, 1], [], []>} : vector<64x640xbf16>, vector<640x1024xbf16>, vector<64x1024xf32> -> vector<64x1024xf32>
    %c0_4 = arith.constant 0 : index
    %c0_5 = arith.constant 0 : index
    %4 = vector.load %arg3[%c0_4, %c0_5] : memref<1x1024xf32, #tpu.memory_space<vmem>>, vector<1x1024xf32>
    %5 = vector.broadcast %4 : vector<1x1024xf32> to vector<64x1024xf32>
    %6 = arith.addf %3, %5 : vector<64x1024xf32>
    %cst_6 = arith.constant 0.000000e+00 : f32
    %7 = vector.broadcast %cst_6 : f32 to vector<64x1024xf32>
    %8 = arith.maximumf %6, %7 : vector<64x1024xf32>
    %9 = vector.shape_cast %8 : vector<64x1024xf32> to vector<2x32x1024xf32>
    %10 = vector.extract_strided_slice %9 {offsets = [0, 0, 0], sizes = [2, 16, 1024], strides = [1, 1, 1]} : vector<2x32x1024xf32> to vector<2x16x1024xf32>
    %11 = vector.extract_strided_slice %9 {offsets = [0, 16, 0], sizes = [2, 16, 1024], strides = [1, 1, 1]} : vector<2x32x1024xf32> to vector<2x16x1024xf32>
    %12 = arith.maximumf %10, %11 : vector<2x16x1024xf32>
    %13 = vector.extract_strided_slice %12 {offsets = [0, 0, 0], sizes = [2, 16, 512], strides = [1, 1, 1]} : vector<2x16x1024xf32> to vector<2x16x512xf32>
    %14 = vector.extract_strided_slice %12 {offsets = [0, 0, 512], sizes = [2, 16, 512], strides = [1, 1, 1]} : vector<2x16x1024xf32> to vector<2x16x512xf32>
    %15 = arith.maximumf %13, %14 : vector<2x16x512xf32>
    %16 = vector.extract_strided_slice %15 {offsets = [0, 0, 0], sizes = [2, 1, 512], strides = [1, 1, 1]} : vector<2x16x512xf32> to vector<2x1x512xf32>
    %17 = vector.shape_cast %16 : vector<2x1x512xf32> to vector<2x512xf32>
    %18 = vector.extract_strided_slice %15 {offsets = [0, 1, 0], sizes = [2, 1, 512], strides = [1, 1, 1]} : vector<2x16x512xf32> to vector<2x1x512xf32>
    %19 = vector.shape_cast %18 : vector<2x1x512xf32> to vector<2x512xf32>
    %20 = vector.extract_strided_slice %15 {offsets = [0, 2, 0], sizes = [2, 1, 512], strides = [1, 1, 1]} : vector<2x16x512xf32> to vector<2x1x512xf32>
    %21 = vector.shape_cast %20 : vector<2x1x512xf32> to vector<2x512xf32>
    %22 = vector.extract_strided_slice %15 {offsets = [0, 3, 0], sizes = [2, 1, 512], strides = [1, 1, 1]} : vector<2x16x512xf32> to vector<2x1x512xf32>
    %23 = vector.shape_cast %22 : vector<2x1x512xf32> to vector<2x512xf32>
    %24 = vector.extract_strided_slice %15 {offsets = [0, 4, 0], sizes = [2, 1, 512], strides = [1, 1, 1]} : vector<2x16x512xf32> to vector<2x1x512xf32>
    %25 = vector.shape_cast %24 : vector<2x1x512xf32> to vector<2x512xf32>
    %26 = vector.extract_strided_slice %15 {offsets = [0, 5, 0], sizes = [2, 1, 512], strides = [1, 1, 1]} : vector<2x16x512xf32> to vector<2x1x512xf32>
    %27 = vector.shape_cast %26 : vector<2x1x512xf32> to vector<2x512xf32>
    %28 = vector.extract_strided_slice %15 {offsets = [0, 6, 0], sizes = [2, 1, 512], strides = [1, 1, 1]} : vector<2x16x512xf32> to vector<2x1x512xf32>
    %29 = vector.shape_cast %28 : vector<2x1x512xf32> to vector<2x512xf32>
    %30 = vector.extract_strided_slice %15 {offsets = [0, 7, 0], sizes = [2, 1, 512], strides = [1, 1, 1]} : vector<2x16x512xf32> to vector<2x1x512xf32>
    %31 = vector.shape_cast %30 : vector<2x1x512xf32> to vector<2x512xf32>
    %32 = vector.extract_strided_slice %15 {offsets = [0, 8, 0], sizes = [2, 1, 512], strides = [1, 1, 1]} : vector<2x16x512xf32> to vector<2x1x512xf32>
    %33 = vector.shape_cast %32 : vector<2x1x512xf32> to vector<2x512xf32>
    %34 = vector.extract_strided_slice %15 {offsets = [0, 9, 0], sizes = [2, 1, 512], strides = [1, 1, 1]} : vector<2x16x512xf32> to vector<2x1x512xf32>
    %35 = vector.shape_cast %34 : vector<2x1x512xf32> to vector<2x512xf32>
    %36 = vector.extract_strided_slice %15 {offsets = [0, 10, 0], sizes = [2, 1, 512], strides = [1, 1, 1]} : vector<2x16x512xf32> to vector<2x1x512xf32>
    %37 = vector.shape_cast %36 : vector<2x1x512xf32> to vector<2x512xf32>
    %38 = vector.extract_strided_slice %15 {offsets = [0, 11, 0], sizes = [2, 1, 512], strides = [1, 1, 1]} : vector<2x16x512xf32> to vector<2x1x512xf32>
    %39 = vector.shape_cast %38 : vector<2x1x512xf32> to vector<2x512xf32>
    %40 = vector.extract_strided_slice %15 {offsets = [0, 12, 0], sizes = [2, 1, 512], strides = [1, 1, 1]} : vector<2x16x512xf32> to vector<2x1x512xf32>
    %41 = vector.shape_cast %40 : vector<2x1x512xf32> to vector<2x512xf32>
    %42 = vector.extract_strided_slice %15 {offsets = [0, 13, 0], sizes = [2, 1, 512], strides = [1, 1, 1]} : vector<2x16x512xf32> to vector<2x1x512xf32>
    %43 = vector.shape_cast %42 : vector<2x1x512xf32> to vector<2x512xf32>
    %44 = vector.extract_strided_slice %15 {offsets = [0, 14, 0], sizes = [2, 1, 512], strides = [1, 1, 1]} : vector<2x16x512xf32> to vector<2x1x512xf32>
    %45 = vector.shape_cast %44 : vector<2x1x512xf32> to vector<2x512xf32>
    %46 = vector.extract_strided_slice %15 {offsets = [0, 15, 0], sizes = [2, 1, 512], strides = [1, 1, 1]} : vector<2x16x512xf32> to vector<2x1x512xf32>
    %47 = vector.shape_cast %46 : vector<2x1x512xf32> to vector<2x512xf32>
    %48 = tpu.concatenate %17, %19, %21, %23, %25, %27, %29, %31, %33, %35, %37, %39, %41, %43, %45, %47 in 1 : vector<2x512xf32>, vector<2x512xf32>, vector<2x512xf32>, vector<2x512xf32>, vector<2x512xf32>, vector<2x512xf32>, vector<2x512xf32>, vector<2x512xf32>, vector<2x512xf32>, vector<2x512xf32>, vector<2x512xf32>, vector<2x512xf32>, vector<2x512xf32>, vector<2x512xf32>, vector<2x512xf32>, vector<2x512xf32> -> vector<2x8192xf32>
    %49 = arith.truncf %48 : vector<2x8192xf32> to vector<2x8192xbf16>
    %c0_7 = arith.constant 0 : index
    %c0_8 = arith.constant 0 : index
    %50 = vector.load %arg4[%c0_7, %c0_8] : memref<8192x64xbf16, #tpu.memory_space<vmem>>, vector<8192x64xbf16>
    %cst_9 = arith.constant dense<0.000000e+00> : vector<2x64xf32>
    %51 = tpu.matmul %49, %50, %cst_9 {dimension_numbers = #tpu.dot_dimension_numbers<[1], [0], [0], [1], [0, 0, 1, 1], [], []>} : vector<2x8192xbf16>, vector<8192x64xbf16>, vector<2x64xf32> -> vector<2x64xf32>
    %c0_10 = arith.constant 0 : index
    %c0_11 = arith.constant 0 : index
    %52 = vector.load %arg5[%c0_10, %c0_11] : memref<1x64xf32, #tpu.memory_space<vmem>>, vector<1x64xf32>
    %53 = vector.broadcast %52 : vector<1x64xf32> to vector<2x64xf32>
    %54 = arith.addf %51, %53 : vector<2x64xf32>
    %cst_12 = arith.constant 0.000000e+00 : f32
    %55 = vector.broadcast %cst_12 : f32 to vector<2x64xf32>
    %56 = arith.maximumf %54, %55 : vector<2x64xf32>
    %c0_13 = arith.constant 0 : index
    %c0_14 = arith.constant 0 : index
    %57 = vector.load %arg6[%c0_13, %c0_14] : memref<64x10xf32, #tpu.memory_space<vmem>>, vector<64x10xf32>
    %cst_15 = arith.constant dense<0.000000e+00> : vector<2x10xf32>
    %58 = tpu.matmul %56, %57, %cst_15 {dimension_numbers = #tpu.dot_dimension_numbers<[1], [0], [0], [1], [0, 0, 1, 1], [], []>} : vector<2x64xf32>, vector<64x10xf32>, vector<2x10xf32> -> vector<2x10xf32>
    %c0_16 = arith.constant 0 : index
    %c0_17 = arith.constant 0 : index
    %59 = vector.load %arg7[%c0_16, %c0_17] : memref<1x10xf32, #tpu.memory_space<vmem>>, vector<1x10xf32>
    %60 = vector.broadcast %59 : vector<1x10xf32> to vector<2x10xf32>
    %61 = arith.addf %58, %60 : vector<2x10xf32>
    %c0_18 = arith.constant 0 : index
    %c0_19 = arith.constant 0 : index
    %62 = vector.load %arg8[%c0_18, %c0_19] : memref<2x10xf32, #tpu.memory_space<vmem>>, vector<2x10xf32>
    tpu.vector_store %arg8[%c0_18, %c0_19], %61 {strides = array<i32>} : memref<2x10xf32, #tpu.memory_space<vmem>>, vector<2x10xf32>,
    return
  }
  func.func @transform_0(%arg0: i32) -> (i32, i32, i32) {
    %c0_i32 = arith.constant 0 : i32
    %c0_i32_0 = arith.constant 0 : i32
    %c0_i32_1 = arith.constant 0 : i32
    return %arg0, %c0_i32, %c0_i32_0 : i32, i32, i32
  }
  func.func @transform_1(%arg0: i32) -> (i32, i32) {
    %c0_i32 = arith.constant 0 : i32
    %c0_i32_0 = arith.constant 0 : i32
    %c0_i32_1 = arith.constant 0 : i32
    return %c0_i32, %c0_i32_0 : i32, i32
  }
  func.func @transform_2(%arg0: i32) -> (i32, i32) {
    %c0_i32 = arith.constant 0 : i32
    %c0_i32_0 = arith.constant 0 : i32
    %c0_i32_1 = arith.constant 0 : i32
    return %c0_i32, %c0_i32_0 : i32, i32
  }
  func.func @transform_3(%arg0: i32) -> (i32, i32) {
    %c0_i32 = arith.constant 0 : i32
    %c0_i32_0 = arith.constant 0 : i32
    %c0_i32_1 = arith.constant 0 : i32
    return %c0_i32, %c0_i32_0 : i32, i32
  }
  func.func @transform_4(%arg0: i32) -> (i32, i32) {
    %c0_i32 = arith.constant 0 : i32
    %c0_i32_0 = arith.constant 0 : i32
    %c0_i32_1 = arith.constant 0 : i32
    return %c0_i32, %c0_i32_0 : i32, i32
  }
  func.func @transform_5(%arg0: i32) -> (i32, i32) {
    %c0_i32 = arith.constant 0 : i32
    %c0_i32_0 = arith.constant 0 : i32
    %c0_i32_1 = arith.constant 0 : i32
    return %c0_i32, %c0_i32_0 : i32, i32
  }
  func.func @transform_6(%arg0: i32) -> (i32, i32) {
    %c0_i32 = arith.constant 0 : i32
    %c0_i32_0 = arith.constant 0 : i32
    %c0_i32_1 = arith.constant 0 : i32
    return %c0_i32, %c0_i32_0 : i32, i32
  }
  func.func @transform_7(%arg0: i32) -> (i32, i32) {
    %c0_i32 = arith.constant 0 : i32
    %c0_i32_0 = arith.constant 0 : i32
    return %arg0, %c0_i32 : i32, i32
  }
}

</mosaic_0001>

<bundles_post_ra>
// kernel: net5_forward.1
= control target key start
LH: loop header
LB: loop body
LE: loop exit
PB: predicated region body
PF: predicated region fallthrough
CT: control target
= control target key end

     0   :  { %vm3115_vm0 = vcmask 1041409   ;;  %s14865_s0 = inlined_call_operand.vmem [shape: bf16[2,32,640], index: 0, kind: input, shape index: {}]   ;;  %s14866_s1 = inlined_call_operand.vmem [shape: bf16[640,1024], index: 1, kind: input, shape index: {}]   ;;  %s14867_s2 = inlined_call_operand.vmem [shape: f32[1,1024], index: 2, kind: input, shape index: {}]   ;;  %s14868_s3 = inlined_call_operand.vmem [shape: bf16[8192,64], index: 3, kind: input, shape index: {}]   ;;  %s14869_s4 = inlined_call_operand.vmem [shape: f32[1,64], index: 4, kind: input, shape index: {}]   ;;  %s14870_s5 = inlined_call_operand.vmem [shape: f32[64,10], index: 5, kind: input, shape index: {}]   ;;  %s14871_s6 = inlined_call_operand.vmem [shape: f32[1,10], index: 6, kind: input, shape index: {}]   ;;  %s14872_s7 = inlined_call_operand.hbm [shape: f32[2,10], index: 7, kind: output, shape index: {}]  }
   0x1   :  { %v108_v0 = vld [vmem:[%s14866_s1 + $0x1c0] sm:$0xff] }
   0x2   :  { %v112_v1 = vld [vmem:[%s14866_s1 + $0x1e0] sm:$0xff] }
   0x3   :  { %v236_v2 = vld [vmem:[%s14866_s1 + $0x5c0] sm:$0xff]  ;;  %v8993_v3 = vcombine.high %v108_v0, %v112_v1  ;;  %v8992_v5 = vcombine.low %v108_v0, %v112_v1 }
   0x4   :  { %v240_v4 = vld [vmem:[%s14866_s1 + $0x5e0] sm:$0xff] }
   0x5   :  { %v100_v6 = vld [vmem:[%s14866_s1 + $0x180] sm:$0xff]  ;;  %v9121_v8 = vcombine.high %v236_v2, %v240_v4  ;;  %v9120_v9 = vcombine.low %v236_v2, %v240_v4  ;;  %2118 = vmatprep.subr.bf16.mxu0 %v8993_v3 }
   0x6   :  { %v104_v7 = vld [vmem:[%s14866_s1 + $0x1a0] sm:$0xff]  ;;  %2119 = vmatpush1.bf16.msra.mxu0 %v8992_v5 }
   0x7   :  { %v8985_v10 = vcombine.high %v100_v6, %v104_v7  ;;  %v228_v11 = vld [vmem:[%s14866_s1 + $0x580] sm:$0xff]  ;;  %2191 = vmatprep.subr.bf16.mxu1 %v9121_v8  ;;  %v8984_v18 = vcombine.low %v100_v6, %v104_v7 }
   0x8   :  { %v232_v12 = vld [vmem:[%s14866_s1 + $0x5a0] sm:$0xff]  ;;  %2192 = vmatpush1.bf16.msra.mxu1 %v9120_v9 }
   0x9   :  { %v92_v13 = vld [vmem:[%s14866_s1 + $0x140] sm:$0xff]  ;;  %v9113_v14 = vcombine.high %v228_v11, %v232_v12  ;;  %2120 = vmatprep.subr.bf16.mxu0 %v8985_v10  ;;  %v9112_v19 = vcombine.low %v228_v11, %v232_v12 }
   0xa   :  { %v96_v15 = vld [vmem:[%s14866_s1 + $0x160] sm:$0xff]  ;;  %2121 = vmatpush1.bf16.msra.mxu0 %v8984_v18 }
   0xb   :  { %v220_v16 = vld [vmem:[%s14866_s1 + $0x540] sm:$0xff]  ;;  %v8977_v20 = vcombine.high %v92_v13, %v96_v15  ;;  %2193 = vmatprep.subr.bf16.mxu1 %v9113_v14  ;;  %v8976_v26 = vcombine.low %v92_v13, %v96_v15 }
   0xc   :  { %v224_v17 = vld [vmem:[%s14866_s1 + $0x560] sm:$0xff]  ;;  %2194 = vmatpush1.bf16.msra.mxu1 %v9112_v19 }
   0xd   :  { %v9105_v21 = vcombine.high %v220_v16, %v224_v17  ;;  %v84_v22 = vld [vmem:[%s14866_s1 + $0x100] sm:$0xff]  ;;  %2122 = vmatprep.subr.bf16.mxu0 %v8977_v20  ;;  %v9104_v27 = vcombine.low %v220_v16, %v224_v17 }
   0xe   :  { %v88_v23 = vld [vmem:[%s14866_s1 + $0x120] sm:$0xff]  ;;  %2123 = vmatpush1.bf16.msra.mxu0 %v8976_v26 }
   0xf   :  { %v212_v24 = vld [vmem:[%s14866_s1 + $0x500] sm:$0xff]  ;;  %v8969_v28 = vcombine.high %v84_v22, %v88_v23  ;;  %2195 = vmatprep.subr.bf16.mxu1 %v9105_v21  ;;  %v8968_v34 = vcombine.low %v84_v22, %v88_v23 }
  0x10   :  { %v216_v25 = vld [vmem:[%s14866_s1 + $0x520] sm:$0xff]  ;;  %2196 = vmatpush1.bf16.msra.mxu1 %v9104_v27 }
  0x11   :  { %v9097_v29 = vcombine.high %v212_v24, %v216_v25  ;;  %v76_v30 = vld [vmem:[%s14866_s1 + $0xc0] sm:$0xff]  ;;  %2124 = vmatprep.subr.bf16.mxu0 %v8969_v28  ;;  %v9096_v35 = vcombine.low %v212_v24, %v216_v25 }
  0x12   :  { %v80_v31 = vld [vmem:[%s14866_s1 + $0xe0] sm:$0xff]  ;;  %2125 = vmatpush1.bf16.msra.mxu0 %v8968_v34 }
  0x13   :  { %v204_v32 = vld [vmem:[%s14866_s1 + $0x4c0] sm:$0xff]  ;;  %v8961_v36 = vcombine.high %v76_v30, %v80_v31  ;;  %2197 = vmatprep.subr.bf16.mxu1 %v9097_v29  ;;  %v8960_v42 = vcombine.low %v76_v30, %v80_v31 }
  0x14   :  { %v208_v33 = vld [vmem:[%s14866_s1 + $0x4e0] sm:$0xff]  ;;  %2198 = vmatpush1.bf16.msra.mxu1 %v9096_v35 }
  0x15   :  { %v9089_v37 = vcombine.high %v204_v32, %v208_v33  ;;  %v68_v38 = vld [vmem:[%s14866_s1 + $0x80] sm:$0xff]  ;;  %2126 = vmatprep.subr.bf16.mxu0 %v8961_v36  ;;  %v9088_v43 = vcombine.low %v204_v32, %v208_v33 }
  0x16   :  { %v72_v39 = vld [vmem:[%s14866_s1 + $0xa0] sm:$0xff]  ;;  %2127 = vmatpush1.bf16.msra.mxu0 %v8960_v42 }
  0x17   :  { %v196_v40 = vld [vmem:[%s14866_s1 + $0x480] sm:$0xff]  ;;  %v8953_v44 = vcombine.high %v68_v38, %v72_v39  ;;  %2199 = vmatprep.subr.bf16.mxu1 %v9089_v37  ;;  %v8952_v50 = vcombine.low %v68_v38, %v72_v39 }
  0x18   :  { %v200_v41 = vld [vmem:[%s14866_s1 + $0x4a0] sm:$0xff]  ;;  %2200 = vmatpush1.bf16.msra.mxu1 %v9088_v43 }
  0x19   :  { %v9081_v45 = vcombine.high %v196_v40, %v200_v41  ;;  %v60_v46 = vld [vmem:[%s14866_s1 + $0x40] sm:$0xff]  ;;  %2128 = vmatprep.subr.bf16.mxu0 %v8953_v44  ;;  %v9080_v52 = vcombine.low %v196_v40, %v200_v41 }
  0x1a   :  { %v64_v47 = vld [vmem:[%s14866_s1 + $0x60] sm:$0xff]  ;;  %2129 = vmatpush1.bf16.msra.mxu0 %v8952_v50 }
  0x1b   :  { %v188_v48 = vld [vmem:[%s14866_s1 + $0x440] sm:$0xff]  ;;  %v8945_v53 = vcombine.high %v60_v46, %v64_v47  ;;  %2201 = vmatprep.subr.bf16.mxu1 %v9081_v45  ;;  %v8944_v60 = vcombine.low %v60_v46, %v64_v47 }
  0x1c   :  { %v192_v49 = vld [vmem:[%s14866_s1 + $0x460] sm:$0xff]  ;;  %2202 = vmatpush1.bf16.msra.mxu1 %v9080_v52 }
  0x1d   :  { %v52_v51 = vld [vmem:[%s14866_s1] sm:$0xff]  ;;  %v9073_v55 = vcombine.high %v188_v48, %v192_v49  ;;  %2130 = vmatprep.subr.bf16.mxu0 %v8945_v53  ;;  %v9072_v61 = vcombine.low %v188_v48, %v192_v49 }
  0x1e   :  { %v56_v54 = vld [vmem:[%s14866_s1 + $0x20] sm:$0xff]  ;;  %2131 = vmatpush1.bf16.msra.mxu0 %v8944_v60 }
  0x1f   :  { %v11236_v56 = vld [vmem:[%s14865_s0 + $0x4] ss:$20 sps:$4 sm:$0xff]   ;;  %v11247_v59 = vld [vmem:[%s14865_s0 + $0xc] ss:$20 sps:$4 sm:$0xff]   ;;  %v8937_v62 = vcombine.high %v52_v51, %v56_v54  ;;  %2203 = vmatprep.subr.bf16.mxu1 %v9073_v55  ;;  %v8936_v4 = vcombine.low %v52_v51, %v56_v54 }
  0x20   :  { %v180_v57 = vld [vmem:[%s14866_s1 + $0x400] sm:$0xff]  ;;  %2150 = vmatprep.mubr.bf16.mxu0 %v11236_v56  ;;  %2223 = vmatprep.mubr.bf16.mxu1 %v11247_v59 }
  0x21   :  { %v184_v58 = vld [vmem:[%s14866_s1 + $0x420] sm:$0xff]  ;;  %2204 = vmatpush1.bf16.msra.mxu1 %v9072_v61  ;;  %2132 = vmatprep.subr.bf16.mxu0 %v8937_v62 }
  0x22   :  { %v9065_v63 = vcombine.high %v180_v57, %v184_v58  ;;  %v172_v0 = vld [vmem:[%s14866_s1 + $0x3c0] sm:$0xff]  ;;  %v9064_v5 = vcombine.low %v180_v57, %v184_v58  ;;  %2133 = vmatpush1.bf16.msra.mxu0 %v8936_v4  ;;  %v109_v4 = vld [vmem:[%s14866_s1 + $0x1c8] sm:$0xff] }
  0x23   :  { %v176_v1 = vld [vmem:[%s14866_s1 + $0x3e0] sm:$0xff] }
  0x24   :  { %v300_v2 = vld [vmem:[%s14866_s1 + $0x7c0] sm:$0xff]  ;;  %v9057_v6 = vcombine.high %v172_v0, %v176_v1  ;;  %2205 = vmatprep.subr.bf16.mxu1 %v9065_v63  ;;  %v9056_v12 = vcombine.low %v172_v0, %v176_v1 }
  0x25   :  { %v304_v3 = vld [vmem:[%s14866_s1 + $0x7e0] sm:$0xff]  ;;  %2206 = vmatpush1.bf16.msra.mxu1 %v9064_v5  ;;  %v113_v5 = vld [vmem:[%s14866_s1 + $0x1e8] sm:$0xff] }
  0x26   :  { %v9185_v7 = vcombine.high %v300_v2, %v304_v3  ;;  %v164_v8 = vld [vmem:[%s14866_s1 + $0x380] sm:$0xff]  ;;  %2134 = vmatprep.subr.bf16.mxu0 %v9057_v6  ;;  %v9184_v13 = vcombine.low %v300_v2, %v304_v3 }
  0x27   :  { %v168_v9 = vld [vmem:[%s14866_s1 + $0x3a0] sm:$0xff]  ;;  %2135 = vmatpush2.bf16.msra.mxu0 %v9056_v12 }
  0x28   :  { %v292_v10 = vld [vmem:[%s14866_s1 + $0x780] sm:$0xff]  ;;  %v9049_v14 = vcombine.high %v164_v8, %v168_v9  ;;  %2207 = vmatprep.subr.bf16.mxu1 %v9185_v7  ;;  %v9048_v20 = vcombine.low %v164_v8, %v168_v9  ;;  %v8995_v9 = vcombine.high %v109_v4, %v113_v5 }
  0x29   :  { %v296_v11 = vld [vmem:[%s14866_s1 + $0x7a0] sm:$0xff]  ;;  %2208 = vmatpush2.bf16.msra.mxu1 %v9184_v13  ;;  %v101_v13 = vld [vmem:[%s14866_s1 + $0x188] sm:$0xff] }
  0x2a   :  { %v9177_v15 = vcombine.high %v292_v10, %v296_v11  ;;  %v156_v16 = vld [vmem:[%s14866_s1 + $0x340] sm:$0xff]  ;;  %2136 = vmatprep.subr.bf16.mxu0 %v9049_v14  ;;  %v9176_v21 = vcombine.low %v292_v10, %v296_v11  ;;  %v105_v14 = vld [vmem:[%s14866_s1 + $0x1a8] sm:$0xff] }
  0x2b   :  { %v160_v17 = vld [vmem:[%s14866_s1 + $0x360] sm:$0xff]  ;;  %2137 = vmatpush2.bf16.msra.mxu0 %v9048_v20 }
  0x2c   :  { %v284_v18 = vld [vmem:[%s14866_s1 + $0x740] sm:$0xff]  ;;  %v9041_v22 = vcombine.high %v156_v16, %v160_v17  ;;  %2209 = vmatprep.subr.bf16.mxu1 %v9177_v15  ;;  %v9040_v28 = vcombine.low %v156_v16, %v160_v17  ;;  %v11379_v15 = vld [vmem:[%s14865_s0 + $0x8] ss:$20 sps:$4 sm:$0xff]   ;;  %v8994_v17 = vcombine.low %v109_v4, %v113_v5 }
  0x2d   :  { %v288_v19 = vld [vmem:[%s14866_s1 + $0x760] sm:$0xff]  ;;  %2210 = vmatpush2.bf16.msra.mxu1 %v9176_v21 }
  0x2e   :  { %v9169_v23 = vcombine.high %v284_v18, %v288_v19  ;;  %v148_v24 = vld [vmem:[%s14866_s1 + $0x300] sm:$0xff]  ;;  %2138 = vmatprep.subr.bf16.mxu0 %v9041_v22  ;;  %v9168_v29 = vcombine.low %v284_v18, %v288_v19  ;;  %v8987_v19 = vcombine.high %v101_v13, %v105_v14 }
  0x2f   :  { %v152_v25 = vld [vmem:[%s14866_s1 + $0x320] sm:$0xff]  ;;  %2139 = vmatpush2.bf16.msra.mxu0 %v9040_v28 }
  0x30   :  { %v276_v26 = vld [vmem:[%s14866_s1 + $0x700] sm:$0xff]  ;;  %v9033_v30 = vcombine.high %v148_v24, %v152_v25  ;;  %2211 = vmatprep.subr.bf16.mxu1 %v9169_v23  ;;  %v9032_v36 = vcombine.low %v148_v24, %v152_v25  ;;  %v93_v23 = vld [vmem:[%s14866_s1 + $0x148] sm:$0xff] }
  0x31   :  { %v280_v27 = vld [vmem:[%s14866_s1 + $0x720] sm:$0xff]  ;;  %2212 = vmatpush2.bf16.msra.mxu1 %v9168_v29  ;;  %v97_v24 = vld [vmem:[%s14866_s1 + $0x168] sm:$0xff] }
  0x32   :  { %v9161_v31 = vcombine.high %v276_v26, %v280_v27  ;;  %v140_v32 = vld [vmem:[%s14866_s1 + $0x2c0] sm:$0xff]  ;;  %2140 = vmatprep.subr.bf16.mxu0 %v9033_v30  ;;  %v9160_v37 = vcombine.low %v276_v26, %v280_v27  ;;  %v11402_v25 = vld [vmem:[%s14865_s0 + $0x34] ss:$20 sps:$4 sm:$0xff]   ;;  %v8986_v27 = vcombine.low %v101_v13, %v105_v14  ;;  %v8979_v29 = vcombine.high %v93_v23, %v97_v24 }
  0x33   :  { %v144_v33 = vld [vmem:[%s14866_s1 + $0x2e0] sm:$0xff]  ;;  %2141 = vmatpush2.bf16.msra.mxu0 %v9032_v36  ;;  %v53_v13 = vld [vmem:[%s14866_s1 + $0x8] sm:$0xff] }
  0x34   :  { %v268_v34 = vld [vmem:[%s14866_s1 + $0x6c0] sm:$0xff]  ;;  %v9025_v38 = vcombine.high %v140_v32, %v144_v33  ;;  %2213 = vmatprep.subr.bf16.mxu1 %v9161_v31  ;;  %v9024_v44 = vcombine.low %v140_v32, %v144_v33  ;;  %v11415_v32 = vld [vmem:[%s14865_s0 + $0x28] ss:$20 sps:$4 sm:$0xff]  }
  0x35   :  { %v272_v35 = vld [vmem:[%s14866_s1 + $0x6e0] sm:$0xff]  ;;  %2214 = vmatpush2.bf16.msra.mxu1 %v9160_v37  ;;  %v85_v33 = vld [vmem:[%s14866_s1 + $0x108] sm:$0xff]  ;;  %v8978_v37 = vcombine.low %v93_v23, %v97_v24 }
  0x36   :  { %v132_v39 = vld [vmem:[%s14866_s1 + $0x280] sm:$0xff]  ;;  %v9153_v40 = vcombine.high %v268_v34, %v272_v35  ;;  %2142 = vmatprep.subr.bf16.mxu0 %v9025_v38  ;;  %v9152_v45 = vcombine.low %v268_v34, %v272_v35  ;;  %v89_v34 = vld [vmem:[%s14866_s1 + $0x128] sm:$0xff] }
  0x37   :  { %v136_v41 = vld [vmem:[%s14866_s1 + $0x2a0] sm:$0xff]  ;;  %2143 = vmatpush2.bf16.msra.mxu0 %v9024_v44  ;;  %v81_v44 = vld [vmem:[%s14866_s1 + $0xe8] sm:$0xff] }
  0x38   :  { %v260_v42 = vld [vmem:[%s14866_s1 + $0x680] sm:$0xff]  ;;  %v9017_v46 = vcombine.high %v132_v39, %v136_v41  ;;  %2215 = vmatprep.subr.bf16.mxu1 %v9153_v40  ;;  %v9016_v52 = vcombine.low %v132_v39, %v136_v41  ;;  %v8971_v39 = vcombine.high %v85_v33, %v89_v34  ;;  %v11432_v40 = vld [vmem:[%s14865_s0 + $0x54] ss:$20 sps:$4 sm:$0xff]  }
  0x39   :  { %v264_v43 = vld [vmem:[%s14866_s1 + $0x6a0] sm:$0xff]  ;;  %2216 = vmatpush2.bf16.msra.mxu1 %v9152_v45  ;;  %v10522_v45 = vld [vmem:[%s14865_s0 + $0x5c] ss:$20 sps:$4 sm:$0xff]   ;;  %v57_v14 = vld [vmem:[%s14866_s1 + $0x28] sm:$0xff] }
  0x3a   :  { %v124_v47 = vld [vmem:[%s14866_s1 + $0x240] sm:$0xff]  ;;  %v9145_v48 = vcombine.high %v260_v42, %v264_v43  ;;  %2144 = vmatprep.subr.bf16.mxu0 %v9017_v46  ;;  %v9144_v53 = vcombine.low %v260_v42, %v264_v43  ;;  %v77_v43 = vld [vmem:[%s14866_s1 + $0xc8] sm:$0xff]  ;;  %v8939_v23 = vcombine.high %v53_v13, %v57_v14 }
  0x3b   :  { %v128_v49 = vld [vmem:[%s14866_s1 + $0x260] sm:$0xff]  ;;  %2145 = vmatpush2.bf16.msra.mxu0 %v9016_v52  ;;  %v241_v24 = vld [vmem:[%s14866_s1 + $0x5e8] sm:$0xff] }
  0x3c   :  { %v252_v50 = vld [vmem:[%s14866_s1 + $0x640] sm:$0xff]  ;;  %v9009_v54 = vcombine.high %v124_v47, %v128_v49  ;;  %2217 = vmatprep.subr.bf16.mxu1 %v9145_v48  ;;  %v9008_v62 = vcombine.low %v124_v47, %v128_v49  ;;  %v8970_v47 = vcombine.low %v85_v33, %v89_v34  ;;  %v8963_v49 = vcombine.high %v77_v43, %v81_v44  ;;  %v229_v33 = vld [vmem:[%s14866_s1 + $0x588] sm:$0xff] }
  0x3d   :  { %v256_v51 = vld [vmem:[%s14866_s1 + $0x660] sm:$0xff]  ;;  %2218 = vmatpush2.bf16.msra.mxu1 %v9144_v53  ;;  %v69_v53 = vld [vmem:[%s14866_s1 + $0x88] sm:$0xff]  ;;  %v11099_v34 = vmov 0  }
  0x3e   :  { %v9137_v55 = vcombine.high %v252_v50, %v256_v51  ;;  %v116_v57 = vld [vmem:[%s14866_s1 + $0x200] sm:$0xff]  ;;  %2146 = vmatprep.subr.bf16.mxu0 %v9009_v54  ;;  %v9136_v63 = vcombine.low %v252_v50, %v256_v51  ;;  %v73_v54 = vld [vmem:[%s14866_s1 + $0xa8] sm:$0xff] }
  0x3f   :  { %v120_v58 = vld [vmem:[%s14866_s1 + $0x220] sm:$0xff]  ;;  %2147 = vmatpush2.bf16.msra.mxu0 %v9008_v62  ;;  %v11475_v62 = vld [vmem:[%s14865_s0 + $0x7c] ss:$20 sps:$4 sm:$0xff]   ;;  %v8954_v5 = vcombine.low %v69_v53, %v73_v54 }
  0x40   :  { %v244_v60 = vld [vmem:[%s14866_s1 + $0x600] sm:$0xff]  ;;  %v9001_v0 = vcombine.high %v116_v57, %v120_v58  ;;  %2219 = vmatprep.subr.bf16.mxu1 %v9137_v55  ;;  %v9000_v6 = vcombine.low %v116_v57, %v120_v58  ;;  %v10524_v57 = vld [vmem:[%s14865_s0 + $0x58] ss:$20 sps:$4 sm:$0xff]   ;;  %v8962_v58 = vcombine.low %v77_v43, %v81_v44 }
  0x41   :  { %v248_v61 = vld [vmem:[%s14866_s1 + $0x620] sm:$0xff]  ;;  %2220 = vmatpush2.bf16.msra.mxu1 %v9136_v63  ;;  %v161_v43 = vld [vmem:[%s14866_s1 + $0x368] sm:$0xff] }
  0x42   :  { %v9129_v1 = vcombine.high %v244_v60, %v248_v61  ;;  %v364_v2 = vld [vmem:[%s14866_s1 + $0x9c0] sm:$0xff]  ;;  %2148 = vmatprep.subr.bf16.mxu0 %v9001_v0  ;;  %v9128_v7 = vcombine.low %v244_v60, %v248_v61  ;;  %v8955_v61 = vcombine.high %v69_v53, %v73_v54  ;;  %v221_v44 = vld [vmem:[%s14866_s1 + $0x548] sm:$0xff] }
  0x43   :  { %v368_v3 = vld [vmem:[%s14866_s1 + $0x9e0] sm:$0xff]  ;;  %2149 = vmatpush2.bf16.msra.mxu0 %v9000_v6  ;;  %v11496_v6 = vld [vmem:[%s14865_s0 + $0x78] ss:$20 sps:$4 sm:$0xff]  }
  0x44   :  { %v9249_v8 = vcombine.high %v364_v2, %v368_v3  ;;  %2221 = vmatprep.subr.bf16.mxu1 %v9129_v1  ;;  %v356_v10 = vld [vmem:[%s14866_s1 + $0x980] sm:$0xff]  ;;  %v9248_v16 = vcombine.low %v364_v2, %v368_v3  ;;  %v61_v1 = vld [vmem:[%s14866_s1 + $0x48] sm:$0xff] }
  0x45   :  { %v360_v11 = vld [vmem:[%s14866_s1 + $0x9a0] sm:$0xff]  ;;  %2222 = vmatpush2.bf16.msra.mxu1 %v9128_v7  ;;  %v65_v2 = vld [vmem:[%s14866_s1 + $0x68] sm:$0xff] }
  0x46   :  { %v11368_v12 = vld [vmem:[%s14865_s0] ss:$20 sps:$4 sm:$0xff]   ;;  %2264 = vmatprep.subr.bf16.mxu0 %v9249_v8  ;;  %v9241_v18 = vcombine.high %v356_v10, %v360_v11  ;;  %2337 = vmatprep.subr.bf16.mxu1 %v8995_v9  ;;  %v9240_v26 = vcombine.low %v356_v10, %v360_v11  ;;  %v11427_v36 = vld [vmem:[%s14865_s0 + $0x30] ss:$20 sps:$4 sm:$0xff]   ;;  %v8947_v10 = vcombine.high %v61_v1, %v65_v2  ;;  %v213_v53 = vld [vmem:[%s14866_s1 + $0x508] sm:$0xff] }
  0x47   :  { %v11384_v20 = vld [vmem:[%s14865_s0 + $0x2c] ss:$20 sps:$4 sm:$0xff]   ;;  %2151 = vmatmul.mubr.bf16.vlgmr.msra.gmra.mxu0 %v11368_v12  ;;  %v11461_v52 = vld [vmem:[%s14865_s0 + $0x50] ss:$20 sps:$4 sm:$0xff]  }
  0x48   :  { %v348_v21 = vld [vmem:[%s14866_s1 + $0x940] sm:$0xff]  ;;  %2224 = vmatmul.mubr.bf16.vlgmr.msra.gmra.mxu1 %v11379_v15  ;;  %2265 = vmatpush1.bf16.msra.mxu0 %v9248_v16 }
  0x49   :  { %v352_v22 = vld [vmem:[%s14866_s1 + $0x960] sm:$0xff]  ;;  %2338 = vmatpush1.bf16.msra.mxu1 %v8994_v17  ;;  %2266 = vmatprep.subr.bf16.mxu0 %v9241_v18  ;;  %v8946_v17 = vcombine.low %v61_v1, %v65_v2  ;;  %v209_v2 = vld [vmem:[%s14866_s1 + $0x4e8] sm:$0xff] }
  0x4a   :  { %v9233_v28 = vcombine.high %v348_v21, %v352_v22  ;;  %2339 = vmatprep.subr.bf16.mxu1 %v8987_v19  ;;  %2160 = vmatprep.mubr.bf16.mxu0 %v11384_v20  ;;  %v340_v30 = vld [vmem:[%s14866_s1 + $0x900] sm:$0xff]  ;;  %v9232_v35 = vcombine.low %v348_v21, %v352_v22  ;;  %v173_v19 = vld [vmem:[%s14866_s1 + $0x3c8] sm:$0xff] }
  0x4b   :  { %v344_v31 = vld [vmem:[%s14866_s1 + $0x920] sm:$0xff]  ;;  %2233 = vmatprep.mubr.bf16.mxu1 %v11402_v25  ;;  %v177_v21 = vld [vmem:[%s14866_s1 + $0x3e8] sm:$0xff] }
  0x4c   :  { %2267 = vmatpush1.bf16.msra.mxu0 %v9240_v26  ;;  %v9225_v38 = vcombine.high %v340_v30, %v344_v31  ;;  %v332_v41 = vld [vmem:[%s14866_s1 + $0x8c0] sm:$0xff]  ;;  %v9224_v46 = vcombine.low %v340_v30, %v344_v31  ;;  %v237_v22 = vld [vmem:[%s14866_s1 + $0x5c8] sm:$0xff] }
  0x4d   :  { %2340 = vmatpush1.bf16.msra.mxu1 %v8986_v27  ;;  %2268 = vmatprep.subr.bf16.mxu0 %v9233_v28  ;;  %v336_v42 = vld [vmem:[%s14866_s1 + $0x8e0] sm:$0xff]  ;;  %v8938_v27 = vcombine.low %v53_v13, %v57_v14  ;;  %v165_v30 = vld [vmem:[%s14866_s1 + $0x388] sm:$0xff] }
  0x4e   :  { %2341 = vmatprep.subr.bf16.mxu1 %v8979_v29  ;;  %v9217_v48 = vcombine.high %v332_v41, %v336_v42  ;;  %v324_v50 = vld [vmem:[%s14866_s1 + $0x880] sm:$0xff]  ;;  %v9216_v55 = vcombine.low %v332_v41, %v336_v42  ;;  %v9123_v29 = vcombine.high %v237_v22, %v241_v24  ;;  %v169_v31 = vld [vmem:[%s14866_s1 + $0x3a8] sm:$0xff] }
  0x4f   :  { %2161 = vmatmul.mubr.bf16.gmra.mxu0 %v11415_v32  ;;  %v328_v51 = vld [vmem:[%s14866_s1 + $0x8a0] sm:$0xff]  ;;  %v157_v42 = vld [vmem:[%s14866_s1 + $0x348] sm:$0xff] }
  0x50   :  { %2269 = vmatpush1.bf16.msra.mxu0 %v9232_v35  ;;  %2234 = vmatmul.mubr.bf16.gmra.mxu1 %v11427_v36  ;;  %v9209_v60 = vcombine.high %v324_v50, %v328_v51  ;;  %v316_v63 = vld [vmem:[%s14866_s1 + $0x840] sm:$0xff]  ;;  %v9208_v4 = vcombine.low %v324_v50, %v328_v51  ;;  %v9059_v35 = vcombine.high %v173_v19, %v177_v21  ;;  %v149_v50 = vld [vmem:[%s14866_s1 + $0x308] sm:$0xff] }
  0x51   :  { %2342 = vmatpush1.bf16.msra.mxu1 %v8978_v37  ;;  %2270 = vmatprep.subr.bf16.mxu0 %v9225_v38  ;;  %v320_v0 = vld [vmem:[%s14866_s1 + $0x860] sm:$0xff]  ;;  %v233_v37 = vld [vmem:[%s14866_s1 + $0x5a8] sm:$0xff]  ;;  %v9122_v38 = vcombine.low %v237_v22, %v241_v24  ;;  %v9043_v54 = vcombine.high %v157_v42, %v161_v43 }
  0x52   :  { %2343 = vmatprep.subr.bf16.mxu1 %v8971_v39  ;;  %2170 = vmatprep.mubr.bf16.mxu0 %v11432_v40  ;;  %v10528_v3 = vld [vmem:[%s14865_s0 + $0x84] ss:$20 sps:$4 sm:$0xff]   ;;  %v9201_v7 = vcombine.high %v316_v63, %v320_v0  ;;  %v10530_v11 = vld [vmem:[%s14865_s0 + $0x80] ss:$20 sps:$4 sm:$0xff]   ;;  %v9200_v16 = vcombine.low %v316_v63, %v320_v0  ;;  %v9058_v39 = vcombine.low %v173_v19, %v177_v21  ;;  %v153_v51 = vld [vmem:[%s14866_s1 + $0x328] sm:$0xff] }
  0x53   :  { %2243 = vmatprep.mubr.bf16.mxu1 %v10522_v45  ;;  %v308_v8 = vld [vmem:[%s14866_s1 + $0x800] sm:$0xff]  ;;  %v9115_v41 = vcombine.high %v229_v33, %v233_v37  ;;  %v225_v45 = vld [vmem:[%s14866_s1 + $0x568] sm:$0xff]  ;;  %v9035_v1 = vcombine.high %v149_v50, %v153_v51 }
  0x54   :  { %2271 = vmatpush1.bf16.msra.mxu0 %v9224_v46  ;;  %v312_v9 = vld [vmem:[%s14866_s1 + $0x820] sm:$0xff]  ;;  %v9114_v46 = vcombine.low %v229_v33, %v233_v37  ;;  %v145_v63 = vld [vmem:[%s14866_s1 + $0x2e8] sm:$0xff] }
  0x55   :  { %2344 = vmatpush1.bf16.msra.mxu1 %v8970_v47  ;;  %2272 = vmatprep.subr.bf16.mxu0 %v9217_v48  ;;  %v9193_v18 = vcombine.high %v308_v8, %v312_v9  ;;  %v9192_v26 = vcombine.low %v308_v8, %v312_v9  ;;  %v11530_v28 = vld [vmem:[%s14865_s0 + $0x10] ss:$20 sps:$4 sm:$0xff]   ;;  %v9050_v47 = vcombine.low %v165_v30, %v169_v31  ;;  %v11563_v48 = vld [vmem:[%s14865_s0 + $0x38] ss:$20 sps:$4 sm:$0xff]  }
  0x56   :  { %2345 = vmatprep.subr.bf16.mxu1 %v8963_v49  ;;  %v9107_v49 = vcombine.high %v221_v44, %v225_v45  ;;  %v205_v0 = vld [vmem:[%s14866_s1 + $0x4c8] sm:$0xff] }
  0x57   :  { %2171 = vmatmul.mubr.bf16.gmra.mxu0 %v11461_v52  ;;  %v133_v8 = vld [vmem:[%s14866_s1 + $0x288] sm:$0xff]  ;;  %v9090_v14 = vcombine.low %v205_v0, %v209_v2 }
  0x58   :  { %2273 = vmatpush1.bf16.msra.mxu0 %v9216_v55  ;;  %2244 = vmatmul.mubr.bf16.gmra.mxu1 %v10524_v57  ;;  %v217_v55 = vld [vmem:[%s14866_s1 + $0x528] sm:$0xff]  ;;  %v9106_v57 = vcombine.low %v221_v44, %v225_v45 }
  0x59   :  { %2346 = vmatpush1.bf16.msra.mxu1 %v8962_v58  ;;  %2274 = vmatprep.subr.bf16.mxu0 %v9209_v60  ;;  %v9042_v58 = vcombine.low %v157_v42, %v161_v43  ;;  %v9099_v60 = vcombine.high %v213_v53, %v217_v55  ;;  %v137_v9 = vld [vmem:[%s14866_s1 + $0x2a8] sm:$0xff] }
  0x5a   :  { %2347 = vmatprep.subr.bf16.mxu1 %v8955_v61  ;;  %2180 = vmatprep.mubr.bf16.mxu0 %v11475_v62  ;;  %v141_v61 = vld [vmem:[%s14866_s1 + $0x2c8] sm:$0xff]  ;;  %v9019_v22 = vcombine.high %v133_v8, %v137_v9 }
  0x5b   :  { %2253 = vmatprep.mubr.bf16.mxu1 %v10528_v3  ;;  %v9098_v3 = vcombine.low %v213_v53, %v217_v55  ;;  %v201_v13 = vld [vmem:[%s14866_s1 + $0x4a8] sm:$0xff] }
  0x5c   :  { %2275 = vmatpush1.bf16.msra.mxu0 %v9208_v4  ;;  %v9034_v4 = vcombine.low %v149_v50, %v153_v51  ;;  %v129_v19 = vld [vmem:[%s14866_s1 + $0x268] sm:$0xff] }
  0x5d   :  { %2348 = vmatpush1.bf16.msra.mxu1 %v8954_v5  ;;  %2276 = vmatprep.subr.bf16.mxu0 %v9201_v7  ;;  %v11594_v5 = vld [vmem:[%s14865_s0 + $0x60] ss:$20 sps:$4 sm:$0xff]   ;;  %v9091_v7 = vcombine.high %v205_v0, %v209_v2  ;;  %v189_v21 = vld [vmem:[%s14866_s1 + $0x448] sm:$0xff] }
  0x5e   :  { %2349 = vmatprep.subr.bf16.mxu1 %v8947_v10  ;;  %v197_v10 = vld [vmem:[%s14866_s1 + $0x488] sm:$0xff] }
  0x5f   :  { %2181 = vmatmul.mubr.bf16.gmra.mxu0 %v11496_v6  ;;  %v9082_v24 = vcombine.low %v197_v10, %v201_v13  ;;  %v181_v33 = vld [vmem:[%s14866_s1 + $0x408] sm:$0xff] }
  0x60   :  { %2277 = vmatpush1.bf16.msra.mxu0 %v9200_v16  ;;  %2254 = vmatmul.mubr.bf16.gmra.mxu1 %v10530_v11  ;;  %v9027_v11 = vcombine.high %v141_v61, %v145_v63  ;;  %v9026_v16 = vcombine.low %v141_v61, %v145_v63  ;;  %v185_v37 = vld [vmem:[%s14866_s1 + $0x428] sm:$0xff] }
  0x61   :  { %2350 = vmatpush1.bf16.msra.mxu1 %v8946_v17  ;;  %2278 = vmatprep.subr.bf16.mxu0 %v9193_v18  ;;  %v9083_v17 = vcombine.high %v197_v10, %v201_v13  ;;  %v125_v18 = vld [vmem:[%s14866_s1 + $0x248] sm:$0xff] }
  0x62   :  { %2351 = vmatprep.subr.bf16.mxu1 %v8939_v23  ;;  %2296 = vmatprep.mubr.bf16.mxu0 %v11099_v34  ;;  %v193_v23 = vld [vmem:[%s14866_s1 + $0x468] sm:$0xff] }
  0x63   :  { %2369 = vmatprep.mubr.bf16.mxu1 %v11236_v56  ;;  %v9051_v56 = vcombine.high %v165_v30, %v169_v31  ;;  %v117_v30 = vld [vmem:[%s14866_s1 + $0x208] sm:$0xff] }
  0x64   :  { %2279 = vmatpush1.bf16.msra.mxu0 %v9192_v26  ;;  %v9018_v26 = vcombine.low %v133_v8, %v137_v9  ;;  %v121_v31 = vld [vmem:[%s14866_s1 + $0x228] sm:$0xff] }
  0x65   :  { %2352 = vmatpush1.bf16.msra.mxu1 %v8938_v27  ;;  %2410 = vmatprep.subr.bf16.mxu0 %v9123_v29  ;;  %v11625_v27 = vld [vmem:[%s14865_s0 + $0x88] ss:$20 sps:$4 sm:$0xff]   ;;  %v9075_v29 = vcombine.high %v189_v21, %v193_v23 }
  0x66   :  { %2353 = vmatprep.subr.bf16.mxu1 %v9059_v35  ;;  %v9011_v35 = vcombine.high %v125_v18, %v129_v19  ;;  %v301_v42 = vld [vmem:[%s14866_s1 + $0x7c8] sm:$0xff] }
  0x67   :  { %2297 = vmatmul.mubr.bf16.vlgmr.msra.gmra.mxu0 %v11530_v28  ;;  %v305_v43 = vld [vmem:[%s14866_s1 + $0x7e8] sm:$0xff] }
  0x68   :  { %2411 = vmatpush1.bf16.msra.mxu0 %v9122_v38  ;;  %2306 = vmatprep.mubr.bf16.mxu0 %v11099_v34  ;;  %v9074_v38 = vcombine.low %v189_v21, %v193_v23  ;;  %v365_v44 = vld [vmem:[%s14866_s1 + $0x9c8] sm:$0xff]  ;;  %v9186_v55 = vcombine.low %v301_v42, %v305_v43 }
  0x69   :  { %2354 = vmatpush2.bf16.msra.mxu1 %v9058_v39  ;;  %2412 = vmatprep.subr.bf16.mxu0 %v9115_v41  ;;  %v9010_v39 = vcombine.low %v125_v18, %v129_v19  ;;  %v9067_v41 = vcombine.high %v181_v33, %v185_v37  ;;  %v369_v45 = vld [vmem:[%s14866_s1 + $0x9e8] sm:$0xff] }
  0x6a   :  { %2355 = vmatprep.subr.bf16.mxu1 %v9051_v56  ;;  %v9003_v56 = vcombine.high %v117_v30, %v121_v31  ;;  %v293_v50 = vld [vmem:[%s14866_s1 + $0x788] sm:$0xff] }
  0x6b   :  { %v297_v51 = vld [vmem:[%s14866_s1 + $0x7a8] sm:$0xff] }
  0x6c   :  { %2413 = vmatpush1.bf16.msra.mxu0 %v9114_v46  ;;  %v9066_v46 = vcombine.low %v181_v33, %v185_v37  ;;  %v357_v53 = vld [vmem:[%s14866_s1 + $0x988] sm:$0xff]  ;;  %v9178_v2 = vcombine.low %v293_v50, %v297_v51 }
  0x6d   :  { %2356 = vmatpush2.bf16.msra.mxu1 %v9050_v47  ;;  %2414 = vmatprep.subr.bf16.mxu0 %v9107_v49  ;;  %v9002_v47 = vcombine.low %v117_v30, %v121_v31  ;;  %v9187_v49 = vcombine.high %v301_v42, %v305_v43  ;;  %v289_v63 = vld [vmem:[%s14866_s1 + $0x768] sm:$0xff] }
  0x6e   :  { %2357 = vmatprep.subr.bf16.mxu1 %v9043_v54  ;;  %v9251_v54 = vcombine.high %v365_v44, %v369_v45  ;;  %v349_v0 = vld [vmem:[%s14866_s1 + $0x948] sm:$0xff] }
  0x6f   :  { %2307 = vmatmul.mubr.bf16.gmra.mxu0 %v11563_v48  ;;  %v281_v8 = vld [vmem:[%s14866_s1 + $0x728] sm:$0xff] }
  0x70   :  { %2415 = vmatpush1.bf16.msra.mxu0 %v9106_v57  ;;  %2316 = vmatprep.mubr.bf16.mxu0 %v11099_v34  ;;  %v9250_v57 = vcombine.low %v365_v44, %v369_v45  ;;  %v341_v9 = vld [vmem:[%s14866_s1 + $0x908] sm:$0xff] }
  0x71   :  { %2358 = vmatpush2.bf16.msra.mxu1 %v9042_v58  ;;  %2416 = vmatprep.subr.bf16.mxu0 %v9099_v60  ;;  %v9179_v58 = vcombine.high %v293_v50, %v297_v51  ;;  %v285_v60 = vld [vmem:[%s14866_s1 + $0x748] sm:$0xff] }
  0x72   :  { %2359 = vmatprep.subr.bf16.mxu1 %v9035_v1  ;;  %v353_v1 = vld [vmem:[%s14866_s1 + $0x968] sm:$0xff] }
  0x73   :  { %v345_v10 = vld [vmem:[%s14866_s1 + $0x928] sm:$0xff]  ;;  %v9234_v13 = vcombine.low %v349_v0, %v353_v1 }
  0x74   :  { %2417 = vmatpush1.bf16.msra.mxu0 %v9098_v3  ;;  %v9227_v18 = vcombine.high %v341_v9, %v345_v10  ;;  %v337_v19 = vld [vmem:[%s14866_s1 + $0x8e8] sm:$0xff] }
  0x75   :  { %2360 = vmatpush2.bf16.msra.mxu1 %v9034_v4  ;;  %2418 = vmatprep.subr.bf16.mxu0 %v9091_v7  ;;  %v9171_v4 = vcombine.high %v285_v60, %v289_v63  ;;  %v277_v7 = vld [vmem:[%s14866_s1 + $0x708] sm:$0xff] }
  0x76   :  { %2361 = vmatprep.subr.bf16.mxu1 %v9027_v11  ;;  %v9170_v11 = vcombine.low %v285_v60, %v289_v63  ;;  %v9162_v21 = vcombine.low %v277_v7, %v281_v8  ;;  %v329_v30 = vld [vmem:[%s14866_s1 + $0x8a8] sm:$0xff]  ;;  %v106_v63 = vld [vmem:[%s14866_s1 + $0x1b0] sm:$0xff] }
  0x77   :  { %2317 = vmatmul.mubr.bf16.gmra.mxu0 %v11594_v5  ;;  %v253_v37 = vld [vmem:[%s14866_s1 + $0x648] sm:$0xff] }
  0x78   :  { %2419 = vmatpush1.bf16.msra.mxu0 %v9090_v14  ;;  %2326 = vmatprep.mubr.bf16.mxu0 %v11099_v34  ;;  %v9163_v14 = vcombine.high %v277_v7, %v281_v8  ;;  %v249_v45 = vld [vmem:[%s14866_s1 + $0x628] sm:$0xff]  ;;  %v94_v7 = vld [vmem:[%s14866_s1 + $0x150] sm:$0xff] }
  0x79   :  { %2362 = vmatpush2.bf16.msra.mxu1 %v9026_v16  ;;  %2420 = vmatprep.subr.bf16.mxu0 %v9083_v17  ;;  %v269_v16 = vld [vmem:[%s14866_s1 + $0x6c8] sm:$0xff]  ;;  %v98_v8 = vld [vmem:[%s14866_s1 + $0x170] sm:$0xff] }
  0x7a   :  { %2363 = vmatprep.subr.bf16.mxu1 %v9019_v22  ;;  %v273_v17 = vld [vmem:[%s14866_s1 + $0x6e8] sm:$0xff]  ;;  %v9226_v22 = vcombine.low %v341_v9, %v345_v10  ;;  %v222_v9 = vld [vmem:[%s14866_s1 + $0x550] sm:$0xff] }
  0x7b   :  { %v9155_v23 = vcombine.high %v269_v16, %v273_v17  ;;  %v9154_v31 = vcombine.low %v269_v16, %v273_v17  ;;  %v226_v10 = vld [vmem:[%s14866_s1 + $0x570] sm:$0xff] }
  0x7c   :  { %2421 = vmatpush1.bf16.msra.mxu0 %v9082_v24  ;;  %v261_v24 = vld [vmem:[%s14866_s1 + $0x688] sm:$0xff]  ;;  %v86_v16 = vld [vmem:[%s14866_s1 + $0x110] sm:$0xff] }
  0x7d   :  { %2364 = vmatpush2.bf16.msra.mxu1 %v9018_v26  ;;  %2422 = vmatprep.subr.bf16.mxu0 %v9075_v29  ;;  %v265_v26 = vld [vmem:[%s14866_s1 + $0x6a8] sm:$0xff]  ;;  %v90_v17 = vld [vmem:[%s14866_s1 + $0x130] sm:$0xff] }
  0x7e   :  { %2365 = vmatprep.subr.bf16.mxu1 %v9011_v35  ;;  %v325_v29 = vld [vmem:[%s14866_s1 + $0x888] sm:$0xff]  ;;  %v9147_v35 = vcombine.high %v261_v24, %v265_v26  ;;  %v9146_v42 = vcombine.low %v261_v24, %v265_v26  ;;  %v210_v26 = vld [vmem:[%s14866_s1 + $0x4f0] sm:$0xff] }
  0x7f   :  { %2327 = vmatmul.mubr.bf16.gmra.mxu0 %v11625_v27  ;;  %v9210_v43 = vcombine.low %v325_v29, %v329_v30 }
  0x80   :  { %2423 = vmatpush1.bf16.msra.mxu0 %v9074_v38  ;;  %2442 = vmatprep.mubr.bf16.mxu0 %v11247_v59  ;;  %v361_v59 = vld [vmem:[%s14866_s1 + $0x9a8] sm:$0xff] }
  0x81   :  { %2366 = vmatpush2.bf16.msra.mxu1 %v9010_v39  ;;  %2424 = vmatprep.subr.bf16.mxu0 %v9067_v41  ;;  %v9243_v61 = vcombine.high %v357_v53, %v361_v59  ;;  %v9242_v3 = vcombine.low %v357_v53, %v361_v59  ;;  %v257_v38 = vld [vmem:[%s14866_s1 + $0x668] sm:$0xff]  ;;  %v9211_v39 = vcombine.high %v325_v29, %v329_v30  ;;  %v110_v53 = vld [vmem:[%s14866_s1 + $0x1d0] sm:$0xff] }
  0x82   :  { %2367 = vmatprep.subr.bf16.mxu1 %v9003_v56  ;;  %v321_v41 = vld [vmem:[%s14866_s1 + $0x868] sm:$0xff]  ;;  %v9139_v44 = vcombine.high %v253_v37, %v257_v38  ;;  %v8972_v29 = vcombine.low %v86_v16, %v90_v17 }
  0x83   :  { %v245_v56 = vld [vmem:[%s14866_s1 + $0x608] sm:$0xff] }
  0x84   :  { %2425 = vmatpush1.bf16.msra.mxu0 %v9066_v46  ;;  %v309_v46 = vld [vmem:[%s14866_s1 + $0x808] sm:$0xff]  ;;  %v9131_v51 = vcombine.high %v245_v56, %v249_v45 }
  0x85   :  { %2368 = vmatpush2.bf16.msra.mxu1 %v9002_v47  ;;  %2426 = vmatprep.subr.bf16.mxu0 %v9187_v49  ;;  %v313_v47 = vld [vmem:[%s14866_s1 + $0x828] sm:$0xff]  ;;  %v9138_v49 = vcombine.low %v253_v37, %v257_v38  ;;  %v202_v37 = vld [vmem:[%s14866_s1 + $0x4b0] sm:$0xff] }
  0x86   :  { %2483 = vmatprep.subr.bf16.mxu1 %v9251_v54  ;;  %v114_v54 = vld [vmem:[%s14866_s1 + $0x1f0] sm:$0xff]  ;;  %v9195_v59 = vcombine.high %v309_v46, %v313_v47 }
  0x87   :  { %v8997_v60 = vcombine.high %v110_v53, %v114_v54 }
  0x88   :  { %2370 = vmatmul.mubr.bf16.vlgmr.msra.gmra.mxu1 %v11368_v12  ;;  %2427 = vmatpush2.bf16.msra.mxu0 %v9186_v55  ;;  %v9235_v12 = vcombine.high %v349_v0, %v353_v1  ;;  %v242_v55 = vld [vmem:[%s14866_s1 + $0x5f0] sm:$0xff] }
  0x89   :  { %2484 = vmatpush1.bf16.msra.mxu1 %v9250_v57  ;;  %2428 = vmatprep.subr.bf16.mxu0 %v9179_v58  ;;  %v9130_v57 = vcombine.low %v245_v56, %v249_v45  ;;  %v9194_v58 = vcombine.low %v309_v46, %v313_v47  ;;  %v230_v0 = vld [vmem:[%s14866_s1 + $0x590] sm:$0xff]  ;;  %v11845_v45 = vld [vmem:[%s14865_s0 + $0x58] ss:$20 sps:$4 sm:$0xff]  }
  0x8a   :  { %2485 = vmatprep.subr.bf16.mxu1 %v9243_v61  ;;  %2379 = vmatprep.mubr.bf16.mxu1 %v11384_v20  ;;  %v333_v20 = vld [vmem:[%s14866_s1 + $0x8c8] sm:$0xff]  ;;  %v102_v61 = vld [vmem:[%s14866_s1 + $0x190] sm:$0xff] }
  0x8b   :  { %v9218_v33 = vcombine.low %v333_v20, %v337_v19  ;;  %v234_v1 = vld [vmem:[%s14866_s1 + $0x5b0] sm:$0xff] }
  0x8c   :  { %2429 = vmatpush2.bf16.msra.mxu0 %v9178_v2  ;;  %v8996_v2 = vcombine.low %v110_v53, %v114_v54  ;;  %v194_v56 = vld [vmem:[%s14866_s1 + $0x470] sm:$0xff] }
  0x8d   :  { %2486 = vmatpush1.bf16.msra.mxu1 %v9242_v3  ;;  %2430 = vmatprep.subr.bf16.mxu0 %v9171_v4  ;;  %v8989_v4 = vcombine.high %v102_v61, %v106_v63  ;;  %v186_v54 = vld [vmem:[%s14866_s1 + $0x430] sm:$0xff] }
  0x8e   :  { %2487 = vmatprep.subr.bf16.mxu1 %v9235_v12  ;;  %v9117_v12 = vcombine.high %v230_v0, %v234_v1 }
  0x90   :  { %2380 = vmatmul.mubr.bf16.gmra.mxu1 %v11415_v32  ;;  %2431 = vmatpush2.bf16.msra.mxu0 %v9170_v11  ;;  %v9219_v32 = vcombine.high %v333_v20, %v337_v19  ;;  %v8988_v11 = vcombine.low %v102_v61, %v106_v63  ;;  %v218_v20 = vld [vmem:[%s14866_s1 + $0x530] sm:$0xff]  ;;  %v9108_v19 = vcombine.low %v222_v9, %v226_v10 }
  0x91   :  { %2488 = vmatpush1.bf16.msra.mxu1 %v9234_v13  ;;  %2432 = vmatprep.subr.bf16.mxu0 %v9163_v14  ;;  %v9116_v13 = vcombine.low %v230_v0, %v234_v1  ;;  %v8981_v14 = vcombine.high %v94_v7, %v98_v8  ;;  %v306_v63 = vld [vmem:[%s14866_s1 + $0x7f0] sm:$0xff]  ;;  %v374_v0 = vlaneseq }
  0x92   :  { %2489 = vmatprep.subr.bf16.mxu1 %v9227_v18  ;;  %2389 = vmatprep.mubr.bf16.mxu1 %v11432_v40  ;;  %v317_v40 = vld [vmem:[%s14866_s1 + $0x848] sm:$0xff]  ;;  %v8980_v18 = vcombine.low %v94_v7, %v98_v8  ;;  %v170_v7 = vld [vmem:[%s14866_s1 + $0x3b0] sm:$0xff] }
  0x93   :  { %v9202_v50 = vcombine.low %v317_v40, %v321_v41  ;;  %v294_v8 = vld [vmem:[%s14866_s1 + $0x790] sm:$0xff] }
  0x94   :  { %2433 = vmatpush2.bf16.msra.mxu0 %v9162_v21  ;;  %v8973_v21 = vcombine.high %v86_v16, %v90_v17  ;;  %v162_v16 = vld [vmem:[%s14866_s1 + $0x370] sm:$0xff] }
  0x95   :  { %2490 = vmatpush1.bf16.msra.mxu1 %v9226_v22  ;;  %2434 = vmatprep.subr.bf16.mxu0 %v9155_v23  ;;  %v78_v22 = vld [vmem:[%s14866_s1 + $0xd0] sm:$0xff] }
  0x96   :  { %2491 = vmatprep.subr.bf16.mxu1 %v9219_v32  ;;  %v206_v23 = vld [vmem:[%s14866_s1 + $0x4d0] sm:$0xff] }
  0x98   :  { %2390 = vmatmul.mubr.bf16.gmra.mxu1 %v11461_v52  ;;  %2435 = vmatpush2.bf16.msra.mxu0 %v9154_v31  ;;  %v9203_v52 = vcombine.high %v317_v40, %v321_v41  ;;  %v70_v31 = vld [vmem:[%s14866_s1 + $0x90] sm:$0xff]  ;;  %v9092_v40 = vcombine.low %v206_v23, %v210_v26 }
  0x99   :  { %2492 = vmatpush1.bf16.msra.mxu1 %v9218_v33  ;;  %2436 = vmatprep.subr.bf16.mxu0 %v9147_v35  ;;  %v74_v33 = vld [vmem:[%s14866_s1 + $0xb0] sm:$0xff]  ;;  %v9093_v35 = vcombine.high %v206_v23, %v210_v26 }
  0x9a   :  { %2493 = vmatprep.subr.bf16.mxu1 %v9211_v39  ;;  %2399 = vmatprep.mubr.bf16.mxu1 %v11475_v62  ;;  %v238_v62 = vld [vmem:[%s14866_s1 + $0x5d0] sm:$0xff]  ;;  %v8957_v39 = vcombine.high %v70_v31, %v74_v33  ;;  %v8956_v46 = vcombine.low %v70_v31, %v74_v33 }
  0x9b   :  { %v9124_v3 = vcombine.low %v238_v62, %v242_v55  ;;  %v62_v41 = vld [vmem:[%s14866_s1 + $0x50] sm:$0xff] }
  0x9c   :  { %2437 = vmatpush2.bf16.msra.mxu0 %v9146_v42  ;;  %v66_v42 = vld [vmem:[%s14866_s1 + $0x70] sm:$0xff] }
  0x9d   :  { %2494 = vmatpush1.bf16.msra.mxu1 %v9210_v43  ;;  %2438 = vmatprep.subr.bf16.mxu0 %v9139_v44  ;;  %v190_v43 = vld [vmem:[%s14866_s1 + $0x450] sm:$0xff]  ;;  %v8949_v47 = vcombine.high %v62_v41, %v66_v42 }
  0x9e   :  { %2495 = vmatprep.subr.bf16.mxu1 %v9203_v52  ;;  %v9077_v53 = vcombine.high %v190_v43, %v194_v56  ;;  %v142_v33 = vld [vmem:[%s14866_s1 + $0x2d0] sm:$0xff] }
  0xa0   :  { %2400 = vmatmul.mubr.bf16.gmra.mxu1 %v11496_v6  ;;  %2439 = vmatpush2.bf16.msra.mxu0 %v9138_v49  ;;  %v9125_v6 = vcombine.high %v238_v62, %v242_v55  ;;  %v54_v49 = vld [vmem:[%s14866_s1 + $0x10] sm:$0xff]  ;;  %v8948_v62 = vcombine.low %v62_v41, %v66_v42 }
  0xa1   :  { %2496 = vmatpush1.bf16.msra.mxu1 %v9202_v50  ;;  %2440 = vmatprep.subr.bf16.mxu0 %v9131_v51  ;;  %v58_v50 = vld [vmem:[%s14866_s1 + $0x30] sm:$0xff] }
  0xa2   :  { %2497 = vmatprep.subr.bf16.mxu1 %v9195_v59  ;;  %2515 = vmatprep.mubr.bf16.mxu1 %v11099_v34  ;;  %v182_v51 = vld [vmem:[%s14866_s1 + $0x410] sm:$0xff]  ;;  %v9076_v59 = vcombine.low %v190_v43, %v194_v56  ;;  %v8941_v55 = vcombine.high %v54_v49, %v58_v50  ;;  %v8940_v1 = vcombine.low %v54_v49, %v58_v50 }
  0xa3   :  { %v9069_v61 = vcombine.high %v182_v51, %v186_v54  ;;  %v134_v42 = vld [vmem:[%s14866_s1 + $0x290] sm:$0xff] }
  0xa4   :  { %2441 = vmatpush2.bf16.msra.mxu0 %v9130_v57  ;;  %v174_v57 = vld [vmem:[%s14866_s1 + $0x3d0] sm:$0xff] }
  0xa5   :  { %2498 = vmatpush1.bf16.msra.mxu1 %v9194_v58  ;;  %2556 = vmatprep.subr.bf16.mxu0 %v8997_v60  ;;  %v178_v58 = vld [vmem:[%s14866_s1 + $0x3f0] sm:$0xff] }
  0xa6   :  { %2629 = vmatprep.subr.bf16.mxu1 %v9125_v6  ;;  %v302_v60 = vld [vmem:[%s14866_s1 + $0x7d0] sm:$0xff] }
  0xa7   :  { %2443 = vmatmul.mubr.bf16.vlgmr.msra.gmra.mxu0 %v11379_v15  ;;  %v214_v15 = vld [vmem:[%s14866_s1 + $0x510] sm:$0xff]  ;;  %v9188_v17 = vcombine.low %v302_v60, %v306_v63 }
  0xa8   :  { %2516 = vmatmul.mubr.bf16.vlgmr.msra.gmra.mxu1 %v11530_v28  ;;  %2557 = vmatpush1.bf16.msra.mxu0 %v8996_v2  ;;  %v9109_v28 = vcombine.high %v222_v9, %v226_v10  ;;  %v9101_v24 = vcombine.high %v214_v15, %v218_v20  ;;  %v9100_v32 = vcombine.low %v214_v15, %v218_v20  ;;  %v11883_v6 = vld [vmem:[%s14865_s0 + $0x80] ss:$20 sps:$4 sm:$0xff]   ;;  %v11905_v10 = vshrl.u32 %v374_v0, 7 }
  0xa9   :  { %2630 = vmatpush1.bf16.msra.mxu1 %v9124_v3  ;;  %2558 = vmatprep.subr.bf16.mxu0 %v8989_v4  ;;  %v9068_v2 = vcombine.low %v182_v51, %v186_v54  ;;  %v9061_v3 = vcombine.high %v174_v57, %v178_v58  ;;  %v166_v4 = vld [vmem:[%s14866_s1 + $0x390] sm:$0xff]  ;;  %v9189_v9 = vcombine.high %v302_v60, %v306_v63 }
  0xaa   :  { %2631 = vmatprep.subr.bf16.mxu1 %v9117_v12  ;;  %2452 = vmatprep.mubr.bf16.mxu0 %v11402_v25  ;;  %v82_v25 = vld [vmem:[%s14866_s1 + $0xf0] sm:$0xff]  ;;  %v11902_v12 = vld [vmem:[%s14865_s0 + $0x4] ss:$20 sps:$4 sm:$0xff]   ;;  %v9053_v15 = vcombine.high %v166_v4, %v170_v7  ;;  %v380_v23 = vsub.s32 1, %v11905_v10 }
  0xab   :  { %2525 = vmatprep.mubr.bf16.mxu1 %v11099_v34  ;;  %v8965_v30 = vcombine.high %v78_v22, %v82_v25  ;;  %v8964_v38 = vcombine.low %v78_v22, %v82_v25  ;;  %v290_v20 = vld [vmem:[%s14866_s1 + $0x770] sm:$0xff]  ;;  %v376_v25 = vsub.s32 0, %v11905_v10 }
  0xac   :  { %2559 = vmatpush1.bf16.msra.mxu0 %v8988_v11  ;;  %v11052_v11 = vld [vmem:[%s14865_s0 + $0xc] ss:$20 sps:$4 sm:$0xff]   ;;  %v154_v22 = vld [vmem:[%s14866_s1 + $0x330] sm:$0xff] }
  0xad   :  { %2632 = vmatpush1.bf16.msra.mxu1 %v9116_v13  ;;  %2560 = vmatprep.subr.bf16.mxu0 %v8981_v14  ;;  %v9060_v13 = vcombine.low %v174_v57, %v178_v58  ;;  %v158_v14 = vld [vmem:[%s14866_s1 + $0x350] sm:$0xff] }
  0xae   :  { %2633 = vmatprep.subr.bf16.mxu1 %v9109_v28  ;;  %v286_v28 = vld [vmem:[%s14866_s1 + $0x750] sm:$0xff]  ;;  %v9045_v26 = vcombine.high %v158_v14, %v162_v16  ;;  %v9044_v31 = vcombine.low %v158_v14, %v162_v16 }
  0xaf   :  { %2453 = vmatmul.mubr.bf16.gmra.mxu0 %v11427_v36  ;;  %v198_v36 = vld [vmem:[%s14866_s1 + $0x490] sm:$0xff] }
  0xb0   :  { %2561 = vmatpush1.bf16.msra.mxu0 %v8980_v18  ;;  %2526 = vmatmul.mubr.bf16.gmra.mxu1 %v11563_v48  ;;  %v11823_v48 = vld [vmem:[%s14865_s0 + $0x5c] ss:$20 sps:$4 sm:$0xff]   ;;  %v9085_v44 = vcombine.high %v198_v36, %v202_v37  ;;  %v9084_v52 = vcombine.low %v198_v36, %v202_v37 }
  0xb1   :  { %2634 = vmatpush1.bf16.msra.mxu1 %v9108_v19  ;;  %2562 = vmatprep.subr.bf16.mxu0 %v8973_v21  ;;  %v9052_v19 = vcombine.low %v166_v4, %v170_v7  ;;  %v150_v21 = vld [vmem:[%s14866_s1 + $0x310] sm:$0xff] }
  0xb2   :  { %2635 = vmatprep.subr.bf16.mxu1 %v9101_v24  ;;  %2462 = vmatprep.mubr.bf16.mxu0 %v11823_v48  ;;  %v146_v36 = vld [vmem:[%s14866_s1 + $0x2f0] sm:$0xff]  ;;  %v9037_v37 = vcombine.high %v150_v21, %v154_v22  ;;  %v9036_v41 = vcombine.low %v150_v21, %v154_v22 }
  0xb3   :  { %2535 = vmatprep.mubr.bf16.mxu1 %v11099_v34  ;;  %v138_v43 = vld [vmem:[%s14866_s1 + $0x2b0] sm:$0xff]  ;;  %v9029_v56 = vcombine.high %v142_v33, %v146_v36  ;;  %v9028_v49 = vcombine.low %v142_v33, %v146_v36  ;;  %v11054_v36 = vld [vmem:[%s14865_s0 + $0x8] ss:$20 sps:$4 sm:$0xff]  }
  0xb4   :  { %2563 = vmatpush1.bf16.msra.mxu0 %v8972_v29  ;;  %v278_v29 = vld [vmem:[%s14866_s1 + $0x710] sm:$0xff]  ;;  %v9021_v54 = vcombine.high %v134_v42, %v138_v43  ;;  %v9020_v57 = vcombine.low %v134_v42, %v138_v43  ;;  %v91_v42 = vld [vmem:[%s14866_s1 + $0x138] sm:$0xff]  ;;  %v12044_v43 = vld [vmem:[%s14865_s0 + $0x2c] ss:$20 sps:$4 sm:$0xff]  }
  0xb5   :  { %2636 = vmatpush1.bf16.msra.mxu1 %v9100_v32  ;;  %2564 = vmatprep.subr.bf16.mxu0 %v8965_v30  ;;  %v282_v32 = vld [vmem:[%s14866_s1 + $0x730] sm:$0xff]  ;;  %v9173_v30 = vcombine.high %v286_v28, %v290_v20 }
  0xb6   :  { %2637 = vmatprep.subr.bf16.mxu1 %v9093_v35  ;;  %v9172_v35 = vcombine.low %v286_v28, %v290_v20  ;;  %v126_v50 = vld [vmem:[%s14866_s1 + $0x250] sm:$0xff]  ;;  %v103_v20 = vld [vmem:[%s14866_s1 + $0x198] sm:$0xff] }
  0xb7   :  { %2463 = vmatmul.mubr.bf16.gmra.mxu0 %v11845_v45  ;;  %v130_v51 = vld [vmem:[%s14866_s1 + $0x270] sm:$0xff] }
  0xb8   :  { %2565 = vmatpush1.bf16.msra.mxu0 %v8964_v38  ;;  %2536 = vmatmul.mubr.bf16.gmra.mxu1 %v11594_v5  ;;  %v11861_v5 = vld [vmem:[%s14865_s0 + $0x84] ss:$20 sps:$4 sm:$0xff]   ;;  %v270_v38 = vld [vmem:[%s14866_s1 + $0x6d0] sm:$0xff]  ;;  %v9013_v63 = vcombine.high %v126_v50, %v130_v51 }
  0xb9   :  { %2638 = vmatpush1.bf16.msra.mxu1 %v9092_v40  ;;  %2566 = vmatprep.subr.bf16.mxu0 %v8957_v39  ;;  %v274_v40 = vld [vmem:[%s14866_s1 + $0x6f0] sm:$0xff]  ;;  %v9165_v39 = vcombine.high %v278_v29, %v282_v32 }
  0xba   :  { %2639 = vmatprep.subr.bf16.mxu1 %v9085_v44  ;;  %2472 = vmatprep.mubr.bf16.mxu0 %v11861_v5  ;;  %v9164_v44 = vcombine.low %v278_v29, %v282_v32  ;;  %v118_v58 = vld [vmem:[%s14866_s1 + $0x210] sm:$0xff]  ;;  %v95_v32 = vld [vmem:[%s14866_s1 + $0x158] sm:$0xff] }
  0xbb   :  { %2545 = vmatprep.mubr.bf16.mxu1 %v11099_v34  ;;  %v122_v60 = vld [vmem:[%s14866_s1 + $0x230] sm:$0xff] }
  0xbc   :  { %2567 = vmatpush1.bf16.msra.mxu0 %v8956_v46  ;;  %v262_v46 = vld [vmem:[%s14866_s1 + $0x690] sm:$0xff]  ;;  %v9004_v14 = vcombine.low %v118_v58, %v122_v60 }
  0xbd   :  { %2640 = vmatpush1.bf16.msra.mxu1 %v9084_v52  ;;  %2568 = vmatprep.subr.bf16.mxu0 %v8949_v47  ;;  %v266_v52 = vld [vmem:[%s14866_s1 + $0x6b0] sm:$0xff]  ;;  %v9157_v47 = vcombine.high %v270_v38, %v274_v40 }
  0xbe   :  { %2641 = vmatprep.subr.bf16.mxu1 %v9077_v53  ;;  %v9156_v53 = vcombine.low %v270_v38, %v274_v40  ;;  %v246_v0 = vld [vmem:[%s14866_s1 + $0x610] sm:$0xff] }
  0xbf   :  { %2473 = vmatmul.mubr.bf16.gmra.mxu0 %v11883_v6  ;;  %v366_v4 = vld [vmem:[%s14866_s1 + $0x9d0] sm:$0xff] }
  0xc0   :  { %2569 = vmatpush1.bf16.msra.mxu0 %v8948_v62  ;;  %2546 = vmatmul.mubr.bf16.gmra.mxu1 %v11625_v27  ;;  %v298_v27 = vld [vmem:[%s14866_s1 + $0x7b0] sm:$0xff] }
  0xc1   :  { %2642 = vmatpush1.bf16.msra.mxu1 %v9076_v59  ;;  %2570 = vmatprep.subr.bf16.mxu0 %v8941_v55  ;;  %v9181_v18 = vcombine.high %v294_v8, %v298_v27  ;;  %v9180_v24 = vcombine.low %v294_v8, %v298_v27  ;;  %v254_v62 = vld [vmem:[%s14866_s1 + $0x650] sm:$0xff]  ;;  %v9149_v55 = vcombine.high %v262_v46, %v266_v52  ;;  %v111_v27 = vld [vmem:[%s14866_s1 + $0x1d8] sm:$0xff] }
  0xc2   :  { %2643 = vmatprep.subr.bf16.mxu1 %v9069_v61  ;;  %2588 = vmatprep.mubr.bf16.mxu0 %v11902_v12  ;;  %v258_v59 = vld [vmem:[%s14866_s1 + $0x670] sm:$0xff]  ;;  %v9148_v61 = vcombine.low %v262_v46, %v266_v52 }
  0xc3   :  { %2661 = vmatprep.mubr.bf16.mxu1 %v11052_v11  ;;  %v370_v7 = vld [vmem:[%s14866_s1 + $0x9f0] sm:$0xff]  ;;  %v9140_v8 = vcombine.low %v254_v62, %v258_v59  ;;  %v115_v11 = vld [vmem:[%s14866_s1 + $0x1f8] sm:$0xff] }
  0xc4   :  { %2571 = vmatpush1.bf16.msra.mxu0 %v8940_v1  ;;  %v250_v1 = vld [vmem:[%s14866_s1 + $0x630] sm:$0xff]  ;;  %v9253_v28 = vcombine.high %v366_v4, %v370_v7  ;;  %v9252_v21 = vcombine.low %v366_v4, %v370_v7 }
  0xc5   :  { %2644 = vmatpush1.bf16.msra.mxu1 %v9068_v2  ;;  %2572 = vmatprep.subr.bf16.mxu0 %v9061_v3  ;;  %v9141_v2 = vcombine.high %v254_v62, %v258_v59  ;;  %v9012_v3 = vcombine.low %v126_v50, %v130_v51  ;;  %v358_v16 = vld [vmem:[%s14866_s1 + $0x990] sm:$0xff]  ;;  %v79_v51 = vld [vmem:[%s14866_s1 + $0xd8] sm:$0xff] }
  0xc6   :  { %2645 = vmatprep.subr.bf16.mxu1 %v9189_v9  ;;  %v9005_v9 = vcombine.high %v118_v58, %v122_v60  ;;  %v350_v22 = vld [vmem:[%s14866_s1 + $0x950] sm:$0xff]  ;;  %v12065_v62 = vld [vmem:[%s14865_s0 + $0x28] ss:$20 sps:$4 sm:$0xff]  }
  0xc7   :  { %v12023_v33 = vld [vmem:[%s14865_s0] ss:$20 sps:$4 sm:$0xff]   ;;  %v11058_v59 = vld [vmem:[%s14865_s0 + $0x30] ss:$20 sps:$4 sm:$0xff]  }
  0xc8   :  { %2573 = vmatpush2.bf16.msra.mxu0 %v9060_v13  ;;  %v9133_v13 = vcombine.high %v246_v0, %v250_v1  ;;  %v346_v38 = vld [vmem:[%s14866_s1 + $0x930] sm:$0xff] }
  0xc9   :  { %2646 = vmatpush2.bf16.msra.mxu1 %v9188_v17  ;;  %2574 = vmatprep.subr.bf16.mxu0 %v9053_v15  ;;  %v362_v17 = vld [vmem:[%s14866_s1 + $0x9b0] sm:$0xff]  ;;  %v9132_v15 = vcombine.low %v246_v0, %v250_v1  ;;  %v75_v0 = vld [vmem:[%s14866_s1 + $0xb8] sm:$0xff] }
  0xca   :  { %2647 = vmatprep.subr.bf16.mxu1 %v9181_v18  ;;  %v107_v18 = vld [vmem:[%s14866_s1 + $0x1b8] sm:$0xff]  ;;  %v9245_v29 = vcombine.high %v358_v16, %v362_v17  ;;  %v334_v52 = vld [vmem:[%s14866_s1 + $0x8d0] sm:$0xff] }
  0xcb   :  { %v8990_v40 = vcombine.low %v103_v20, %v107_v18  ;;  %v330_v58 = vld [vmem:[%s14866_s1 + $0x8b0] sm:$0xff] }
  0xcc   :  { %2575 = vmatpush2.bf16.msra.mxu0 %v9052_v19  ;;  %v8999_v19 = vcombine.high %v111_v27, %v115_v11  ;;  %v12086_v1 = vld [vmem:[%s14865_s0 + $0x54] ss:$20 sps:$4 sm:$0xff]  }
  0xcd   :  { %2648 = vmatpush2.bf16.msra.mxu1 %v9180_v24  ;;  %2576 = vmatprep.subr.bf16.mxu0 %v9045_v26  ;;  %v354_v24 = vld [vmem:[%s14866_s1 + $0x970] sm:$0xff]  ;;  %v8998_v26 = vcombine.low %v111_v27, %v115_v11  ;;  %v63_v27 = vld [vmem:[%s14866_s1 + $0x58] sm:$0xff] }
  0xce   :  { %2649 = vmatprep.subr.bf16.mxu1 %v9173_v30  ;;  %v99_v30 = vld [vmem:[%s14866_s1 + $0x178] sm:$0xff]  ;;  %v9236_v46 = vcombine.low %v350_v22, %v354_v24  ;;  %v318_v4 = vld [vmem:[%s14866_s1 + $0x850] sm:$0xff] }
  0xcf   :  { %v322_v7 = vld [vmem:[%s14866_s1 + $0x870] sm:$0xff] }
  0xd0   :  { %2577 = vmatpush2.bf16.msra.mxu0 %v9044_v31  ;;  %v8991_v31 = vcombine.high %v103_v20, %v107_v18  ;;  %v55_v20 = vld [vmem:[%s14866_s1 + $0x18] sm:$0xff] }
  0xd1   :  { %2650 = vmatpush2.bf16.msra.mxu1 %v9172_v35  ;;  %2578 = vmatprep.subr.bf16.mxu0 %v9037_v37  ;;  %v9244_v35 = vcombine.low %v358_v16, %v362_v17  ;;  %v342_v37 = vld [vmem:[%s14866_s1 + $0x910] sm:$0xff] }
  0xd2   :  { %2651 = vmatprep.subr.bf16.mxu1 %v9165_v39  ;;  %v9237_v39 = vcombine.high %v350_v22, %v354_v24  ;;  %v9229_v50 = vcombine.high %v342_v37, %v346_v38  ;;  %v310_v16 = vld [vmem:[%s14866_s1 + $0x810] sm:$0xff]  ;;  %v239_v22 = vld [vmem:[%s14866_s1 + $0x5d8] sm:$0xff] }
  0xd3   :  { %v314_v17 = vld [vmem:[%s14866_s1 + $0x830] sm:$0xff]  ;;  %v243_v24 = vld [vmem:[%s14866_s1 + $0x5f8] sm:$0xff] }
  0xd4   :  { %2579 = vmatpush2.bf16.msra.mxu0 %v9036_v41  ;;  %v87_v41 = vld [vmem:[%s14866_s1 + $0x118] sm:$0xff] }
  0xd5   :  { %2652 = vmatpush2.bf16.msra.mxu1 %v9164_v44  ;;  %2580 = vmatprep.subr.bf16.mxu0 %v9029_v56  ;;  %v8983_v44 = vcombine.high %v95_v32, %v99_v30  ;;  %v11056_v56 = vld [vmem:[%s14865_s0 + $0x34] ss:$20 sps:$4 sm:$0xff]   ;;  %v8974_v60 = vcombine.low %v87_v41, %v91_v42  ;;  %v12124_v18 = vld [vmem:[%s14865_s0 + $0x7c] ss:$20 sps:$4 sm:$0xff]  }
  0xd6   :  { %2653 = vmatprep.subr.bf16.mxu1 %v9157_v47  ;;  %v338_v47 = vld [vmem:[%s14866_s1 + $0x8f0] sm:$0xff] }
  0xd8   :  { %2581 = vmatpush2.bf16.msra.mxu0 %v9028_v49  ;;  %v8982_v49 = vcombine.low %v95_v32, %v99_v30  ;;  %v175_v32 = vld [vmem:[%s14866_s1 + $0x3d8] sm:$0xff] }
  0xd9   :  { %2654 = vmatpush2.bf16.msra.mxu1 %v9156_v53  ;;  %2582 = vmatprep.subr.bf16.mxu0 %v9021_v54  ;;  %v83_v53 = vld [vmem:[%s14866_s1 + $0xf8] sm:$0xff]  ;;  %v8975_v54 = vcombine.high %v87_v41, %v91_v42 }
  0xda   :  { %2655 = vmatprep.subr.bf16.mxu1 %v9149_v55  ;;  %v9228_v55 = vcombine.low %v342_v37, %v346_v38  ;;  %v231_v37 = vld [vmem:[%s14866_s1 + $0x598] sm:$0xff] }
  0xdb   :  { %v235_v38 = vld [vmem:[%s14866_s1 + $0x5b8] sm:$0xff] }
  0xdc   :  { %2583 = vmatpush2.bf16.msra.mxu0 %v9020_v57  ;;  %v326_v57 = vld [vmem:[%s14866_s1 + $0x890] sm:$0xff]  ;;  %v167_v41 = vld [vmem:[%s14866_s1 + $0x398] sm:$0xff] }
  0xdd   :  { %2656 = vmatpush2.bf16.msra.mxu1 %v9148_v61  ;;  %2584 = vmatprep.subr.bf16.mxu0 %v9013_v63  ;;  %v9221_v61 = vcombine.high %v334_v52, %v338_v47  ;;  %v71_v63 = vld [vmem:[%s14866_s1 + $0x98] sm:$0xff] }
  0xde   :  { %2657 = vmatprep.subr.bf16.mxu1 %v9141_v2  ;;  %v8967_v2 = vcombine.high %v79_v51, %v83_v53  ;;  %v8959_v11 = vcombine.high %v71_v63, %v75_v0 }
  0xe0   :  { %2585 = vmatpush2.bf16.msra.mxu0 %v9012_v3  ;;  %v9220_v3 = vcombine.low %v334_v52, %v338_v47  ;;  %v227_v52 = vld [vmem:[%s14866_s1 + $0x578] sm:$0xff] }
  0xe1   :  { %2658 = vmatpush2.bf16.msra.mxu1 %v9140_v8  ;;  %2586 = vmatprep.subr.bf16.mxu0 %v9005_v9  ;;  %v8966_v8 = vcombine.low %v79_v51, %v83_v53  ;;  %v9213_v9 = vcombine.high %v326_v57, %v330_v58 }
  0xe2   :  { %2659 = vmatprep.subr.bf16.mxu1 %v9133_v13  ;;  %v12105_v13 = vld [vmem:[%s14865_s0 + $0x50] ss:$20 sps:$4 sm:$0xff]  }
  0xe4   :  { %2587 = vmatpush2.bf16.msra.mxu0 %v9004_v14  ;;  %v9212_v14 = vcombine.low %v326_v57, %v330_v58  ;;  %v9118_v57 = vcombine.low %v231_v37, %v235_v38  ;;  %v219_v58 = vld [vmem:[%s14866_s1 + $0x538] sm:$0xff] }
  0xe5   :  { %2660 = vmatpush2.bf16.msra.mxu1 %v9132_v15  ;;  %2702 = vmatprep.subr.bf16.mxu0 %v9253_v28  ;;  %v8958_v15 = vcombine.low %v71_v63, %v75_v0  ;;  %v9205_v28 = vcombine.high %v318_v4, %v322_v7  ;;  %v151_v0 = vld [vmem:[%s14866_s1 + $0x318] sm:$0xff] }
  0xe6   :  { %2775 = vmatprep.subr.bf16.mxu1 %v8999_v19 }
  0xe7   :  { %2589 = vmatmul.mubr.bf16.vlgmr.msra.gmra.mxu0 %v12023_v33 }
  0xe8   :  { %2662 = vmatmul.mubr.bf16.vlgmr.msra.gmra.mxu1 %v11054_v36  ;;  %2703 = vmatpush1.bf16.msra.mxu0 %v9252_v21  ;;  %v9204_v21 = vcombine.low %v318_v4, %v322_v7  ;;  %v372_v36 = vld [vmem:[%s14867_s2] sm:$0xff] }
  0xe9   :  { %2776 = vmatpush1.bf16.msra.mxu1 %v8998_v26  ;;  %2704 = vmatprep.subr.bf16.mxu0 %v9245_v29  ;;  %v9197_v29 = vcombine.high %v310_v16, %v314_v17 }
  0xea   :  { %2777 = vmatprep.subr.bf16.mxu1 %v8991_v31  ;;  %2598 = vmatprep.mubr.bf16.mxu0 %v12044_v43  ;;  %v12143_v31 = vld [vmem:[%s14865_s0 + $0x78] ss:$20 sps:$4 sm:$0xff]  }
  0xeb   :  { %2671 = vmatprep.mubr.bf16.mxu1 %v11056_v56  ;;  %v9126_v56 = vcombine.low %v239_v22, %v243_v24 }
  0xec   :  { %2705 = vmatpush1.bf16.msra.mxu0 %v9244_v35  ;;  %v9196_v35 = vcombine.low %v310_v16, %v314_v17  ;;  %v207_v16 = vld [vmem:[%s14866_s1 + $0x4d8] sm:$0xff] }
  0xed   :  { %2778 = vmatpush1.bf16.msra.mxu1 %v8990_v40  ;;  %2706 = vmatprep.subr.bf16.mxu0 %v9237_v39  ;;  %v9127_v39 = vcombine.high %v239_v22, %v243_v24  ;;  %v211_v17 = vld [vmem:[%s14866_s1 + $0x4f8] sm:$0xff] }
  0xee   :  { %2779 = vmatprep.subr.bf16.mxu1 %v8983_v44  ;;  %v12166_v44 = vrot.slane %v372_v36, %v376_v25  ;;  %v163_v25 = vld [vmem:[%s14866_s1 + $0x378] sm:$0xff] }
  0xef   :  { %2599 = vmatmul.mubr.bf16.gmra.mxu0 %v12065_v62 }
  0xf0   :  { %2707 = vmatpush1.bf16.msra.mxu0 %v9236_v46  ;;  %2672 = vmatmul.mubr.bf16.gmra.mxu1 %v11058_v59  ;;  %v223_v46 = vld [vmem:[%s14866_s1 + $0x558] sm:$0xff] }
  0xf1   :  { %2780 = vmatpush1.bf16.msra.mxu1 %v8982_v49  ;;  %2708 = vmatprep.subr.bf16.mxu0 %v9229_v50  ;;  %v9119_v49 = vcombine.high %v231_v37, %v235_v38  ;;  %v12182_v50 = vrot.slane %v372_v36, %v380_v23  ;;  %v215_v23 = vld [vmem:[%s14866_s1 + $0x518] sm:$0xff]  ;;  %v9111_v63 = vcombine.high %v223_v46, %v227_v52 }
  0xf2   :  { %2781 = vmatprep.subr.bf16.mxu1 %v8975_v54  ;;  %2608 = vmatprep.mubr.bf16.mxu0 %v12086_v1  ;;  %v12187_v54 = vld [vmem:[%s14865_s0 + $0x10] ss:$20 sps:$4 sm:$0xff]   ;;  %v199_v36 = vld [vmem:[%s14866_s1 + $0x498] sm:$0xff] }
  0xf3   :  { %2681 = vmatprep.mubr.bf16.mxu1 %v11823_v48  ;;  %v67_v48 = vld [vmem:[%s14866_s1 + $0x78] sm:$0xff] }
  0xf4   :  { %2709 = vmatpush1.bf16.msra.mxu0 %v9228_v55  ;;  %v8951_v19 = vcombine.high %v63_v27, %v67_v48  ;;  %v8950_v26 = vcombine.low %v63_v27, %v67_v48 }
  0xf5   :  { %2782 = vmatpush1.bf16.msra.mxu1 %v8974_v60  ;;  %2710 = vmatprep.subr.bf16.mxu0 %v9221_v61 }
  0xf6   :  { %2783 = vmatprep.subr.bf16.mxu1 %v8967_v2  ;;  %v155_v2 = vld [vmem:[%s14866_s1 + $0x338] sm:$0xff] }
  0xf7   :  { %2609 = vmatmul.mubr.bf16.gmra.mxu0 %v12105_v13  ;;  %v9039_v24 = vcombine.high %v151_v0, %v155_v2  ;;  %v9038_v38 = vcombine.low %v151_v0, %v155_v2  ;;  %v12275_v2 = vld [vmem:[%s14865_s0 + $0x60] ss:$20 sps:$4 sm:$0xff]  }
  0xf8   :  { %2711 = vmatpush1.bf16.msra.mxu0 %v9220_v3  ;;  %2682 = vmatmul.mubr.bf16.gmra.mxu1 %v11845_v45  ;;  %v59_v45 = vld [vmem:[%s14866_s1 + $0x38] sm:$0xff] }
  0xf9   :  { %2784 = vmatpush1.bf16.msra.mxu1 %v8966_v8  ;;  %2712 = vmatprep.subr.bf16.mxu0 %v9213_v9  ;;  %v8943_v30 = vcombine.high %v55_v20, %v59_v45  ;;  %v8942_v40 = vcombine.low %v55_v20, %v59_v45  ;;  %v9103_v20 = vcombine.high %v215_v23, %v219_v58  ;;  %v143_v45 = vld [vmem:[%s14866_s1 + $0x2d8] sm:$0xff] }
  0xfa   :  { %2785 = vmatprep.subr.bf16.mxu1 %v8959_v11  ;;  %2618 = vmatprep.mubr.bf16.mxu0 %v12124_v18 }
  0xfb   :  { %2691 = vmatprep.mubr.bf16.mxu1 %v11861_v5  ;;  %v179_v5 = vld [vmem:[%s14866_s1 + $0x3f8] sm:$0xff] }
  0xfc   :  { %2713 = vmatpush1.bf16.msra.mxu0 %v9212_v14  ;;  %v9063_v42 = vcombine.high %v175_v32, %v179_v5  ;;  %v9062_v47 = vcombine.low %v175_v32, %v179_v5  ;;  %v9110_v14 = vcombine.low %v223_v46, %v227_v52 }
  0xfd   :  { %2786 = vmatpush1.bf16.msra.mxu1 %v8958_v15  ;;  %2714 = vmatprep.subr.bf16.mxu0 %v9205_v28 }
  0xfe   :  { %2787 = vmatprep.subr.bf16.mxu1 %v8951_v19  ;;  %v147_v19 = vld [vmem:[%s14866_s1 + $0x2f8] sm:$0xff] }
  0xff   :  { %2619 = vmatmul.mubr.bf16.gmra.mxu0 %v12143_v31  ;;  %v9031_v46 = vcombine.high %v143_v45, %v147_v19 }
 0x100   :  { %2715 = vmatpush1.bf16.msra.mxu0 %v9204_v21  ;;  %2692 = vmatmul.mubr.bf16.gmra.mxu1 %v11883_v6  ;;  %v171_v6 = vld [vmem:[%s14866_s1 + $0x3b8] sm:$0xff] }
 0x101   :  { %2788 = vmatpush1.bf16.msra.mxu1 %v8950_v26  ;;  %2716 = vmatprep.subr.bf16.mxu0 %v9197_v29  ;;  %v9055_v51 = vcombine.high %v167_v41, %v171_v6  ;;  %v9054_v61 = vcombine.low %v167_v41, %v171_v6  ;;  %v12231_v29 = vld [vmem:[%s14865_s0 + $0x38] ss:$20 sps:$4 sm:$0xff]  }
 0x102   :  { %2789 = vmatprep.subr.bf16.mxu1 %v8943_v30  ;;  %2734 = vmatprep.mubr.bf16.mxu0 %v11099_v34  ;;  %v9102_v30 = vcombine.low %v215_v23, %v219_v58  ;;  %v139_v41 = vld [vmem:[%s14866_s1 + $0x2b8] sm:$0xff] }
 0x103   :  { %2807 = vmatprep.mubr.bf16.mxu1 %v11902_v12  ;;  %v159_v12 = vld [vmem:[%s14866_s1 + $0x358] sm:$0xff] }
 0x104   :  { %2717 = vmatpush1.bf16.msra.mxu0 %v9196_v35  ;;  %v9047_v8 = vcombine.high %v159_v12, %v163_v25  ;;  %v9046_v28 = vcombine.low %v159_v12, %v163_v25  ;;  %v203_v35 = vld [vmem:[%s14866_s1 + $0x4b8] sm:$0xff]  ;;  %v9094_v25 = vcombine.low %v207_v16, %v211_v17 }
 0x105   :  { %2790 = vmatpush1.bf16.msra.mxu1 %v8942_v40  ;;  %2848 = vmatprep.subr.bf16.mxu0 %v9127_v39  ;;  %v9095_v40 = vcombine.high %v207_v16, %v211_v17  ;;  %v135_v39 = vld [vmem:[%s14866_s1 + $0x298] sm:$0xff] }
 0x106   :  { %2791 = vmatprep.subr.bf16.mxu1 %v9063_v42  ;;  %v127_v23 = vld [vmem:[%s14866_s1 + $0x258] sm:$0xff] }
 0x107   :  { %v2152_v53 = vpop.f32.mrf.mxu0  ;;  %2735 = vmatmul.mubr.bf16.vlgmr.msra.gmra.mxu0 %v12187_v54  ;;  %v131_v58 = vld [vmem:[%s14866_s1 + $0x278] sm:$0xff] }
 0x108   :  { %v2153_v59 = vadd.f32 %v2152_v53, %v12166_v44  ;;  %v2225_v55 = vpop.f32.mrf.mxu1  ;;  %2849 = vmatpush1.bf16.msra.mxu0 %v9126_v56  ;;  %2744 = vmatprep.mubr.bf16.mxu0 %v11099_v34  ;;  %v195_v53 = vld [vmem:[%s14866_s1 + $0x478] sm:$0xff] }
 0x109   :  { %2792 = vmatpush2.bf16.msra.mxu1 %v9062_v47  ;;  %v2154_v60 = vpop.f32.mrf.mxu0  ;;  %2850 = vmatprep.subr.bf16.mxu0 %v9119_v49  ;;  %v119_v17 = vld [vmem:[%s14866_s1 + $0x218] sm:$0xff] }
 0x10a   :  { %v12204_v3 = vadd.f32 %v2225_v55, %v2153_v59  ;;  %v2155_v4 = vadd.f32 %v2154_v60, %v12182_v50  ;;  %v2227_v7 = vpop.f32.mrf.mxu1  ;;  %2793 = vmatprep.subr.bf16.mxu1 %v9055_v51  ;;  %v191_v51 = vld [vmem:[%s14866_s1 + $0x458] sm:$0xff]  ;;  %v9030_v55 = vcombine.low %v143_v45, %v147_v19 }
 0x10b   :  { %v2156_v9 = vpop.f32.mrf.mxu0  ;;  %v9079_v16 = vcombine.high %v191_v51, %v195_v53 }
 0x10c   :  { %v12207_v27 = vadd.f32 %v2227_v7, %v2155_v4  ;;  %v2157_v48 = vadd.f32 %v2156_v9, %v12166_v44  ;;  %v2229_v11 = vpop.f32.mrf.mxu1  ;;  %2851 = vmatpush1.bf16.msra.mxu0 %v9118_v57  ;;  %v9087_v57 = vcombine.high %v199_v36, %v203_v35  ;;  %v183_v9 = vld [vmem:[%s14866_s1 + $0x418] sm:$0xff] }
 0x10d   :  { %2794 = vmatpush2.bf16.msra.mxu1 %v9054_v61  ;;  %v12216_v15 = vpop.f32.mrf.mxu0  ;;  %2852 = vmatprep.subr.bf16.mxu0 %v9111_v63  ;;  %v9023_v63 = vcombine.high %v135_v39, %v139_v41 }
 0x10e   :  { %v12224_v21 = vadd.f32 %v2229_v11, %v2157_v48  ;;  %v12226_v22 = vpop.f32.mrf.mxu1  ;;  %2795 = vmatprep.subr.bf16.mxu1 %v9047_v8  ;;  %v9086_v8 = vcombine.low %v199_v36, %v203_v35  ;;  %v187_v48 = vld [vmem:[%s14866_s1 + $0x438] sm:$0xff]  ;;  %v9078_v36 = vcombine.low %v191_v51, %v195_v53 }
 0x10f   :  { %v2162_v26 = vpop.f32.mrf.mxu0  ;;  %2745 = vmatmul.mubr.bf16.gmra.mxu0 %v12231_v29  ;;  %v303_v35 = vld [vmem:[%s14866_s1 + $0x7d8] sm:$0xff]  ;;  %v9070_v53 = vcombine.low %v183_v9, %v187_v48 }
 0x110   :  { %v2163_v32 = vadd.f32 %v2162_v26, %v12166_v44  ;;  %2853 = vmatpush1.bf16.msra.mxu0 %v9110_v14  ;;  %v2235_v5 = vpop.f32.mrf.mxu1  ;;  %2754 = vmatprep.mubr.bf16.mxu0 %v11099_v34  ;;  %v9022_v14 = vcombine.low %v135_v39, %v139_v41  ;;  %v9071_v39 = vcombine.high %v183_v9, %v187_v48  ;;  %v367_v41 = vld [vmem:[%s14866_s1 + $0x9d8] sm:$0xff] }
 0x111   :  { %2796 = vmatpush2.bf16.msra.mxu1 %v9046_v28  ;;  %v2164_v37 = vpop.f32.mrf.mxu0  ;;  %2854 = vmatprep.subr.bf16.mxu0 %v9103_v20  ;;  %v123_v28 = vld [vmem:[%s14866_s1 + $0x238] sm:$0xff] }
 0x112   :  { %v2165_v6 = vadd.f32 %v2164_v37, %v12182_v50  ;;  %v12249_v42 = vadd.f32 %v2235_v5, %v2163_v32  ;;  %v2237_v56 = vpop.f32.mrf.mxu1  ;;  %2797 = vmatprep.subr.bf16.mxu1 %v9039_v24  ;;  %v9015_v24 = vcombine.high %v127_v23, %v131_v58  ;;  %v307_v37 = vld [vmem:[%s14866_s1 + $0x7f8] sm:$0xff] }
 0x113   :  { %v2166_v52 = vpop.f32.mrf.mxu0 }
 0x114   :  { %v2167_v47 = vadd.f32 %v2166_v52, %v12166_v44  ;;  %v12252_v49 = vadd.f32 %v2237_v56, %v2165_v6  ;;  %2855 = vmatpush1.bf16.msra.mxu0 %v9102_v30  ;;  %v2239_v12 = vpop.f32.mrf.mxu1  ;;  %v371_v6 = vld [vmem:[%s14866_s1 + $0x9f8] sm:$0xff]  ;;  %v9007_v52 = vcombine.high %v119_v17, %v123_v28 }
 0x115   :  { %2798 = vmatpush2.bf16.msra.mxu1 %v9038_v38  ;;  %v12260_v59 = vpop.f32.mrf.mxu0  ;;  %2856 = vmatprep.subr.bf16.mxu0 %v9095_v40  ;;  %v9014_v40 = vcombine.low %v127_v23, %v131_v58  ;;  %v11067_v23 = vld [vmem:[%s14865_s0 + $0xc] ss:$20 sps:$4 sm:$0xff]  }
 0x116   :  { %v12268_v60 = vadd.f32 %v2239_v12, %v2167_v47  ;;  %v12270_v61 = vpop.f32.mrf.mxu1  ;;  %2799 = vmatprep.subr.bf16.mxu1 %v9031_v46  ;;  %v12319_v12 = vld [vmem:[%s14865_s0 + $0x88] ss:$20 sps:$4 sm:$0xff]  }
 0x117   :  { %v2172_v0 = vpop.f32.mrf.mxu0  ;;  %2755 = vmatmul.mubr.bf16.gmra.mxu0 %v12275_v2 }
 0x118   :  { %v2173_v4 = vadd.f32 %v2172_v0, %v12166_v44  ;;  %2857 = vmatpush1.bf16.msra.mxu0 %v9094_v25  ;;  %v2245_v7 = vpop.f32.mrf.mxu1  ;;  %2764 = vmatprep.mubr.bf16.mxu0 %v11099_v34  ;;  %v9191_v0 = vcombine.high %v303_v35, %v307_v37 }
 0x119   :  { %2800 = vmatpush2.bf16.msra.mxu1 %v9030_v55  ;;  %v2174_v11 = vpop.f32.mrf.mxu0  ;;  %2858 = vmatprep.subr.bf16.mxu0 %v9087_v57  ;;  %v295_v55 = vld [vmem:[%s14866_s1 + $0x798] sm:$0xff] }
 0x11a   :  { %v2175_v20 = vadd.f32 %v2174_v11, %v12182_v50  ;;  %v12293_v45 = vadd.f32 %v2245_v7, %v2173_v4  ;;  %v2247_v19 = vpop.f32.mrf.mxu1  ;;  %2801 = vmatprep.subr.bf16.mxu1 %v9023_v63  ;;  %v299_v57 = vld [vmem:[%s14866_s1 + $0x7b8] sm:$0xff]  ;;  %v9006_v63 = vcombine.low %v119_v17, %v123_v28  ;;  %v9255_v11 = vcombine.high %v367_v41, %v371_v6 }
 0x11b   :  { %v2176_v26 = vpop.f32.mrf.mxu0  ;;  %v359_v4 = vld [vmem:[%s14866_s1 + $0x998] sm:$0xff] }
 0x11c   :  { %v2177_v32 = vadd.f32 %v2176_v26, %v12166_v44  ;;  %v12296_v5 = vadd.f32 %v2247_v19, %v2175_v20  ;;  %2859 = vmatpush1.bf16.msra.mxu0 %v9086_v8  ;;  %v2249_v30 = vpop.f32.mrf.mxu1  ;;  %v363_v7 = vld [vmem:[%s14866_s1 + $0x9b8] sm:$0xff]  ;;  %v9190_v20 = vcombine.low %v303_v35, %v307_v37 }
 0x11d   :  { %2802 = vmatpush2.bf16.msra.mxu1 %v9022_v14  ;;  %v12304_v38 = vpop.f32.mrf.mxu0  ;;  %2860 = vmatprep.subr.bf16.mxu0 %v9079_v16  ;;  %v287_v19 = vld [vmem:[%s14866_s1 + $0x758] sm:$0xff]  ;;  %v9247_v35 = vcombine.high %v359_v4, %v363_v7 }
 0x11e   :  { %v12312_v56 = vadd.f32 %v2249_v30, %v2177_v32  ;;  %v12314_v46 = vpop.f32.mrf.mxu1  ;;  %2803 = vmatprep.subr.bf16.mxu1 %v9015_v24  ;;  %v291_v24 = vld [vmem:[%s14866_s1 + $0x778] sm:$0xff]  ;;  %v9254_v32 = vcombine.low %v367_v41, %v371_v6  ;;  %v9183_v30 = vcombine.high %v295_v55, %v299_v57  ;;  %v9182_v41 = vcombine.low %v295_v55, %v299_v57 }
 0x11f   :  { %v2182_v47 = vpop.f32.mrf.mxu0  ;;  %2765 = vmatmul.mubr.bf16.gmra.mxu0 %v12319_v12  ;;  %v279_v6 = vld [vmem:[%s14866_s1 + $0x718] sm:$0xff] }
 0x120   :  { %v2183_v25 = vadd.f32 %v2182_v47, %v12166_v44  ;;  %2861 = vmatpush1.bf16.msra.mxu0 %v9078_v36  ;;  %v2255_v51 = vpop.f32.mrf.mxu1  ;;  %2880 = vmatprep.mubr.bf16.mxu0 %v11067_v23  ;;  %v347_v55 = vld [vmem:[%s14866_s1 + $0x938] sm:$0xff] }
 0x121   :  { %2804 = vmatpush2.bf16.msra.mxu1 %v9014_v40  ;;  %v2184_v58 = vpop.f32.mrf.mxu0  ;;  %2862 = vmatprep.subr.bf16.mxu0 %v9071_v39  ;;  %v355_v40 = vld [vmem:[%s14866_s1 + $0x978] sm:$0xff] }
 0x122   :  { %v2185_v8 = vadd.f32 %v2184_v58, %v12182_v50  ;;  %v12339_v9 = vadd.f32 %v2255_v51, %v2183_v25  ;;  %v2257_v48 = vpop.f32.mrf.mxu1  ;;  %2805 = vmatprep.subr.bf16.mxu1 %v9007_v52  ;;  %v283_v52 = vld [vmem:[%s14866_s1 + $0x738] sm:$0xff]  ;;  %v9246_v25 = vcombine.low %v359_v4, %v363_v7  ;;  %v9175_v51 = vcombine.high %v287_v19, %v291_v24 }
 0x123   :  { %v2186_v14 = vpop.f32.mrf.mxu0  ;;  %v9174_v58 = vcombine.low %v287_v19, %v291_v24  ;;  %v9167_v4 = vcombine.high %v279_v6, %v283_v52 }
 0x124   :  { %v2187_v16 = vadd.f32 %v2186_v14, %v12166_v44  ;;  %v12342_v17 = vadd.f32 %v2257_v48, %v2185_v8  ;;  %2863 = vmatpush1.bf16.msra.mxu0 %v9070_v53  ;;  %v2259_v28 = vpop.f32.mrf.mxu1  ;;  %v351_v44 = vld [vmem:[%s14866_s1 + $0x958] sm:$0xff]  ;;  %v9166_v14 = vcombine.low %v279_v6, %v283_v52 }
 0x125   :  { %2806 = vmatpush2.bf16.msra.mxu1 %v9006_v63  ;;  %v12350_v26 = vpop.f32.mrf.mxu0  ;;  %2864 = vmatprep.subr.bf16.mxu0 %v9191_v0  ;;  %v9239_v53 = vcombine.high %v351_v44, %v355_v40  ;;  %v271_v63 = vld [vmem:[%s14866_s1 + $0x6d8] sm:$0xff]  ;;  %v9238_v0 = vcombine.low %v351_v44, %v355_v40 }
 0x126   :  { %v12355_v36 = vadd.f32 %v2259_v28, %v2187_v16  ;;  %2921 = vmatprep.subr.bf16.mxu1 %v9255_v11  ;;  %v339_v8 = vld [vmem:[%s14866_s1 + $0x8f8] sm:$0xff] }
 0x127   :  { %v2298_v37 = vpop.f32.mrf.mxu0  ;;  %v263_v16 = vld [vmem:[%s14866_s1 + $0x698] sm:$0xff] }
 0x128   :  { %v2299_v39 = vadd.f32 %v2298_v37, %v12204_v3  ;;  %2808 = vmatmul.mubr.bf16.vlgmr.msra.gmra.mxu1 %v12023_v33  ;;  %2865 = vmatpush2.bf16.msra.mxu0 %v9190_v20  ;;  %v343_v3 = vld [vmem:[%s14866_s1 + $0x918] sm:$0xff] }
 0x129   :  { %2922 = vmatpush1.bf16.msra.mxu1 %v9254_v32  ;;  %v2300_v47 = vpop.f32.mrf.mxu0  ;;  %2866 = vmatprep.subr.bf16.mxu0 %v9183_v30  ;;  %v9231_v7 = vcombine.high %v343_v3, %v347_v55  ;;  %v267_v28 = vld [vmem:[%s14866_s1 + $0x6b8] sm:$0xff]  ;;  %v9230_v19 = vcombine.low %v343_v3, %v347_v55 }
 0x12a   :  { %v2301_v33 = vadd.f32 %v2300_v47, %v12207_v27  ;;  %2923 = vmatprep.subr.bf16.mxu1 %v9247_v35  ;;  %2817 = vmatprep.mubr.bf16.mxu1 %v12044_v43  ;;  %v275_v27 = vld [vmem:[%s14866_s1 + $0x6f8] sm:$0xff]  ;;  %v2994_v32 = vmax.f32 %v2299_v39, 0.0 }
 0x12b   :  { %v2302_v57 = vpop.f32.mrf.mxu0  ;;  %v9159_v24 = vcombine.high %v271_v63, %v275_v27  ;;  %v9158_v40 = vcombine.low %v271_v63, %v275_v27  ;;  %v255_v39 = vld [vmem:[%s14866_s1 + $0x658] sm:$0xff] }
 0x12c   :  { %v2303_v23 = vadd.f32 %v2302_v57, %v12224_v21  ;;  %2867 = vmatpush2.bf16.msra.mxu0 %v9182_v41  ;;  %v335_v21 = vld [vmem:[%s14866_s1 + $0x8d8] sm:$0xff]  ;;  %v2995_v41 = vmax.f32 %v2301_v33, 0.0 }
 0x12d   :  { %2924 = vmatpush1.bf16.msra.mxu1 %v9246_v25  ;;  %v12383_v43 = vpop.f32.mrf.mxu0  ;;  %2868 = vmatprep.subr.bf16.mxu0 %v9175_v51  ;;  %v9223_v35 = vcombine.high %v335_v21, %v339_v8  ;;  %v9222_v25 = vcombine.low %v335_v21, %v339_v8  ;;  %v9151_v51 = vcombine.high %v263_v16, %v267_v28  ;;  %v319_v3 = vld [vmem:[%s14866_s1 + $0x858] sm:$0xff] }
 0x12e   :  { %2925 = vmatprep.subr.bf16.mxu1 %v9239_v53  ;;  %v3002_v33 = vmax.f32 %v2303_v23, 0.0  ;;  %v251_v23 = vld [vmem:[%s14866_s1 + $0x638] sm:$0xff] }
 0x12f   :  { %v2308_v48 = vpop.f32.mrf.mxu0 }
 0x130   :  { %v2309_v11 = vadd.f32 %v2308_v48, %v12249_v42  ;;  %2818 = vmatmul.mubr.bf16.gmra.mxu1 %v12065_v62  ;;  %2869 = vmatpush2.bf16.msra.mxu0 %v9174_v58  ;;  %v327_v42 = vld [vmem:[%s14866_s1 + $0x898] sm:$0xff] }
 0x131   :  { %2926 = vmatpush1.bf16.msra.mxu1 %v9238_v0  ;;  %v2310_v20 = vpop.f32.mrf.mxu0  ;;  %2870 = vmatprep.subr.bf16.mxu0 %v9167_v4  ;;  %v331_v62 = vld [vmem:[%s14866_s1 + $0x8b8] sm:$0xff]  ;;  %v9150_v0 = vcombine.low %v263_v16, %v267_v28 }
 0x132   :  { %v3010_v30 = vmax.f32 %v2309_v11, 0.0  ;;  %v2311_v44 = vadd.f32 %v2310_v20, %v12252_v49  ;;  %2927 = vmatprep.subr.bf16.mxu1 %v9231_v7  ;;  %2827 = vmatprep.mubr.bf16.mxu1 %v12086_v1  ;;  %v259_v49 = vld [vmem:[%s14866_s1 + $0x678] sm:$0xff]  ;;  %v9215_v57 = vcombine.high %v327_v42, %v331_v62  ;;  %v9214_v7 = vcombine.low %v327_v42, %v331_v62 }
 0x133   :  { %v2312_v37 = vpop.f32.mrf.mxu0  ;;  %v247_v4 = vld [vmem:[%s14866_s1 + $0x618] sm:$0xff]  ;;  %v9143_v8 = vcombine.high %v255_v39, %v259_v49  ;;  %v9142_v28 = vcombine.low %v255_v39, %v259_v49 }
 0x134   :  { %v12407_v6 = vmax.f32 %v2994_v32, %v3010_v30  ;;  %v3011_v52 = vmax.f32 %v2311_v44, 0.0  ;;  %v2313_v47 = vadd.f32 %v2312_v37, %v12268_v60  ;;  %2871 = vmatpush2.bf16.msra.mxu0 %v9166_v14  ;;  %v323_v60 = vld [vmem:[%s14866_s1 + $0x878] sm:$0xff]  ;;  %v9134_v62 = vcombine.low %v247_v4, %v251_v23 }
 0x135   :  { %2928 = vmatpush1.bf16.msra.mxu1 %v9230_v19  ;;  %v12416_v1 = vpop.f32.mrf.mxu0  ;;  %2872 = vmatprep.subr.bf16.mxu0 %v9159_v24  ;;  %v9207_v48 = vcombine.high %v319_v3, %v323_v60  ;;  %v315_v11 = vld [vmem:[%s14866_s1 + $0x838] sm:$0xff]  ;;  %v9206_v19 = vcombine.low %v319_v3, %v323_v60  ;;  %v9135_v24 = vcombine.high %v247_v4, %v251_v23  ;;  %v384_v32 = vsub.s32 2, %v11905_v10  ;;  %v12473_v60 = vld [vmem:[%s14867_s2] sm:$0xff] }
 0x136   :  { %v12424_v53 = vmax.f32 %v2995_v41, %v3011_v52  ;;  %v3018_v55 = vmax.f32 %v2313_v47, 0.0  ;;  %2929 = vmatprep.subr.bf16.mxu1 %v9223_v35  ;;  %v12455_v47 = vpop.f32.mrf.mxu1  ;;  %v10536_v4 = vld [vmem:[%s14868_s3 + $0x38] sm:$0xff]  }
 0x137   :  { %v2318_v58 = vpop.f32.mrf.mxu0 }
 0x138   :  { %v12426_v63 = vmax.f32 %v3002_v33, %v3018_v55  ;;  %v2319_v27 = vadd.f32 %v2318_v58, %v12293_v45  ;;  %2828 = vmatmul.mubr.bf16.gmra.mxu1 %v12105_v13  ;;  %2873 = vmatpush2.bf16.msra.mxu0 %v9158_v40  ;;  %v311_v45 = vld [vmem:[%s14866_s1 + $0x818] sm:$0xff]  ;;  %v12476_v33 = vrot.slane %v12473_v60, %v384_v32  ;;  %v388_v32 = vsub.s32 3, %v11905_v10 }
 0x139   :  { %2930 = vmatpush1.bf16.msra.mxu1 %v9222_v25  ;;  %v2320_v21 = vpop.f32.mrf.mxu0  ;;  %2874 = vmatprep.subr.bf16.mxu0 %v9151_v51  ;;  %v9198_v30 = vcombine.low %v311_v45, %v315_v11 }
 0x13a   :  { %v2321_v13 = vadd.f32 %v2320_v21, %v12296_v5  ;;  %2931 = vmatprep.subr.bf16.mxu1 %v9215_v57  ;;  %2837 = vmatprep.mubr.bf16.mxu1 %v12124_v18  ;;  %v9199_v5 = vcombine.high %v311_v45, %v315_v11  ;;  %v3026_v44 = vmax.f32 %v2319_v27, 0.0  ;;  %v10535_v27 = vld [vmem:[%s14868_s3 + $0x78] sm:$0xff]   ;;  %v10538_v45 = vld [vmem:[%s14868_s3 + $0x30] sm:$0xff]   ;;  %v10539_v11 = vld [vmem:[%s14868_s3 + $0x68] sm:$0xff]  }
 0x13b   :  { %v2322_v14 = vpop.f32.mrf.mxu0  ;;  %v11072_v21 = vld [vmem:[%s14865_s0 + $0x5c] ss:$20 sps:$4 sm:$0xff]  }
 0x13c   :  { %v2323_v16 = vadd.f32 %v2322_v14, %v12312_v56  ;;  %2875 = vmatpush2.bf16.msra.mxu0 %v9150_v0  ;;  %v3027_v41 = vmax.f32 %v2321_v13, 0.0  ;;  %v11071_v0 = vld [vmem:[%s14865_s0 + $0x30] ss:$20 sps:$4 sm:$0xff]   ;;  %v11073_v14 = vld [vmem:[%s14865_s0 + $0x58] ss:$20 sps:$4 sm:$0xff]  }
 0x13d   :  { %2932 = vmatpush1.bf16.msra.mxu1 %v9214_v7  ;;  %v12445_v20 = vpop.f32.mrf.mxu0  ;;  %2876 = vmatprep.subr.bf16.mxu0 %v9143_v8  ;;  %v10537_v8 = vld [vmem:[%s14868_s3 + $0x70] sm:$0xff]  }
 0x13e   :  { %2933 = vmatprep.subr.bf16.mxu1 %v9207_v48  ;;  %v3034_v39 = vmax.f32 %v2323_v16, 0.0  ;;  %v10540_v16 = vld [vmem:[%s14868_s3 + $0x28] sm:$0xff]  }
 0x13f   :  { %v2328_v42 = vpop.f32.mrf.mxu0 }
 0x140   :  { %v2329_v18 = vadd.f32 %v2328_v42, %v12339_v9  ;;  %2838 = vmatmul.mubr.bf16.gmra.mxu1 %v12143_v31  ;;  %2877 = vmatpush2.bf16.msra.mxu0 %v9142_v28  ;;  %v10542_v42 = vld [vmem:[%s14868_s3 + $0x20] sm:$0xff]  }
 0x141   :  { %2934 = vmatpush1.bf16.msra.mxu1 %v9206_v19  ;;  %v2330_v56 = vpop.f32.mrf.mxu0  ;;  %2878 = vmatprep.subr.bf16.mxu0 %v9135_v24  ;;  %v11074_v19 = vld [vmem:[%s14865_s0 + $0x84] ss:$20 sps:$4 sm:$0xff]  }
 0x142   :  { %v3042_v35 = vmax.f32 %v2329_v18, 0.0  ;;  %v2331_v37 = vadd.f32 %v2330_v56, %v12342_v17  ;;  %2935 = vmatprep.subr.bf16.mxu1 %v9199_v5  ;;  %2953 = vmatprep.mubr.bf16.mxu1 %v11099_v34  ;;  %v11068_v17 = vld [vmem:[%s14865_s0 + $0x8] ss:$20 sps:$4 sm:$0xff]   ;;  %v10541_v5 = vld [vmem:[%s14868_s3 + $0x60] sm:$0xff]  }
 0x143   :  { %v2332_v40 = vpop.f32.mrf.mxu0  ;;  %v11075_v56 = vld [vmem:[%s14865_s0 + $0x80] ss:$20 sps:$4 sm:$0xff]  }
 0x144   :  { %v12452_v9 = vmax.f32 %v3026_v44, %v3042_v35  ;;  %v3043_v31 = vmax.f32 %v2331_v37, 0.0  ;;  %v2333_v52 = vadd.f32 %v2332_v40, %v12355_v36  ;;  %2879 = vmatpush2.bf16.msra.mxu0 %v9134_v62  ;;  %v11069_v36 = vld [vmem:[%s14865_s0 + $0x34] ss:$20 sps:$4 sm:$0xff]  }
 0x145   :  { %2936 = vmatpush1.bf16.msra.mxu1 %v9198_v30  ;;  %9771 = vmatprep.subr.bf16.mxu0 %v10535_v27  ;;  %v10544_v30 = vld [vmem:[%s14868_s3 + $0x18] sm:$0xff]   ;;  %v10545_v37 = vld [vmem:[%s14868_s3 + $0x50] sm:$0xff]  }
 0x146   :  { %v12457_v49 = vmax.f32 %v3027_v41, %v3043_v31  ;;  %v3050_v25 = vmax.f32 %v2333_v52, 0.0  ;;  %v10546_v40 = vld [vmem:[%s14868_s3 + $0x10] sm:$0xff]   ;;  %v12566_v41 = vrot.slane %v12473_v60, %v388_v32  ;;  %v12568_v52 = vpop.f32.mrf.mxu0  ;;  %v10551_v32 = vld [vmem:[%s14868_s3 + $0x178] sm:$0xff]  }
 0x147   :  { %2881 = vmatmul.mubr.bf16.vlgmr.msra.gmra.mxu0 %v11068_v17  ;;  %v10547_v17 = vld [vmem:[%s14868_s3 + $0x48] sm:$0xff]  }
 0x148   :  { %v12462_v51 = vmax.f32 %v3034_v39, %v3050_v25  ;;  %v12464_v3 = vpop.f32.mrf.mxu1  ;;  %2954 = vmatmul.mubr.bf16.vlgmr.msra.gmra.mxu1 %v12187_v54  ;;  %2890 = vmatprep.mubr.bf16.mxu0 %v11069_v36  ;;  %14878 = vst [vmem:[#allocation8_spill] sm:$0xff] %v12566_v41 }
 0x149   :  { %2963 = vmatprep.mubr.bf16.mxu1 %v11099_v34  ;;  %9772 = vmatpush3.bf16.msra.mxu0 %v10536_v4  ;;  %v2372_v39 = vadd.f32 %v12464_v3, %v12476_v33 }
 0x14a   :  { %v12479_v55 = vpop.f32.mrf.mxu1  ;;  %9773 = vmatprep.subr.bf16.mxu0 %v10537_v8 }
 0x14b   :  { %v2374_v27 = vadd.f32 %v12479_v55, %v12566_v41 }
 0x14c   :  { %v2375_v57 = vpop.f32.mrf.mxu1 }
 0x14d   :  { %v12482_v54 = vadd.f32 %v2375_v57, %v12476_v33  ;;  %9774 = vmatpush3.bf16.msra.mxu0 %v10538_v45  ;;  %v10548_v57 = vld [vmem:[%s14868_s3 + $0x8] sm:$0xff]  }
 0x14e   :  { %v12484_v58 = vpop.f32.mrf.mxu1  ;;  %9775 = vmatprep.subr.bf16.mxu0 %v10539_v11 }
 0x14f   :  { %14875 = vst [vmem:[#allocation5_spill] sm:$0xff] %v12484_v58  ;;  %2891 = vmatmul.mubr.bf16.gmra.mxu0 %v11071_v0 }
 0x150   :  { %v12495_v23 = vpop.f32.mrf.mxu1  ;;  %2964 = vmatmul.mubr.bf16.gmra.mxu1 %v12231_v29  ;;  %2900 = vmatprep.mubr.bf16.mxu0 %v11072_v21 }
 0x151   :  { %2973 = vmatprep.mubr.bf16.mxu1 %v11099_v34  ;;  %9776 = vmatpush3.bf16.msra.mxu0 %v10540_v16 }
 0x152   :  { %v12502_v7 = vpop.f32.mrf.mxu1  ;;  %9777 = vmatprep.subr.bf16.mxu0 %v10541_v5 }
 0x154   :  { %v2385_v29 = vpop.f32.mrf.mxu1 }
 0x155   :  { %v12511_v13 = vadd.f32 %v2385_v29, %v12476_v33  ;;  %9778 = vmatpush3.bf16.msra.mxu0 %v10542_v42  ;;  %v10549_v29 = vld [vmem:[%s14868_s3 + $0x40] sm:$0xff]   ;;  %v2382_v42 = vadd.f32 %v12495_v23, %v12476_v33 }
 0x156   :  { %v12513_v48 = vpop.f32.mrf.mxu1 }
 0x157   :  { %14876 = vst [vmem:[#allocation6_spill] sm:$0xff] %v12513_v48  ;;  %2901 = vmatmul.mubr.bf16.gmra.mxu0 %v11073_v14  ;;  %v10550_v14 = vld [vmem:[%s14868_s3] sm:$0xff]  }
 0x158   :  { %v12524_v28 = vpop.f32.mrf.mxu1  ;;  %2974 = vmatmul.mubr.bf16.gmra.mxu1 %v12275_v2  ;;  %2910 = vmatprep.mubr.bf16.mxu0 %v11074_v19 }
 0x159   :  { %2983 = vmatprep.mubr.bf16.mxu1 %v11099_v34  ;;  %v10543_v34 = vld [vmem:[%s14868_s3 + $0x58] sm:$0xff]  }
 0x15a   :  { %v12531_v24 = vpop.f32.mrf.mxu1  ;;  %9779 = vmatprep.subr.bf16.mxu0 %v10543_v34 }
 0x15b   :  { %9780 = vmatpush3.bf16.msra.mxu0 %v10544_v30  ;;  %v2384_v30 = vadd.f32 %v12502_v7, %v12566_v41 }
 0x15c   :  { %v2395_v2 = vpop.f32.mrf.mxu1  ;;  %9781 = vmatprep.subr.bf16.mxu0 %v10545_v37 }
 0x15d   :  { %v12540_v18 = vadd.f32 %v2395_v2, %v12476_v33 }
 0x15e   :  { %v12542_v62 = vpop.f32.mrf.mxu1 }
 0x15f   :  { %14877 = vst [vmem:[#allocation7_spill] sm:$0xff] %v12542_v62  ;;  %2911 = vmatmul.mubr.bf16.gmra.mxu0 %v11075_v56 }
 0x160   :  { %v12554_v44 = vpop.f32.mrf.mxu1  ;;  %2984 = vmatmul.mubr.bf16.gmra.mxu1 %v12319_v12  ;;  %9782 = vmatpush3.bf16.msra.mxu0 %v10546_v40 }
 0x161   :  { %9783 = vmatprep.subr.bf16.mxu0 %v10547_v17 }
 0x162   :  { %v12557_v35 = vpop.f32.mrf.mxu1 }
 0x164   :  { %v2405_v31 = vpop.f32.mrf.mxu1  ;;  %9784 = vmatpush3.bf16.msra.mxu0 %v10548_v57 }
 0x165   :  { %v12571_v12 = vadd.f32 %v2405_v31, %v12476_v33  ;;  %9785 = vmatprep.subr.bf16.mxu0 %v10549_v29 }
 0x166   :  { %v12575_v25 = vpop.f32.mrf.mxu1 }
 0x167   :  { %14879 = vst [vmem:[#allocation9_spill] sm:$0xff] %v12575_v25  ;;  %v2444_v36 = vpop.f32.mrf.mxu0  ;;  %v2169_v25 = vadd.f32 %v12260_v59, %v12182_v50 }
 0x168   :  { %v2445_v0 = vadd.f32 %v2444_v36, %v2372_v39  ;;  %v2517_v4 = vpop.f32.mrf.mxu1  ;;  %9786 = vmatpush3.bf16.msra.mxu0 %v10550_v14 }
 0x169   :  { %v2446_v21 = vpop.f32.mrf.mxu0  ;;  %9815 = vmatprep.subr.bf16.mxu0 %v10551_v32 }
 0x16a   :  { %v2518_v3 = vadd.f32 %v2517_v4, %v2445_v0  ;;  %v2447_v8 = vadd.f32 %v2446_v21, %v2374_v27  ;;  %v2519_v45 = vpop.f32.mrf.mxu1  ;;  %v2392_v21 = vadd.f32 %v12524_v28, %v12476_v33 }
 0x16b   :  { %v2448_v11 = vpop.f32.mrf.mxu0 }
 0x16c   :  { %v2520_v16 = vadd.f32 %v2519_v45, %v2447_v8  ;;  %v2449_v55 = vadd.f32 %v2448_v11, %v12482_v54  ;;  %v2521_v19 = vpop.f32.mrf.mxu1  ;;  %v2996_v36 = vmax.f32 %v2518_v3, 0.0  ;;  %v2394_v3 = vadd.f32 %v12531_v24, %v12566_v41 }
 0x16d   :  { %v12592_v5 = vpop.f32.mrf.mxu0  ;;  %v2402_v24 = vadd.f32 %v12554_v44, %v12476_v33 }
 0x16e   :  { %14880 = vst [vmem:[#allocation10_spill] sm:$0xff] %v12592_v5  ;;  %v2522_v2 = vadd.f32 %v2521_v19, %v2449_v55  ;;  %v12596_v34 = vpop.f32.mrf.mxu1  ;;  %v2997_v7 = vmax.f32 %v2520_v16, 0.0 }
 0x16f   :  { %14881 = vst [vmem:[#allocation11_spill] sm:$0xff] %v12596_v34  ;;  %v2454_v56 = vpop.f32.mrf.mxu0 }
 0x170   :  { %v2455_v54 = vadd.f32 %v2454_v56, %v2382_v42  ;;  %v2527_v37 = vpop.f32.mrf.mxu1  ;;  %v3004_v19 = vmax.f32 %v2522_v2, 0.0 }
 0x171   :  { %v2456_v40 = vpop.f32.mrf.mxu0 }
 0x172   :  { %v2457_v31 = vadd.f32 %v2456_v40, %v2384_v30  ;;  %v2528_v39 = vadd.f32 %v2527_v37, %v2455_v54  ;;  %v2529_v17 = vpop.f32.mrf.mxu1 }
 0x173   :  { %v2458_v23 = vpop.f32.mrf.mxu0 }
 0x174   :  { %v3012_v57 = vmax.f32 %v2528_v39, 0.0  ;;  %v2459_v27 = vadd.f32 %v2458_v23, %v12511_v13  ;;  %v2530_v0 = vadd.f32 %v2529_v17, %v2457_v31  ;;  %v2531_v4 = vpop.f32.mrf.mxu1 }
 0x175   :  { %v12606_v8 = vpop.f32.mrf.mxu0 }
 0x176   :  { %14882 = vst [vmem:[#allocation12_spill] sm:$0xff] %v12606_v8  ;;  %v12608_v45 = vmax.f32 %v2996_v36, %v3012_v57  ;;  %v3013_v29 = vmax.f32 %v2530_v0, 0.0  ;;  %v2532_v11 = vadd.f32 %v2531_v4, %v2459_v27  ;;  %v12610_v14 = vpop.f32.mrf.mxu1  ;;  %v2404_v27 = vadd.f32 %v12557_v35, %v12566_v41 }
 0x177   :  { %14884 = vst [vmem:[#allocation14_spill] sm:$0xff] %v12610_v14  ;;  %v2464_v55 = vpop.f32.mrf.mxu0 }
 0x178   :  { %14883 = vst [vmem:[#allocation13_spill] sm:$0xff] %v12608_v45  ;;  %v12614_v13 = vmax.f32 %v2997_v7, %v3013_v29  ;;  %v3020_v42 = vmax.f32 %v2532_v11, 0.0  ;;  %v2465_v32 = vadd.f32 %v2464_v55, %v2392_v21  ;;  %v2537_v56 = vpop.f32.mrf.mxu1 }
 0x179   :  { %v2466_v28 = vpop.f32.mrf.mxu0 }
 0x17a   :  { %14885 = vst [vmem:[#allocation15_spill] sm:$0xff] %v12614_v13  ;;  %v12616_v30 = vmax.f32 %v3004_v19, %v3020_v42  ;;  %v2467_v16 = vadd.f32 %v2466_v28, %v2394_v3  ;;  %v2538_v54 = vadd.f32 %v2537_v56, %v2465_v32  ;;  %v2539_v37 = vpop.f32.mrf.mxu1 }
 0x17b   :  { %v2468_v40 = vpop.f32.mrf.mxu0 }
 0x17c   :  { %14886 = vst [vmem:[#allocation16_spill] sm:$0xff] %v12616_v30  ;;  %v2469_v31 = vadd.f32 %v2468_v40, %v12540_v18  ;;  %v2540_v39 = vadd.f32 %v2539_v37, %v2467_v16  ;;  %v2541_v17 = vpop.f32.mrf.mxu1  ;;  %v3028_v3 = vmax.f32 %v2538_v54, 0.0  ;;  %v10569_v54 = vld [vmem:[%s14868_s3 + $0xf8] sm:$0xff]  }
 0x17d   :  { %v12619_v23 = vpop.f32.mrf.mxu0  ;;  %9793 = vmatprep.subr.bf16.mxu1 %v10569_v54 }
 0x17e   :  { %14887 = vst [vmem:[#allocation17_spill] sm:$0xff] %v12619_v23  ;;  %v2542_v2 = vadd.f32 %v2541_v17, %v2469_v31  ;;  %v12623_v36 = vpop.f32.mrf.mxu1  ;;  %v3029_v44 = vmax.f32 %v2540_v39, 0.0  ;;  %v10573_v31 = vld [vmem:[%s14868_s3 + $0xf0] sm:$0xff]   ;;  %v10577_v17 = vld [vmem:[%s14868_s3 + $0xe8] sm:$0xff]  }
 0x17f   :  { %14888 = vst [vmem:[#allocation18_spill] sm:$0xff] %v12623_v36  ;;  %v2474_v57 = vpop.f32.mrf.mxu0  ;;  %v10574_v39 = vld [vmem:[%s14868_s3 + $0xb0] sm:$0xff]  }
 0x180   :  { %v2475_v0 = vadd.f32 %v2474_v57, %v2402_v24  ;;  %v2547_v4 = vpop.f32.mrf.mxu1  ;;  %v3036_v16 = vmax.f32 %v2542_v2, 0.0  ;;  %v10578_v24 = vld [vmem:[%s14868_s3 + $0xa8] sm:$0xff]   ;;  %v10581_v2 = vld [vmem:[%s14868_s3 + $0xe0] sm:$0xff]  }
 0x181   :  { %v2476_v21 = vpop.f32.mrf.mxu0  ;;  %v10582_v57 = vld [vmem:[%s14868_s3 + $0xa0] sm:$0xff]  }
 0x182   :  { %v2477_v7 = vadd.f32 %v2476_v21, %v2404_v27  ;;  %v2548_v29 = vadd.f32 %v2547_v4, %v2475_v0  ;;  %v2549_v18 = vpop.f32.mrf.mxu1  ;;  %v10585_v27 = vld [vmem:[%s14868_s3 + $0xd8] sm:$0xff]   ;;  %v10589_v21 = vld [vmem:[%s14868_s3 + $0xd0] sm:$0xff]  }
 0x183   :  { %v2478_v11 = vpop.f32.mrf.mxu0  ;;  %v10586_v0 = vld [vmem:[%s14868_s3 + $0x98] sm:$0xff]  }
 0x184   :  { %v3044_v55 = vmax.f32 %v2548_v29, 0.0  ;;  %v2479_v19 = vadd.f32 %v2478_v11, %v12571_v12  ;;  %v2550_v42 = vadd.f32 %v2549_v18, %v2477_v7  ;;  %v2551_v33 = vpop.f32.mrf.mxu1  ;;  %v10570_v12 = vld [vmem:[%s14868_s3 + $0xb8] sm:$0xff]   ;;  %v392_v29 = vsub.s32 4, %v11905_v10  ;;  %v10590_v18 = vld [vmem:[%s14868_s3 + $0x90] sm:$0xff]  }
 0x185   :  { %9794 = vmatpush3.bf16.msra.mxu1 %v10570_v12  ;;  %v12664_v4 = vpop.f32.mrf.mxu0 }
 0x186   :  { %v12628_v32 = vmax.f32 %v3028_v3, %v3044_v55  ;;  %v3045_v56 = vmax.f32 %v2550_v42, 0.0  ;;  %v2552_v28 = vadd.f32 %v2551_v33, %v2479_v19  ;;  %9795 = vmatprep.subr.bf16.mxu1 %v10573_v31  ;;  %14892 = vst [vmem:[#allocation22_spill] sm:$0xff] %v12664_v4  ;;  %v12669_v7 = vpop.f32.mrf.mxu1  ;;  %v396_v55 = vsub.s32 5, %v11905_v10  ;;  %v10593_v42 = vld [vmem:[%s14868_s3 + $0xc8] sm:$0xff]   ;;  %v10597_v31 = vld [vmem:[%s14868_s3 + $0xc0] sm:$0xff]  }
 0x187   :  { %14893 = vst [vmem:[#allocation23_spill] sm:$0xff] %v12669_v7  ;;  %v12686_v33 = vrot.slane %v12473_v60, %v392_v29  ;;  %v10601_v29 = vld [vmem:[%s14868_s3 + $0x1f8] sm:$0xff]  }
 0x188   :  { %14889 = vst [vmem:[#allocation19_spill] sm:$0xff] %v12628_v32  ;;  %v12630_v35 = vmax.f32 %v3029_v44, %v3045_v56  ;;  %v3052_v37 = vmax.f32 %v2552_v28, 0.0  ;;  %v10594_v56 = vld [vmem:[%s14868_s3 + $0x88] sm:$0xff]  }
 0x189   :  { %9796 = vmatpush3.bf16.msra.mxu1 %v10574_v39 }
 0x18a   :  { %14890 = vst [vmem:[#allocation20_spill] sm:$0xff] %v12630_v35  ;;  %v12632_v40 = vmax.f32 %v3036_v16, %v3052_v37  ;;  %9797 = vmatprep.subr.bf16.mxu1 %v10577_v17  ;;  %v12694_v16 = vrot.slane %v12473_v60, %v396_v55 }
 0x18c   :  { %14891 = vst [vmem:[#allocation21_spill] sm:$0xff] %v12632_v40 }
 0x18d   :  { %9798 = vmatpush3.bf16.msra.mxu1 %v10578_v24 }
 0x18e   :  { %9799 = vmatprep.subr.bf16.mxu1 %v10581_v2  ;;  %v10598_v2 = vld [vmem:[%s14868_s3 + $0x80] sm:$0xff]  }
 0x191   :  { %9800 = vmatpush3.bf16.msra.mxu1 %v10582_v57 }
 0x192   :  { %9801 = vmatprep.subr.bf16.mxu1 %v10585_v27 }
 0x195   :  { %9802 = vmatpush3.bf16.msra.mxu1 %v10586_v0 }
 0x196   :  { %9803 = vmatprep.subr.bf16.mxu1 %v10589_v21 }
 0x199   :  { %9804 = vmatpush3.bf16.msra.mxu1 %v10590_v18 }
 0x19a   :  { %9805 = vmatprep.subr.bf16.mxu1 %v10593_v42 }
 0x19d   :  { %9806 = vmatpush3.bf16.msra.mxu1 %v10594_v56 }
 0x19e   :  { %9807 = vmatprep.subr.bf16.mxu1 %v10597_v31 }
 0x1a1   :  { %9808 = vmatpush3.bf16.msra.mxu1 %v10598_v2 }
 0x1a2   :  { %9837 = vmatprep.subr.bf16.mxu1 %v10601_v29 }
 0x1a7   :  { %v12675_v11 = vpop.f32.mrf.mxu0 }
 0x1a8   :  { %v12677_v3 = vpop.f32.mrf.mxu1 }
 0x1a9   :  { %v12680_v19 = vpop.f32.mrf.mxu0 }
 0x1aa   :  { %v12688_v44 = vpop.f32.mrf.mxu1 }
 0x1ab   :  { %v2594_v28 = vpop.f32.mrf.mxu0 }
 0x1ac   :  { %v2595_v37 = vadd.f32 %v2594_v28, %v12686_v33  ;;  %v2667_v54 = vpop.f32.mrf.mxu1 }
 0x1ad   :  { %v2596_v12 = vpop.f32.mrf.mxu0 }
 0x1ae   :  { %v2668_v39 = vadd.f32 %v2667_v54, %v2595_v37  ;;  %v2597_v17 = vadd.f32 %v2596_v12, %v12694_v16  ;;  %v2669_v24 = vpop.f32.mrf.mxu1 }
 0x1af   :  { %v2600_v57 = vpop.f32.mrf.mxu0 }
 0x1b0   :  { %v2670_v60 = vadd.f32 %v2669_v24, %v2597_v17  ;;  %v2673_v27 = vpop.f32.mrf.mxu1  ;;  %v2601_v62 = vadd.f32 %v2600_v57, %v12686_v33  ;;  %v2242_v57 = vadd.f32 %v12270_v61, %v2169_v25  ;;  %v2189_v61 = vadd.f32 %v12350_v26, %v12182_v50 }
 0x1b1   :  { %v2602_v0 = vpop.f32.mrf.mxu0 }
 0x1b2   :  { %v2675_v21 = vpop.f32.mrf.mxu1  ;;  %v2674_v14 = vadd.f32 %v2673_v27, %v2601_v62  ;;  %v2315_v48 = vadd.f32 %v12416_v1, %v2242_v57 }
 0x1b3   :  { %v2604_v18 = vpop.f32.mrf.mxu0 }
 0x1b4   :  { %v2605_v55 = vadd.f32 %v2604_v18, %v12686_v33  ;;  %v2677_v42 = vpop.f32.mrf.mxu1 }
 0x1b5   :  { %v2606_v56 = vpop.f32.mrf.mxu0 }
 0x1b6   :  { %v2607_v28 = vadd.f32 %v2606_v56, %v12694_v16  ;;  %v2678_v37 = vadd.f32 %v2677_v42, %v2605_v55  ;;  %v2679_v54 = vpop.f32.mrf.mxu1 }
 0x1b7   :  { %v12709_v12 = vpop.f32.mrf.mxu0 }
 0x1b8   :  { %v12711_v31 = vadd.f32 %v2679_v54, %v2607_v28  ;;  %v12713_v17 = vpop.f32.mrf.mxu1 }
 0x1b9   :  { %v12715_v24 = vpop.f32.mrf.mxu0 }
 0x1ba   :  { %v12717_v2 = vpop.f32.mrf.mxu1 }
 0x1bb   :  { %v2614_v40 = vpop.f32.mrf.mxu0 }
 0x1bc   :  { %v2615_v18 = vadd.f32 %v2614_v40, %v12686_v33  ;;  %v2687_v35 = vpop.f32.mrf.mxu1 }
 0x1bd   :  { %v2616_v29 = vpop.f32.mrf.mxu0 }
 0x1be   :  { %v2617_v32 = vadd.f32 %v2616_v29, %v12694_v16  ;;  %v12721_v56 = vadd.f32 %v2687_v35, %v2615_v18  ;;  %v2689_v55 = vpop.f32.mrf.mxu1 }
 0x1bf   :  { %v12723_v42 = vpop.f32.mrf.mxu0 }
 0x1c0   :  { %v12725_v28 = vadd.f32 %v2689_v55, %v2617_v32  ;;  %v12727_v54 = vpop.f32.mrf.mxu1  ;;  %v2159_v55 = vadd.f32 %v12216_v15, %v12182_v50 }
 0x1c1   :  { %v12729_v13 = vpop.f32.mrf.mxu0 }
 0x1c2   :  { %v12731_v45 = vpop.f32.mrf.mxu1  ;;  %v2232_v34 = vadd.f32 %v12226_v22, %v2159_v55  ;;  %v2179_v22 = vadd.f32 %v12304_v38, %v12182_v50  ;;  %v2262_v38 = vadd.f32 %v12455_v47, %v2189_v61  ;;  %v2611_v50 = vadd.f32 %v12709_v12, %v12686_v33 }
 0x1c3   :  { %v2624_v36 = vpop.f32.mrf.mxu0  ;;  %v2621_v47 = vadd.f32 %v12723_v42, %v12686_v33 }
 0x1c4   :  { %v2625_v40 = vadd.f32 %v2624_v36, %v12686_v33  ;;  %v2697_v30 = vpop.f32.mrf.mxu1  ;;  %v2591_v36 = vadd.f32 %v12675_v11, %v12686_v33  ;;  %v2305_v11 = vadd.f32 %v12383_v43, %v2232_v34  ;;  %v2335_v55 = vadd.f32 %v12568_v52, %v2262_v38 }
 0x1c5   :  { %v2626_v7 = vpop.f32.mrf.mxu0 }
 0x1c6   :  { %v2627_v29 = vadd.f32 %v2626_v7, %v12694_v16  ;;  %v12735_v35 = vadd.f32 %v2697_v30, %v2625_v40  ;;  %v2699_v18 = vpop.f32.mrf.mxu1  ;;  %v2593_v30 = vadd.f32 %v12680_v19, %v12694_v16  ;;  %v2603_v40 = vadd.f32 %v2602_v0, %v12694_v16 }
 0x1c7   :  { %v2736_v23 = vpop.f32.mrf.mxu0  ;;  %v2664_v5 = vadd.f32 %v12677_v3, %v2591_v36  ;;  %v3003_v3 = vmax.f32 %v2305_v11, 0.0  ;;  %v3051_v57 = vmax.f32 %v2335_v55, 0.0 }
 0x1c8   :  { %v12737_v4 = vadd.f32 %v2699_v18, %v2627_v29  ;;  %v2666_v59 = vadd.f32 %v12688_v44, %v2593_v30  ;;  %v2676_v58 = vadd.f32 %v2675_v21, %v2603_v40  ;;  %v2684_v40 = vadd.f32 %v12713_v17, %v2611_v50 }
 0x1c9   :  { %v2738_v32 = vpop.f32.mrf.mxu0  ;;  %v2737_v0 = vadd.f32 %v2736_v23, %v2664_v5 }
 0x1cb   :  { %v2740_v7 = vpop.f32.mrf.mxu0  ;;  %v2998_v43 = vmax.f32 %v2737_v0, 0.0 }
 0x1cc   :  { %v2741_v29 = vadd.f32 %v2740_v7, %v2668_v39  ;;  %v2739_v39 = vadd.f32 %v2738_v32, %v2666_v59  ;;  %v2694_v59 = vadd.f32 %v12727_v54, %v2621_v47 }
 0x1cd   :  { %v2742_v18 = vpop.f32.mrf.mxu0 }
 0x1ce   :  { %v2743_v15 = vadd.f32 %v2742_v18, %v2670_v60  ;;  %v3019_v60 = vmax.f32 %v2315_v48, 0.0  ;;  %v2999_v34 = vmax.f32 %v2739_v39, 0.0  ;;  %v3006_v1 = vmax.f32 %v2741_v29, 0.0 }
 0x1cf   :  { %v2746_v8 = vpop.f32.mrf.mxu0  ;;  %v2623_v29 = vadd.f32 %v12729_v13, %v12694_v16 }
 0x1d0   :  { %v2747_v19 = vadd.f32 %v2746_v8, %v2674_v14  ;;  %v3007_v21 = vmax.f32 %v2743_v15, 0.0  ;;  %v3067_v32 = vmax.f32 %v3003_v3, %v3019_v60 }
 0x1d1   :  { %v2748_v7 = vpop.f32.mrf.mxu0 }
 0x1d2   :  { %v2749_v41 = vadd.f32 %v2748_v7, %v2676_v58  ;;  %v3014_v62 = vmax.f32 %v2747_v19, 0.0  ;;  %v2252_v58 = vadd.f32 %v12314_v46, %v2179_v22  ;;  %v2613_v46 = vadd.f32 %v12715_v24, %v12694_v16 }
 0x1d3   :  { %v2750_v25 = vpop.f32.mrf.mxu0  ;;  %v2696_v16 = vadd.f32 %v12731_v45, %v2623_v29 }
 0x1d4   :  { %v2751_v44 = vadd.f32 %v2750_v25, %v2678_v37  ;;  %v3015_v8 = vmax.f32 %v2749_v41, 0.0  ;;  %v3062_v26 = vmax.f32 %v2998_v43, %v3014_v62  ;;  %v2325_v41 = vadd.f32 %v12445_v20, %v2252_v58 }
 0x1d5   :  { %v2752_v14 = vpop.f32.mrf.mxu0  ;;  %v2686_v17 = vadd.f32 %v12717_v2, %v2613_v46 }
 0x1d6   :  { %v3022_v5 = vmax.f32 %v2751_v44, 0.0  ;;  %v2753_v23 = vadd.f32 %v2752_v14, %v12711_v31  ;;  %v3063_v36 = vmax.f32 %v2999_v34, %v3015_v8  ;;  %v12777_v20 = vmax.f32 %v12407_v6, %v3062_v26 }
 0x1d7   :  { %v2756_v27 = vpop.f32.mrf.mxu0  ;;  %v3035_v15 = vmax.f32 %v2325_v41, 0.0  ;;  %v400_v6 = vsub.s32 6, %v11905_v10 }
 0x1d8   :  { %v3070_v37 = vmax.f32 %v3006_v1, %v3022_v5  ;;  %v3023_v48 = vmax.f32 %v2753_v23, 0.0  ;;  %v12783_v33 = vmax.f32 %v12424_v53, %v3063_v36  ;;  %v3127_v19 = vrot.slane %v12777_v20, 1 }
 0x1d9   :  { %v2758_v30 = vpop.f32.mrf.mxu0  ;;  %v3139_v39 = vrot.slane %v12777_v20, 2  ;;  %v3155_v2 = vrot.slane %v12777_v20, 3  ;;  %v3171_v45 = vrot.slane %v12777_v20, 4  ;;  %v3187_v23 = vrot.slane %v12777_v20, 5 }
 0x1da   :  { %v12771_v12 = vmax.f32 %v12426_v63, %v3070_v37  ;;  %v3071_v31 = vmax.f32 %v3007_v21, %v3023_v48  ;;  %v2757_v63 = vadd.f32 %v2756_v27, %v2684_v40  ;;  %v2759_v53 = vadd.f32 %v2758_v30, %v2686_v17 }
 0x1db   :  { %v2760_v52 = vpop.f32.mrf.mxu0  ;;  %v3142_v22 = vrot.slane %v12783_v33, 2  ;;  %v3174_v25 = vrot.slane %v12783_v33, 4  ;;  %v3190_v5 = vrot.slane %v12783_v33, 5  ;;  %v3083_v27 = vmax.f32 %v3035_v15, %v3051_v57 }
 0x1dc   :  { %v12779_v18 = vmax.f32 %v3067_v32, %v3071_v31  ;;  %v2761_v24 = vadd.f32 %v2760_v52, %v12721_v56  ;;  %v404_v56 = vsub.s32 7, %v11905_v10  ;;  %v3030_v7 = vmax.f32 %v2757_v63, 0.0  ;;  %v11076_v31 = vld [vmem:[%s14867_s2] sm:$0xff] }
 0x1dd   :  { %v2762_v42 = vpop.f32.mrf.mxu0  ;;  %v3158_v10 = vrot.slane %v12783_v33, 3  ;;  %v3031_v44 = vmax.f32 %v2759_v53, 0.0  ;;  %v12830_v40 = vrot.slane %v11076_v31, %v400_v6  ;;  %v3203_v63 = vrot.slane %v12777_v20, 6 }
 0x1de   :  { %v2763_v13 = vadd.f32 %v2762_v42, %v12725_v28  ;;  %v3129_v28 = vrot.slane %v12783_v33, 1  ;;  %v3038_v8 = vmax.f32 %v2761_v24, 0.0  ;;  %v12832_v29 = vrot.slane %v11076_v31, %v404_v56  ;;  %v10553_v56 = vld [vmem:[%s14868_s3 + $0x170] sm:$0xff]  }
 0x1df   :  { %v2766_v11 = vpop.f32.mrf.mxu0 }
 0x1e0   :  { %v2767_v0 = vadd.f32 %v2766_v11, %v2694_v59  ;;  %v3039_v14 = vmax.f32 %v2763_v13, 0.0  ;;  %v10552_v59 = vld [vmem:[%s14868_s3 + $0x138] sm:$0xff]  }
 0x1e1   :  { %v2768_v54 = vpop.f32.mrf.mxu0 }
 0x1e2   :  { %v3046_v61 = vmax.f32 %v2767_v0, 0.0  ;;  %v2769_v62 = vadd.f32 %v2768_v54, %v2696_v16  ;;  %v10554_v54 = vld [vmem:[%s14868_s3 + $0x130] sm:$0xff]  }
 0x1e3   :  { %v2770_v3 = vpop.f32.mrf.mxu0 }
 0x1e4   :  { %v3078_v60 = vmax.f32 %v3030_v7, %v3046_v61  ;;  %v3047_v43 = vmax.f32 %v2769_v62, 0.0  ;;  %v2771_v34 = vadd.f32 %v2770_v3, %v12735_v35 }
 0x1e5   :  { %v2772_v1 = vpop.f32.mrf.mxu0 }
 0x1e6   :  { %v12803_v58 = vmax.f32 %v12452_v9, %v3078_v60  ;;  %v3079_v38 = vmax.f32 %v3031_v44, %v3047_v43  ;;  %v3054_v50 = vmax.f32 %v2771_v34, 0.0  ;;  %v2773_v26 = vadd.f32 %v2772_v1, %v12737_v4 }
 0x1e7   :  { %v3206_v4 = vrot.slane %v12783_v33, 6  ;;  %v3222_v44 = vrot.slane %v12783_v33, 7  ;;  %v3219_v1 = vrot.slane %v12777_v20, 7 }
 0x1e8   :  { %v12807_v21 = vmax.f32 %v12457_v49, %v3079_v38  ;;  %v3086_v37 = vmax.f32 %v3038_v8, %v3054_v50  ;;  %v3055_v35 = vmax.f32 %v2773_v26, 0.0  ;;  %v12809_v48 = vpop.f32.mrf.mxu1  ;;  %v3114_v32 = vrot.slane %v12803_v58, 7 }
 0x1e9   :  { %v12814_v41 = vsel %vm3115_vm0, %v12803_v58, %v3127_v19  ;;  %v3140_v9 = vrot.slane %v12803_v58, 1  ;;  %v3156_v55 = vrot.slane %v12803_v58, 2  ;;  %v3172_v62 = vrot.slane %v12803_v58, 3 }
 0x1ea   :  { %v12820_v36 = vmax.f32 %v12462_v51, %v3086_v37  ;;  %v3087_v49 = vmax.f32 %v3039_v14, %v3055_v35  ;;  %v12822_v30 = vpop.f32.mrf.mxu1  ;;  %v3117_v46 = vrot.slane %v12807_v21, 7  ;;  %v3116_v47 = vsel %vm3115_vm0, %v3114_v32, %v12777_v20  ;;  %v10556_v20 = vld [vmem:[%s14868_s3 + $0x128] sm:$0xff]   ;;  %v10557_v32 = vld [vmem:[%s14868_s3 + $0x160] sm:$0xff]  }
 0x1eb   :  { %v3130_v51 = vsel %vm3115_vm0, %v12807_v21, %v3129_v28  ;;  %v3143_v57 = vrot.slane %v12807_v21, 1  ;;  %v12849_v13 = vsel %vm3115_vm0, %v3140_v9, %v3139_v39  ;;  %v3159_v6 = vrot.slane %v12807_v21, 2 }
 0x1ec   :  { %v12836_v52 = vmax.f32 %v3083_v27, %v3087_v49  ;;  %v2813_v24 = vpop.f32.mrf.mxu1  ;;  %v3118_v15 = vsel %vm3115_vm0, %v3117_v46, %v12783_v33  ;;  %v3363_v11 = vpack.c.bf16 %v3116_v47, %v3116_v47  ;;  %v12859_v53 = vsel %vm3115_vm0, %v3156_v55, %v3155_v2  ;;  %v10555_v2 = vld [vmem:[%s14868_s3 + $0x168] sm:$0xff]  }
 0x1ed   :  { %v12843_v42 = vadd.f32 %v2813_v24, %v12830_v40  ;;  %v3364_v17 = vpack.c.bf16 %v3118_v15, %v3118_v15  ;;  %v12856_v19 = vsel %vm3115_vm0, %v3143_v57, %v3142_v22  ;;  %v3175_v0 = vrot.slane %v12807_v21, 3  ;;  %v10558_v24 = vld [vmem:[%s14868_s3 + $0x120] sm:$0xff]  }
 0x1ee   :  { %v2815_v16 = vpop.f32.mrf.mxu1  ;;  %v3368_v39 = vpack.c.bf16 %v3130_v51, %v3130_v51  ;;  %v12869_v28 = vsel %vm3115_vm0, %v3159_v6, %v3158_v10  ;;  %v3191_v3 = vrot.slane %v12807_v21, 4  ;;  %v3188_v10 = vrot.slane %v12803_v58, 4 }
 0x1ef   :  { %v12863_v7 = vadd.f32 %v2815_v16, %v12832_v29  ;;  %7562 = vmatprep.mubr.bf16.mxu0 %v3364_v17  ;;  %v12877_v22 = vsel %vm3115_vm0, %v3175_v0, %v3174_v25  ;;  %v3207_v60 = vrot.slane %v12807_v21, 5  ;;  %v12889_v25 = vsel %vm3115_vm0, %v3172_v62, %v3171_v45  ;;  %v10559_v0 = vld [vmem:[%s14868_s3 + $0x158] sm:$0xff]  }
 0x1f0   :  { %v12871_v61 = vpop.f32.mrf.mxu1  ;;  %7563 = vmatmul.mubr.bf16.vlgmr.msra.gmra.mxu0 %v3363_v11  ;;  %v12892_v34 = vsel %vm3115_vm0, %v3191_v3, %v3190_v5  ;;  %v3204_v8 = vrot.slane %v12803_v58, 5  ;;  %v3223_v33 = vrot.slane %v12807_v21, 6  ;;  %v12899_v14 = vsel %vm3115_vm0, %v3188_v10, %v3187_v23 }
 0x1f1   :  { %9816 = vmatpush3.bf16.msra.mxu0 %v10552_v59  ;;  %7642 = vmatprep.mubr.bf16.mxu0 %v3368_v39  ;;  %v12903_v50 = vsel %vm3115_vm0, %v3207_v60, %v3206_v4  ;;  %v3257_v26 = vrot.slane %v12779_v18, 1  ;;  %v3255_v23 = vrot.slane %v12771_v12, 1  ;;  %v3270_v21 = vrot.slane %v12779_v18, 2 }
 0x1f2   :  { %v12884_v43 = vpop.f32.mrf.mxu1  ;;  %9817 = vmatprep.subr.bf16.mxu0 %v10553_v56  ;;  %v12906_v45 = vsel %vm3115_vm0, %v3204_v8, %v3203_v63  ;;  %v12909_v5 = vsel %vm3115_vm0, %v3223_v33, %v3222_v44  ;;  %v3267_v37 = vrot.slane %v12771_v12, 2  ;;  %v3220_v9 = vrot.slane %v12803_v58, 6 }
 0x1f3   :  { %v3245_v55 = vrot.slane %v12836_v52, 7  ;;  %v3243_v4 = vrot.slane %v12820_v36, 7  ;;  %v12929_v49 = vsel %vm3115_vm0, %v12836_v52, %v3257_v26  ;;  %v12936_v47 = vsel %vm3115_vm0, %v12820_v36, %v3255_v23  ;;  %v10560_v26 = vld [vmem:[%s14868_s3 + $0x118] sm:$0xff]  }
 0x1f4   :  { %v2823_v38 = vpop.f32.mrf.mxu1  ;;  %v3271_v31 = vrot.slane %v12836_v52, 1  ;;  %v3286_v51 = vrot.slane %v12779_v18, 3  ;;  %v12946_v15 = vsel %vm3115_vm0, %v3220_v9, %v3219_v1  ;;  %v3283_v17 = vrot.slane %v12771_v12, 3 }
 0x1f5   :  { %v12913_v27 = vadd.f32 %v2823_v38, %v12830_v40  ;;  %9818 = vmatpush3.bf16.msra.mxu0 %v10554_v54  ;;  %v12950_v57 = vsel %vm3115_vm0, %v3245_v55, %v12779_v18  ;;  %v12954_v63 = vsel %vm3115_vm0, %v3243_v4, %v12771_v12  ;;  %v3302_v59 = vrot.slane %v12779_v18, 4 }
 0x1f6   :  { %v2825_v35 = vpop.f32.mrf.mxu1  ;;  %9819 = vmatprep.subr.bf16.mxu0 %v10555_v2  ;;  %v3299_v6 = vrot.slane %v12771_v12, 4  ;;  %v3318_v16 = vrot.slane %v12779_v18, 5  ;;  %v3315_v11 = vrot.slane %v12771_v12, 5  ;;  %v12967_v39 = vsel %vm3115_vm0, %v3271_v31, %v3270_v21 }
 0x1f7   :  { %v12932_v46 = vadd.f32 %v2825_v35, %v12832_v29  ;;  %v3268_v54 = vrot.slane %v12820_v36, 1  ;;  %v3287_v2 = vrot.slane %v12836_v52, 2  ;;  %v3284_v62 = vrot.slane %v12820_v36, 2  ;;  %v10561_v35 = vld [vmem:[%s14868_s3 + $0x150] sm:$0xff]  }
 0x1f8   :  { %v12940_v58 = vpop.f32.mrf.mxu1  ;;  %v3303_v3 = vrot.slane %v12836_v52, 3  ;;  %v3300_v44 = vrot.slane %v12820_v36, 3  ;;  %v3319_v1 = vrot.slane %v12836_v52, 4  ;;  %v3331_v23 = vrot.slane %v12771_v12, 6 }
 0x1f9   :  { %9820 = vmatpush3.bf16.msra.mxu0 %v10556_v20  ;;  %v12975_v60 = vsel %vm3115_vm0, %v3268_v54, %v3267_v37  ;;  %v12978_v8 = vsel %vm3115_vm0, %v3287_v2, %v3286_v51  ;;  %v12981_v33 = vsel %vm3115_vm0, %v3284_v62, %v3283_v17  ;;  %v3334_v20 = vrot.slane %v12779_v18, 6 }
 0x1fa   :  { %v12961_v56 = vpop.f32.mrf.mxu1  ;;  %9821 = vmatprep.subr.bf16.mxu0 %v10557_v32  ;;  %14894 = vst [vmem:[#allocation24_spill] sm:$0xff] %v12981_v33  ;;  %v3350_v21 = vrot.slane %v12779_v18, 7  ;;  %v12997_v32 = vsel %vm3115_vm0, %v3303_v3, %v3302_v59  ;;  %v13000_v9 = vsel %vm3115_vm0, %v3300_v44, %v3299_v6  ;;  %v13003_v55 = vsel %vm3115_vm0, %v3319_v1, %v3318_v16  ;;  %v10562_v6 = vld [vmem:[%s14868_s3 + $0x110] sm:$0xff]   ;;  %v10563_v16 = vld [vmem:[%s14868_s3 + $0x148] sm:$0xff]  }
 0x1fb   :  { %14895 = vst [vmem:[#allocation25_spill] sm:$0xff] %v12997_v32  ;;  %14896 = vst [vmem:[#allocation26_spill] sm:$0xff] %v13000_v9  ;;  %v3316_v4 = vrot.slane %v12820_v36, 4  ;;  %v3332_v17 = vrot.slane %v12820_v36, 5  ;;  %v3351_v59 = vrot.slane %v12836_v52, 6 }
 0x1fc   :  { %v2833_v10 = vpop.f32.mrf.mxu1  ;;  %14897 = vst [vmem:[#allocation27_spill] sm:$0xff] %v13003_v55 }
 0x1fd   :  { %v12985_v38 = vadd.f32 %v2833_v10, %v12830_v40  ;;  %9822 = vmatpush3.bf16.msra.mxu0 %v10558_v24  ;;  %v13012_v51 = vsel %vm3115_vm0, %v3316_v4, %v3315_v11  ;;  %v3335_v24 = vrot.slane %v12836_v52, 5  ;;  %v3348_v11 = vrot.slane %v12820_v36, 6  ;;  %v10564_v36 = vld [vmem:[%s14868_s3 + $0x108] sm:$0xff]   ;;  %v10565_v10 = vld [vmem:[%s14868_s3 + $0x140] sm:$0xff]  }
 0x1fe   :  { %v2835_v37 = vpop.f32.mrf.mxu1  ;;  %9823 = vmatprep.subr.bf16.mxu0 %v10559_v0  ;;  %14898 = vst [vmem:[#allocation28_spill] sm:$0xff] %v13012_v51  ;;  %v3347_v0 = vrot.slane %v12771_v12, 7  ;;  %v13031_v52 = vsel %vm3115_vm0, %v3332_v17, %v3331_v23  ;;  %v13034_v62 = vsel %vm3115_vm0, %v3351_v59, %v3350_v21  ;;  %v14904_v17 = vld [vmem:[#allocation6_spill] sm:$0xff] }
 0x1ff   :  { %v13007_v31 = vadd.f32 %v2835_v37, %v12832_v29  ;;  %v13028_v2 = vsel %vm3115_vm0, %v3335_v24, %v3334_v20  ;;  %14900 = vst [vmem:[#allocation30_spill] sm:$0xff] %v13031_v52  ;;  %14901 = vst [vmem:[#allocation31_spill] sm:$0xff] %v13034_v62  ;;  %v10566_v37 = vld [vmem:[%s14868_s3 + $0x100] sm:$0xff]   ;;  %v10568_v62 = vld [vmem:[%s14868_s3 + $0x238] sm:$0xff]  }
 0x200   :  { %v13009_v18 = vpop.f32.mrf.mxu1  ;;  %14899 = vst [vmem:[#allocation29_spill] sm:$0xff] %v13028_v2  ;;  %v13037_v44 = vsel %vm3115_vm0, %v3348_v11, %v3347_v0  ;;  %v14903_v24 = vld [vmem:[#allocation8_spill] sm:$0xff]  ;;  %v14907_v52 = vld [vmem:[#allocation10_spill] sm:$0xff] }
 0x201   :  { %9824 = vmatpush3.bf16.msra.mxu0 %v10560_v26  ;;  %14902 = vst [vmem:[#allocation32_spill] sm:$0xff] %v13037_v44  ;;  %v2388_v59 = vadd.f32 %v14904_v17, %v14903_v24 }
 0x202   :  { %v13025_v54 = vpop.f32.mrf.mxu1  ;;  %9825 = vmatprep.subr.bf16.mxu0 %v10561_v35  ;;  %v10567_v35 = vld [vmem:[%s14868_s3 + $0x278] sm:$0xff]  }
 0x204   :  { %v2843_v3 = vpop.f32.mrf.mxu1 }
 0x205   :  { %v13040_v12 = vadd.f32 %v2843_v3, %v12830_v40  ;;  %9826 = vmatpush3.bf16.msra.mxu0 %v10562_v6 }
 0x206   :  { %v2845_v1 = vpop.f32.mrf.mxu1  ;;  %9827 = vmatprep.subr.bf16.mxu0 %v10563_v16  ;;  %v14905_v16 = vld [vmem:[#allocation5_spill] sm:$0xff] }
 0x207   :  { %v13049_v26 = vadd.f32 %v2845_v1, %v12832_v29  ;;  %v2882_v20 = vpop.f32.mrf.mxu0  ;;  %v2378_v0 = vadd.f32 %v14905_v16, %v14903_v24  ;;  %v3367_v16 = vpack.c.bf16 %v12814_v41, %v12814_v41  ;;  %v10572_v41 = vld [vmem:[%s14868_s3 + $0x230] sm:$0xff]  }
 0x208   :  { %v2955_v23 = vpop.f32.mrf.mxu1 }
 0x209   :  { %9828 = vmatpush3.bf16.msra.mxu0 %v10564_v36  ;;  %v2884_v21 = vpop.f32.mrf.mxu0  ;;  %v14906_v36 = vld [vmem:[#allocation12_spill] sm:$0xff] }
 0x20a   :  { %v13057_v4 = vpop.f32.mrf.mxu1  ;;  %9829 = vmatprep.subr.bf16.mxu0 %v10565_v10  ;;  %v2461_v1 = vadd.f32 %v14906_v36, %v2388_v59  ;;  %v2451_v10 = vadd.f32 %v14907_v52, %v2378_v0 }
 0x20b   :  { %v2886_v6 = vpop.f32.mrf.mxu0 }
 0x20c   :  { %v2887_v11 = vadd.f32 %v2886_v6, %v12843_v42  ;;  %v2959_v3 = vpop.f32.mrf.mxu1  ;;  %v10571_v42 = vld [vmem:[%s14868_s3 + $0x270] sm:$0xff]   ;;  %v3372_v6 = vpack.c.bf16 %v12856_v19, %v12856_v19 }
 0x20d   :  { %9830 = vmatpush3.bf16.msra.mxu0 %v10566_v37  ;;  %v2888_v44 = vpop.f32.mrf.mxu0  ;;  %v2820_v37 = vadd.f32 %v12871_v61, %v12830_v40 }
 0x20e   :  { %v2960_v2 = vadd.f32 %v2959_v3, %v2887_v11  ;;  %v2889_v17 = vadd.f32 %v2888_v44, %v12863_v7  ;;  %v2961_v51 = vpop.f32.mrf.mxu1  ;;  %9859 = vmatprep.subr.bf16.mxu0 %v10567_v35  ;;  %v14908_v7 = vld [vmem:[#allocation14_spill] sm:$0xff]  ;;  %v2810_v35 = vadd.f32 %v12809_v48, %v12830_v40  ;;  %v14909_v3 = vld [vmem:[#allocation11_spill] sm:$0xff] }
 0x20f   :  { %v2892_v59 = vpop.f32.mrf.mxu0  ;;  %v2534_v44 = vadd.f32 %v14908_v7, %v2461_v1  ;;  %v2524_v36 = vadd.f32 %v14909_v3, %v2451_v10  ;;  %v14910_v7 = vld [vmem:[#allocation9_spill] sm:$0xff]  ;;  %v2812_v10 = vadd.f32 %v12822_v30, %v12832_v29  ;;  %v14911_v30 = vld [vmem:[#allocation7_spill] sm:$0xff] }
 0x210   :  { %v13079_v52 = vadd.f32 %v2961_v51, %v2889_v17  ;;  %v2965_v0 = vpop.f32.mrf.mxu1  ;;  %7643 = vmatmul.mubr.bf16.vlgmr.msra.gmra.mxu0 %v3367_v16  ;;  %v2893_v11 = vadd.f32 %v2892_v59, %v2820_v37  ;;  %v10575_v51 = vld [vmem:[%s14868_s3 + $0x268] sm:$0xff]   ;;  %v2822_v17 = vadd.f32 %v12884_v43, %v12832_v29  ;;  %v2883_v16 = vadd.f32 %v2882_v20, %v2810_v35 }
 0x211   :  { %9860 = vmatpush3.bf16.msra.mxu0 %v10568_v62  ;;  %7722 = vmatprep.mubr.bf16.mxu0 %v3372_v6  ;;  %v2894_v61 = vpop.f32.mrf.mxu0  ;;  %v2408_v48 = vadd.f32 %v14910_v7, %v14903_v24  ;;  %v3021_v59 = vmax.f32 %v2534_v44, 0.0  ;;  %v10576_v43 = vld [vmem:[%s14868_s3 + $0x228] sm:$0xff]   ;;  %v3005_v20 = vmax.f32 %v2524_v36, 0.0 }
 0x212   :  { %v2967_v19 = vpop.f32.mrf.mxu1  ;;  %9861 = vmatprep.subr.bf16.mxu0 %v10571_v42  ;;  %v2966_v42 = vadd.f32 %v2965_v0, %v2893_v11  ;;  %v2895_v6 = vadd.f32 %v2894_v61, %v2822_v17  ;;  %v2398_v0 = vadd.f32 %v14911_v30, %v14903_v24  ;;  %v14912_v44 = vld [vmem:[#allocation22_spill] sm:$0xff]  ;;  %v2956_v11 = vadd.f32 %v2955_v23, %v2883_v16  ;;  %v10580_v24 = vld [vmem:[%s14868_s3 + $0x220] sm:$0xff]   ;;  %v10583_v23 = vld [vmem:[%s14868_s3 + $0x258] sm:$0xff]  }
 0x213   :  { %v2896_v1 = vpop.f32.mrf.mxu0  ;;  %v2885_v61 = vadd.f32 %v2884_v21, %v2812_v10  ;;  %v2832_v10 = vadd.f32 %v12961_v56, %v12832_v29  ;;  %v14916_v30 = vld [vmem:[#allocation18_spill] sm:$0xff]  ;;  %v10584_v56 = vld [vmem:[%s14868_s3 + $0x218] sm:$0xff]  }
 0x214   :  { %v2897_v62 = vadd.f32 %v2896_v1, %v12913_v27  ;;  %v2969_v37 = vpop.f32.mrf.mxu1  ;;  %v10579_v27 = vld [vmem:[%s14868_s3 + $0x260] sm:$0xff]   ;;  %v3008_v1 = vmax.f32 %v2960_v2, 0.0  ;;  %v2968_v32 = vadd.f32 %v2967_v19, %v2895_v6  ;;  %v2830_v2 = vadd.f32 %v12940_v58, %v12830_v40  ;;  %v14914_v19 = vld [vmem:[#allocation23_spill] sm:$0xff] }
 0x215   :  { %9862 = vmatpush3.bf16.msra.mxu0 %v10572_v41  ;;  %v2898_v3 = vpop.f32.mrf.mxu0  ;;  %v2481_v41 = vadd.f32 %v14912_v44, %v2408_v48  ;;  %v2958_v6 = vadd.f32 %v13057_v4, %v2885_v61  ;;  %v2840_v4 = vadd.f32 %v13009_v18, %v12830_v40 }
 0x216   :  { %v2970_v35 = vadd.f32 %v2969_v37, %v2897_v62  ;;  %v2899_v55 = vadd.f32 %v2898_v3, %v12932_v46  ;;  %v2971_v7 = vpop.f32.mrf.mxu1  ;;  %9863 = vmatprep.subr.bf16.mxu0 %v10575_v51  ;;  %v3069_v37 = vmax.f32 %v3005_v20, %v3021_v59  ;;  %v14913_v46 = vld [vmem:[#allocation17_spill] sm:$0xff]  ;;  %v3016_v51 = vmax.f32 %v2966_v42, 0.0  ;;  %v14915_v20 = vld [vmem:[#allocation16_spill] sm:$0xff] }
 0x217   :  { %v2902_v17 = vpop.f32.mrf.mxu0  ;;  %v2471_v3 = vadd.f32 %v14913_v46, %v2398_v0  ;;  %v2554_v59 = vadd.f32 %v14914_v19, %v2481_v41  ;;  %v3000_v42 = vmax.f32 %v2956_v11, 0.0  ;;  %v3017_v44 = vmax.f32 %v2968_v32, 0.0 }
 0x218   :  { %v3024_v9 = vmax.f32 %v2970_v35, 0.0  ;;  %v2972_v36 = vadd.f32 %v2971_v7, %v2899_v55  ;;  %v2975_v62 = vpop.f32.mrf.mxu1  ;;  %v3009_v55 = vmax.f32 %v13079_v52, 0.0  ;;  %v2903_v58 = vadd.f32 %v2902_v17, %v2830_v2  ;;  %v14917_v2 = vld [vmem:[#allocation13_spill] sm:$0xff] }
 0x219   :  { %9864 = vmatpush3.bf16.msra.mxu0 %v10576_v43  ;;  %v2904_v33 = vpop.f32.mrf.mxu0  ;;  %v2544_v0 = vadd.f32 %v14916_v30, %v2471_v3  ;;  %v3053_v32 = vmax.f32 %v2554_v59, 0.0  ;;  %v2842_v3 = vadd.f32 %v13025_v54, %v12832_v29  ;;  %v10591_v29 = vld [vmem:[%s14868_s3 + $0x248] sm:$0xff]  }
 0x21a   :  { %v3072_v21 = vmax.f32 %v3008_v1, %v3024_v9  ;;  %v3025_v16 = vmax.f32 %v2972_v36, 0.0  ;;  %v2977_v48 = vpop.f32.mrf.mxu1  ;;  %9865 = vmatprep.subr.bf16.mxu0 %v10579_v27  ;;  %v3064_v27 = vmax.f32 %v3000_v42, %v3016_v51  ;;  %v2905_v41 = vadd.f32 %v2904_v33, %v2832_v10  ;;  %v10587_v33 = vld [vmem:[%s14868_s3 + $0x250] sm:$0xff]   ;;  %v10592_v30 = vld [vmem:[%s14868_s3 + $0x208] sm:$0xff]  }
 0x21b   :  { %v2906_v43 = vpop.f32.mrf.mxu0  ;;  %v3001_v36 = vmax.f32 %v2958_v6, 0.0  ;;  %v2976_v51 = vadd.f32 %v2975_v62, %v2903_v58 }
 0x21c   :  { %v13123_v35 = vmax.f32 %v14915_v20, %v3072_v21  ;;  %v3073_v7 = vmax.f32 %v3009_v55, %v3025_v16  ;;  %v2907_v52 = vadd.f32 %v2906_v43, %v12985_v38  ;;  %v2979_v9 = vpop.f32.mrf.mxu1  ;;  %v13143_v55 = vmax.f32 %v14917_v2, %v3064_v27  ;;  %v10588_v16 = vld [vmem:[%s14868_s3 + $0x210] sm:$0xff]   ;;  %v14920_v2 = vld [vmem:[#allocation20_spill] sm:$0xff] }
 0x21d   :  { %9866 = vmatpush3.bf16.msra.mxu0 %v10580_v24  ;;  %v2908_v1 = vpop.f32.mrf.mxu0  ;;  %v3037_v24 = vmax.f32 %v2544_v0, 0.0  ;;  %v3032_v42 = vmax.f32 %v2976_v51, 0.0 }
 0x21e   :  { %v13132_v11 = vmax.f32 %v3069_v37, %v3073_v7  ;;  %v13134_v61 = vadd.f32 %v2979_v9, %v2907_v52  ;;  %v2909_v38 = vadd.f32 %v2908_v1, %v13007_v31  ;;  %v2981_v17 = vpop.f32.mrf.mxu1  ;;  %9867 = vmatprep.subr.bf16.mxu0 %v10583_v23  ;;  %v3065_v31 = vmax.f32 %v3001_v36, %v3017_v44  ;;  %v14918_v7 = vld [vmem:[#allocation15_spill] sm:$0xff] }
 0x21f   :  { %v2912_v46 = vpop.f32.mrf.mxu0  ;;  %v2978_v23 = vadd.f32 %v2977_v48, %v2905_v41  ;;  %v3085_v54 = vmax.f32 %v3037_v24, %v3053_v32  ;;  %v3131_v0 = vrot.slane %v13143_v55, 1  ;;  %v3145_v27 = vrot.slane %v13143_v55, 2  ;;  %v14919_v36 = vld [vmem:[#allocation19_spill] sm:$0xff] }
 0x220   :  { %v2982_v40 = vadd.f32 %v2981_v17, %v2909_v38  ;;  %v2913_v18 = vadd.f32 %v2912_v46, %v2840_v4  ;;  %v2985_v37 = vpop.f32.mrf.mxu1  ;;  %v13153_v58 = vmax.f32 %v14918_v7, %v3065_v31  ;;  %v3040_v4 = vmax.f32 %v13134_v61, 0.0  ;;  %v10599_v61 = vld [vmem:[%s14868_s3 + $0x378] sm:$0xff]  }
 0x221   :  { %9868 = vmatpush3.bf16.msra.mxu0 %v10584_v56  ;;  %v2914_v21 = vpop.f32.mrf.mxu0  ;;  %v3033_v52 = vmax.f32 %v2978_v23, 0.0  ;;  %v10595_v56 = vld [vmem:[%s14868_s3 + $0x240] sm:$0xff]   ;;  %v3371_v17 = vpack.c.bf16 %v12849_v13, %v12849_v13  ;;  %v3161_v32 = vrot.slane %v13143_v55, 3 }
 0x222   :  { %v2986_v19 = vadd.f32 %v2985_v37, %v2913_v18  ;;  %v2915_v59 = vadd.f32 %v2914_v21, %v2842_v3  ;;  %v2987_v10 = vpop.f32.mrf.mxu1  ;;  %9869 = vmatprep.subr.bf16.mxu0 %v10587_v33  ;;  %v3376_v33 = vpack.c.bf16 %v12869_v28, %v12869_v28  ;;  %v10596_v18 = vld [vmem:[%s14868_s3 + $0x200] sm:$0xff]   ;;  %v3041_v13 = vmax.f32 %v2982_v40, 0.0 }
 0x223   :  { %v2916_v62 = vpop.f32.mrf.mxu0  ;;  %v3133_v28 = vrot.slane %v13153_v58, 1  ;;  %v3148_v37 = vrot.slane %v13153_v58, 2  ;;  %v3164_v24 = vrot.slane %v13153_v58, 3 }
 0x224   :  { %v3048_v6 = vmax.f32 %v2986_v19, 0.0  ;;  %v2988_v43 = vadd.f32 %v2987_v10, %v2915_v59  ;;  %v2917_v48 = vadd.f32 %v2916_v62, %v13040_v12  ;;  %v2989_v20 = vpop.f32.mrf.mxu1 }
 0x225   :  { %9870 = vmatpush3.bf16.msra.mxu0 %v10588_v16  ;;  %v2918_v9 = vpop.f32.mrf.mxu0 }
 0x226   :  { %v3080_v44 = vmax.f32 %v3032_v42, %v3048_v6  ;;  %v3049_v41 = vmax.f32 %v2988_v43, 0.0  ;;  %v2990_v1 = vadd.f32 %v2989_v20, %v2917_v48  ;;  %v2919_v12 = vadd.f32 %v2918_v9, %v13049_v26  ;;  %9871 = vmatprep.subr.bf16.mxu0 %v10591_v29  ;;  %v2991_v38 = vpop.f32.mrf.mxu1  ;;  %v14921_v29 = vld [vmem:[#allocation21_spill] sm:$0xff]  ;;  %v10600_v48 = vld [vmem:[%s14868_s3 + $0x338] sm:$0xff]  }
 0x227   :  { %v3177_v9 = vrot.slane %v13143_v55, 4 }
 0x228   :  { %v13171_v46 = vmax.f32 %v14919_v36, %v3080_v44  ;;  %v3081_v26 = vmax.f32 %v3033_v52, %v3049_v41  ;;  %v3056_v3 = vmax.f32 %v2990_v1, 0.0  ;;  %v2992_v51 = vadd.f32 %v2991_v38, %v2919_v12  ;;  %v10603_v44 = vld [vmem:[%s14868_s3 + $0x370] sm:$0xff]  }
 0x229   :  { %9872 = vmatpush3.bf16.msra.mxu0 %v10592_v30  ;;  %v3180_v52 = vrot.slane %v13153_v58, 4  ;;  %v3196_v1 = vrot.slane %v13153_v58, 5 }
 0x22a   :  { %v13183_v31 = vmax.f32 %v14920_v2, %v3081_v26  ;;  %v3088_v23 = vmax.f32 %v3040_v4, %v3056_v3  ;;  %v3057_v21 = vmax.f32 %v2992_v51, 0.0  ;;  %9873 = vmatprep.subr.bf16.mxu0 %v10595_v56  ;;  %v3119_v16 = vrot.slane %v13171_v46, 7 }
 0x22b   :  { %v13188_v19 = vsel %vm3115_vm0, %v13171_v46, %v3131_v0  ;;  %v3146_v40 = vrot.slane %v13171_v46, 1  ;;  %v3162_v59 = vrot.slane %v13171_v46, 2  ;;  %v3178_v10 = vrot.slane %v13171_v46, 3 }
 0x22c   :  { %v13194_v62 = vmax.f32 %v14921_v29, %v3088_v23  ;;  %v3089_v42 = vmax.f32 %v3041_v13, %v3057_v21  ;;  %v3121_v6 = vrot.slane %v13183_v31, 7  ;;  %v3120_v43 = vsel %vm3115_vm0, %v3119_v16, %v13143_v55 }
 0x22d   :  { %9874 = vmatpush3.bf16.msra.mxu0 %v10596_v18  ;;  %v3134_v20 = vsel %vm3115_vm0, %v13183_v31, %v3133_v28  ;;  %v3149_v7 = vrot.slane %v13183_v31, 1  ;;  %v13215_v41 = vsel %vm3115_vm0, %v3146_v40, %v3145_v27 }
 0x22e   :  { %v13207_v30 = vmax.f32 %v3085_v54, %v3089_v42  ;;  %9903 = vmatprep.subr.bf16.mxu0 %v10599_v61  ;;  %v3122_v0 = vsel %vm3115_vm0, %v3121_v6, %v13153_v58 }
 0x22f   :  { %12 = vsyncpa [#allocation3], 0  ;;  %v3366_v12 = vpack.c.bf16 %v3122_v0, %v3122_v0  ;;  %v13219_v56 = vsel %vm3115_vm0, %v3149_v7, %v3148_v37  ;;  %v3165_v54 = vrot.slane %v13183_v31, 2  ;;  %v3193_v4 = vrot.slane %v13143_v55, 5  ;;  %v10602_v38 = vld [vmem:[%s14868_s3 + $0x1b8] sm:$0xff]   ;;  %v10605_v18 = vld [vmem:[%s14868_s3 + $0x1f0] sm:$0xff]  }
 0x230   :  { %7723 = vmatmul.mubr.bf16.vlgmr.msra.gmra.mxu0 %v3371_v17  ;;  %v13227_v36 = vsel %vm3115_vm0, %v3162_v59, %v3161_v32  ;;  %v3181_v27 = vrot.slane %v13183_v31, 3  ;;  %v13231_v26 = vsel %vm3115_vm0, %v3178_v10, %v3177_v9  ;;  %v3212_v3 = vrot.slane %v13153_v58, 6  ;;  %v10604_v17 = vld [vmem:[%s14868_s3 + $0x330] sm:$0xff]   ;;  %s11102_s16 = smov [#allocation2]  }
 0x231   :  { %9904 = vmatpush3.bf16.msra.mxu0 %v10600_v48  ;;  %7802 = vmatprep.mubr.bf16.mxu0 %v3376_v33  ;;  %v3365_v51 = vpack.c.bf16 %v3120_v43, %v3120_v43  ;;  %v13241_v32 = vsel %vm3115_vm0, %v3165_v54, %v3164_v24  ;;  %v3197_v61 = vrot.slane %v13183_v31, 4  ;;  %v3209_v13 = vrot.slane %v13143_v55, 6  ;;  %v10607_v33 = vld [vmem:[%s14868_s3 + $0x368] sm:$0xff]   ;;  %v10606_v59 = vld [vmem:[%s14868_s3 + $0x1b0] sm:$0xff]   ;;  %s8908_s17 = sshll.u32 %s11102_s16, 4  ;;  %s8909_s17 = int_to_ptr.vmem [resolvable:$true] %s8908_s17 }
 0x232   :  { %7602 = vmatprep.mubr.bf16.mxu1 %v3366_v12  ;;  %v3370_v28 = vpack.c.bf16 %v3134_v20, %v3134_v20  ;;  %9905 = vmatprep.subr.bf16.mxu0 %v10603_v44  ;;  %v13249_v37 = vsel %vm3115_vm0, %v3181_v27, %v3180_v52  ;;  %v3194_v2 = vrot.slane %v13171_v46, 4  ;;  %v3213_v23 = vrot.slane %v13183_v31, 5  ;;  %v10610_v54 = vld [vmem:[%s14868_s3 + $0x1a8] sm:$0xff]   ;;  %s11077_s18 = scalar_lea.vmem %s8909_s17, 32  ;;  %p11082_p1 = scmp.lt.s32.totalorder %s8909_s17, %s8909_s17 }
 0x233   :  { %7603 = vmatmul.mubr.bf16.vlgmr.msra.gmra.mxu1 %v3365_v51  ;;  %v13254_v24 = vsel %vm3115_vm0, %v3197_v61, %v3196_v1  ;;  %v3210_v21 = vrot.slane %v13171_v46, 5  ;;  %v3228_v16 = vrot.slane %v13153_v58, 7  ;;  %v3229_v40 = vrot.slane %v13183_v31, 6  ;;  %v10608_v58 = vld [vmem:[%s14868_s3 + $0x328] sm:$0xff]   ;;  %v10612_v51 = vld [vmem:[%s14868_s3 + $0x320] sm:$0xff]   ;;  %p11078_p0 = scmp.ne.s32.totalorder %s8909_s17, %s11077_s18  ;;  %p11083_p2 = scmp.lt.s32.totalorder %s11077_s18, %s11077_s18 }
 0x234   :  { %9838 = vmatpush3.bf16.msra.mxu1 %v10602_v38  ;;  %7682 = vmatprep.mubr.bf16.mxu1 %v3370_v28  ;;  %v13263_v10 = vsel %vm3115_vm0, %v3194_v2, %v3193_v4  ;;  %v13266_v29 = vsel %vm3115_vm0, %v3213_v23, %v3212_v3  ;;  %v3225_v42 = vrot.slane %v13143_v55, 7  ;;  %v3226_v6 = vrot.slane %v13171_v46, 6  ;;  %v10609_v31 = vld [vmem:[%s14868_s3 + $0x1e8] sm:$0xff]   ;;  %v10611_v55 = vld [vmem:[%s14868_s3 + $0x360] sm:$0xff]  }
 0x235   :  { %9906 = vmatpush3.bf16.msra.mxu0 %v10604_v17  ;;  %9839 = vmatprep.subr.bf16.mxu1 %v10605_v18  ;;  %v13277_v43 = vsel %vm3115_vm0, %v3210_v21, %v3209_v13  ;;  %v3249_v48 = vrot.slane %v13207_v30, 7  ;;  %v3261_v20 = vrot.slane %v13132_v11, 1  ;;  %v13285_v46 = vsel %vm3115_vm0, %v3229_v40, %v3228_v16  ;;  %v10613_v17 = vld [vmem:[%s14868_s3 + $0x1e0] sm:$0xff]   ;;  %p11084_p3 = por %p11083_p2, %p11082_p1 }
 0x236   :  { %9907 = vmatprep.subr.bf16.mxu0 %v10607_v33  ;;  %v13288_v7 = vsel %vm3115_vm0, %v3226_v6, %v3225_v42  ;;  %v3247_v52 = vrot.slane %v13194_v62, 7  ;;  %v3259_v9 = vrot.slane %v13123_v35, 1  ;;  %v3276_v1 = vrot.slane %v13132_v11, 2  ;;  %v10615_v33 = vld [vmem:[%s14868_s3 + $0x358] sm:$0xff]  }
 0x237   :  { %v13294_v0 = vsel %vm3115_vm0, %v3249_v48, %v13132_v11  ;;  %v13298_v44 = vsel %vm3115_vm0, %v13207_v30, %v3261_v20  ;;  %v3273_v12 = vrot.slane %v13123_v35, 2  ;;  %v3292_v27 = vrot.slane %v13132_v11, 3  ;;  %p11085_p4 = pnand %p11084_p3, %p11078_p0 }
 0x238   :  { %9840 = vmatpush3.bf16.msra.mxu1 %v10606_v59  ;;  %v13307_v4 = vsel %vm3115_vm0, %v3247_v52, %v13123_v35  ;;  %v13311_v38 = vsel %vm3115_vm0, %v13194_v62, %v3259_v9  ;;  %v3289_v3 = vrot.slane %v13123_v35, 3  ;;  %v3277_v18 = vrot.slane %v13207_v30, 1  ;;  %v10616_v52 = vld [vmem:[%s14868_s3 + $0x318] sm:$0xff]  }
 0x239   :  { %9908 = vmatpush3.bf16.msra.mxu0 %v10608_v58  ;;  %9841 = vmatprep.subr.bf16.mxu1 %v10609_v31  ;;  %v3274_v61 = vrot.slane %v13194_v62, 1  ;;  %v3308_v13 = vrot.slane %v13132_v11, 4  ;;  %v3305_v28 = vrot.slane %v13123_v35, 4  ;;  %v3293_v2 = vrot.slane %v13207_v30, 2  ;;  %v10614_v58 = vld [vmem:[%s14868_s3 + $0x1a0] sm:$0xff]   ;;  %v10617_v9 = vld [vmem:[%s14868_s3 + $0x1d8] sm:$0xff]  }
 0x23a   :  { %9909 = vmatprep.subr.bf16.mxu0 %v10611_v55  ;;  %v3290_v23 = vrot.slane %v13194_v62, 2  ;;  %v3309_v21 = vrot.slane %v13207_v30, 3  ;;  %v3306_v16 = vrot.slane %v13194_v62, 3  ;;  %v13333_v40 = vsel %vm3115_vm0, %v3277_v18, %v3276_v1 }
 0x23b   :  { %v13336_v59 = vsel %vm3115_vm0, %v3274_v61, %v3273_v12  ;;  %v3325_v42 = vrot.slane %v13207_v30, 4  ;;  %v3322_v6 = vrot.slane %v13194_v62, 4  ;;  %v13344_v31 = vsel %vm3115_vm0, %v3293_v2, %v3292_v27  ;;  %v10619_v27 = vld [vmem:[%s14868_s3 + $0x350] sm:$0xff]  }
 0x23c   :  { %9842 = vmatpush3.bf16.msra.mxu1 %v10610_v54  ;;  %v13347_v48 = vsel %vm3115_vm0, %v3290_v23, %v3289_v3  ;;  %v3324_v20 = vrot.slane %v13132_v11, 5  ;;  %v3321_v55 = vrot.slane %v13123_v35, 5  ;;  %v13358_v1 = vsel %vm3115_vm0, %v3309_v21, %v3308_v13 }
 0x23d   :  { %9910 = vmatpush3.bf16.msra.mxu0 %v10612_v51  ;;  %9843 = vmatprep.subr.bf16.mxu1 %v10613_v17  ;;  %v3340_v12 = vrot.slane %v13132_v11, 6  ;;  %v3341_v54 = vrot.slane %v13207_v30, 5  ;;  %v13366_v3 = vsel %vm3115_vm0, %v3306_v16, %v3305_v28  ;;  %v3337_v61 = vrot.slane %v13123_v35, 6  ;;  %v10620_v16 = vld [vmem:[%s14868_s3 + $0x310] sm:$0xff]  }
 0x23e   :  { %9911 = vmatprep.subr.bf16.mxu0 %v10615_v33  ;;  %v13369_v51 = vsel %vm3115_vm0, %v3325_v42, %v3324_v20  ;;  %v13372_v17 = vsel %vm3115_vm0, %v3322_v6, %v3321_v55  ;;  %v3356_v13 = vrot.slane %v13132_v11, 7  ;;  %v10618_v33 = vld [vmem:[%s14868_s3 + $0x198] sm:$0xff]   ;;  %v3338_v28 = vrot.slane %v13194_v62, 5  ;;  %v10621_v11 = vld [vmem:[%s14868_s3 + $0x1d0] sm:$0xff]   ;;  %v10623_v42 = vld [vmem:[%s14868_s3 + $0x348] sm:$0xff]  }
 0x23f   :  { %v13375_v18 = vsel %vm3115_vm0, %v3341_v54, %v3340_v12  ;;  %v3357_v2 = vrot.slane %v13207_v30, 6  ;;  %v3353_v23 = vrot.slane %v13123_v35, 7  ;;  %v3354_v21 = vrot.slane %v13194_v62, 6  ;;  %v10622_v6 = vld [vmem:[%s14868_s3 + $0x190] sm:$0xff]   ;;  %v10625_v20 = vld [vmem:[%s14868_s3 + $0x1c8] sm:$0xff]   ;;  %v10627_v55 = vld [vmem:[%s14868_s3 + $0x340] sm:$0xff]  }
 0x240   :  { %9844 = vmatpush3.bf16.msra.mxu1 %v10614_v58  ;;  %v13396_v30 = vsel %vm3115_vm0, %v3338_v28, %v3337_v61  ;;  %v10624_v58 = vld [vmem:[%s14868_s3 + $0x308] sm:$0xff]   ;;  %v10629_v12 = vld [vmem:[%s14868_s3 + $0x1c0] sm:$0xff]   ;;  %v10631_v54 = vld [vmem:[%s14868_s3 + $0x478] sm:$0xff]   ;;  %vm11101_vm1 = vmmov 0   ;;  %vm8826_vm2 = vcmask 523264   ;;  %vm8900_vm3 = vcmask 74752  }
 0x241   :  { %9912 = vmatpush3.bf16.msra.mxu0 %v10616_v52  ;;  %9845 = vmatprep.subr.bf16.mxu1 %v10617_v9  ;;  %v13399_v35 = vsel %vm3115_vm0, %v3357_v2, %v3356_v13  ;;  %v13402_v62 = vsel %vm3115_vm0, %v3354_v21, %v3353_v23  ;;  %v10626_v52 = vld [vmem:[%s14868_s3 + $0x188] sm:$0xff]   ;;  %v10628_v9 = vld [vmem:[%s14868_s3 + $0x300] sm:$0xff]   ;;  %v10632_v61 = vld [vmem:[%s14868_s3 + $0x438] sm:$0xff]   ;;  %v3375_v13 = vpack.c.bf16 %v12859_v53, %v12859_v53 }
 0x242   :  { %9913 = vmatprep.subr.bf16.mxu0 %v10619_v27  ;;  %v10630_v27 = vld [vmem:[%s14868_s3 + $0x180] sm:$0xff]   ;;  %v10635_v28 = vld [vmem:[%s14868_s3 + $0x470] sm:$0xff]   ;;  %v3380_v2 = vpack.c.bf16 %v12877_v22, %v12877_v22  ;;  %v10634_v23 = vld [vmem:[%s14868_s3 + $0x2b8] sm:$0xff]   ;;  %v3369_v53 = vpack.c.bf16 %v13188_v19, %v13188_v19  ;;  %v3374_v22 = vpack.c.bf16 %v13219_v56, %v13219_v56 }
 0x243   :  { %v10636_v21 = vld [vmem:[%s14868_s3 + $0x430] sm:$0xff]   ;;  %v10641_v56 = vld [vmem:[%s14868_s3 + $0x2e8] sm:$0xff]  }
 0x244   :  { %9846 = vmatpush3.bf16.msra.mxu1 %v10618_v33  ;;  %v10633_v33 = vld [vmem:[%s14868_s3 + $0x2f8] sm:$0xff]   ;;  %v10638_v19 = vld [vmem:[%s14868_s3 + $0x2b0] sm:$0xff]  }
 0x245   :  { %9914 = vmatpush3.bf16.msra.mxu0 %v10620_v16  ;;  %9847 = vmatprep.subr.bf16.mxu1 %v10621_v11  ;;  %v10637_v16 = vld [vmem:[%s14868_s3 + $0x2f0] sm:$0xff]   ;;  %v10639_v11 = vld [vmem:[%s14868_s3 + $0x468] sm:$0xff]  }
 0x246   :  { %9915 = vmatprep.subr.bf16.mxu0 %v10623_v42  ;;  %v10640_v42 = vld [vmem:[%s14868_s3 + $0x428] sm:$0xff]  }
 0x248   :  { %9848 = vmatpush3.bf16.msra.mxu1 %v10622_v6  ;;  %v10643_v6 = vld [vmem:[%s14868_s3 + $0x460] sm:$0xff]  }
 0x249   :  { %9916 = vmatpush3.bf16.msra.mxu0 %v10624_v58  ;;  %9849 = vmatprep.subr.bf16.mxu1 %v10625_v20  ;;  %v10642_v58 = vld [vmem:[%s14868_s3 + $0x2a8] sm:$0xff]   ;;  %v10644_v20 = vld [vmem:[%s14868_s3 + $0x420] sm:$0xff]  }
 0x24a   :  { %9917 = vmatprep.subr.bf16.mxu0 %v10627_v55  ;;  %v10645_v55 = vld [vmem:[%s14868_s3 + $0x2e0] sm:$0xff]  }
 0x24c   :  { %9850 = vmatpush3.bf16.msra.mxu1 %v10626_v52  ;;  %v10647_v52 = vld [vmem:[%s14868_s3 + $0x458] sm:$0xff]  }
 0x24d   :  { %9918 = vmatpush3.bf16.msra.mxu0 %v10628_v9  ;;  %9851 = vmatprep.subr.bf16.mxu1 %v10629_v12  ;;  %v10646_v9 = vld [vmem:[%s14868_s3 + $0x2a0] sm:$0xff]   ;;  %v10648_v12 = vld [vmem:[%s14868_s3 + $0x418] sm:$0xff]  }
 0x24e   :  { %9947 = vmatprep.subr.bf16.mxu0 %v10631_v54  ;;  %v10649_v54 = vld [vmem:[%s14868_s3 + $0x2d8] sm:$0xff]  }
 0x250   :  { %9852 = vmatpush3.bf16.msra.mxu1 %v10630_v27  ;;  %7803 = vmatmul.mubr.bf16.vlgmr.msra.gmra.mxu0 %v3375_v13  ;;  %v10651_v27 = vld [vmem:[%s14868_s3 + $0x450] sm:$0xff]  }
 0x251   :  { %9948 = vmatpush3.bf16.msra.mxu0 %v10632_v61  ;;  %7882 = vmatprep.mubr.bf16.mxu0 %v3380_v2  ;;  %v10650_v61 = vld [vmem:[%s14868_s3 + $0x298] sm:$0xff]   ;;  %v10652_v13 = vld [vmem:[%s14868_s3 + $0x410] sm:$0xff]  }
 0x252   :  { %9881 = vmatprep.subr.bf16.mxu1 %v10633_v33  ;;  %9949 = vmatprep.subr.bf16.mxu0 %v10635_v28  ;;  %v10653_v33 = vld [vmem:[%s14868_s3 + $0x2d0] sm:$0xff]   ;;  %v10655_v28 = vld [vmem:[%s14868_s3 + $0x448] sm:$0xff]  }
 0x253   :  { %7683 = vmatmul.mubr.bf16.vlgmr.msra.gmra.mxu1 %v3369_v53  ;;  %v10654_v2 = vld [vmem:[%s14868_s3 + $0x290] sm:$0xff]   ;;  %v10657_v53 = vld [vmem:[%s14868_s3 + $0x2c8] sm:$0xff]  }
 0x254   :  { %9882 = vmatpush3.bf16.msra.mxu1 %v10634_v23  ;;  %7762 = vmatprep.mubr.bf16.mxu1 %v3374_v22  ;;  %v10656_v23 = vld [vmem:[%s14868_s3 + $0x408] sm:$0xff]   ;;  %v10660_v22 = vld [vmem:[%s14868_s3 + $0x400] sm:$0xff]  }
 0x255   :  { %9950 = vmatpush3.bf16.msra.mxu0 %v10636_v21  ;;  %9883 = vmatprep.subr.bf16.mxu1 %v10637_v16  ;;  %v10659_v21 = vld [vmem:[%s14868_s3 + $0x440] sm:$0xff]   ;;  %v10658_v16 = vld [vmem:[%s14868_s3 + $0x288] sm:$0xff]  }
 0x256   :  { %9951 = vmatprep.subr.bf16.mxu0 %v10639_v11  ;;  %v10661_v11 = vld [vmem:[%s14868_s3 + $0x2c0] sm:$0xff]  }
 0x258   :  { %9884 = vmatpush3.bf16.msra.mxu1 %v10638_v19  ;;  %v10663_v19 = vld [vmem:[%s14868_s3 + $0x578] sm:$0xff]  }
 0x259   :  { %9952 = vmatpush3.bf16.msra.mxu0 %v10640_v42  ;;  %9885 = vmatprep.subr.bf16.mxu1 %v10641_v56  ;;  %v10662_v42 = vld [vmem:[%s14868_s3 + $0x280] sm:$0xff]   ;;  %v10664_v56 = vld [vmem:[%s14868_s3 + $0x538] sm:$0xff]  }
 0x25a   :  { %9953 = vmatprep.subr.bf16.mxu0 %v10643_v6  ;;  %v3379_v6 = vpack.c.bf16 %v12889_v25, %v12889_v25  ;;  %v3373_v25 = vpack.c.bf16 %v13215_v41, %v13215_v41  ;;  %v10670_v41 = vld [vmem:[%s14868_s3 + $0x3b0] sm:$0xff]  }
 0x25c   :  { %9886 = vmatpush3.bf16.msra.mxu1 %v10642_v58  ;;  %v10665_v58 = vld [vmem:[%s14868_s3 + $0x3f8] sm:$0xff]  }
 0x25d   :  { %9954 = vmatpush3.bf16.msra.mxu0 %v10644_v20  ;;  %9887 = vmatprep.subr.bf16.mxu1 %v10645_v55  ;;  %v10667_v20 = vld [vmem:[%s14868_s3 + $0x570] sm:$0xff]   ;;  %v3384_v55 = vpack.c.bf16 %v12892_v34, %v12892_v34  ;;  %v3378_v34 = vpack.c.bf16 %v13241_v32, %v13241_v32  ;;  %v10673_v32 = vld [vmem:[%s14868_s3 + $0x3e8] sm:$0xff]  }
 0x25e   :  { %9955 = vmatprep.subr.bf16.mxu0 %v10647_v52  ;;  %v10666_v52 = vld [vmem:[%s14868_s3 + $0x3b8] sm:$0xff]  }
 0x260   :  { %9888 = vmatpush3.bf16.msra.mxu1 %v10646_v9  ;;  %v10668_v9 = vld [vmem:[%s14868_s3 + $0x530] sm:$0xff]  }
 0x261   :  { %9956 = vmatpush3.bf16.msra.mxu0 %v10648_v12  ;;  %9889 = vmatprep.subr.bf16.mxu1 %v10649_v54  ;;  %v10669_v12 = vld [vmem:[%s14868_s3 + $0x3f0] sm:$0xff]   ;;  %v10671_v54 = vld [vmem:[%s14868_s3 + $0x568] sm:$0xff]  }
 0x262   :  { %9957 = vmatprep.subr.bf16.mxu0 %v10651_v27  ;;  %v10672_v27 = vld [vmem:[%s14868_s3 + $0x528] sm:$0xff]  }
 0x264   :  { %9890 = vmatpush3.bf16.msra.mxu1 %v10650_v61  ;;  %v10675_v61 = vld [vmem:[%s14868_s3 + $0x560] sm:$0xff]  }
 0x265   :  { %9958 = vmatpush3.bf16.msra.mxu0 %v10652_v13  ;;  %9891 = vmatprep.subr.bf16.mxu1 %v10653_v33  ;;  %v10674_v13 = vld [vmem:[%s14868_s3 + $0x3a8] sm:$0xff]   ;;  %v10676_v33 = vld [vmem:[%s14868_s3 + $0x520] sm:$0xff]  }
 0x266   :  { %9959 = vmatprep.subr.bf16.mxu0 %v10655_v28  ;;  %v10677_v28 = vld [vmem:[%s14868_s3 + $0x3e0] sm:$0xff]  }
 0x268   :  { %9892 = vmatpush3.bf16.msra.mxu1 %v10654_v2  ;;  %v10679_v2 = vld [vmem:[%s14868_s3 + $0x558] sm:$0xff]  }
 0x269   :  { %9960 = vmatpush3.bf16.msra.mxu0 %v10656_v23  ;;  %9893 = vmatprep.subr.bf16.mxu1 %v10657_v53  ;;  %v10678_v23 = vld [vmem:[%s14868_s3 + $0x3a0] sm:$0xff]   ;;  %v10680_v53 = vld [vmem:[%s14868_s3 + $0x518] sm:$0xff]  }
 0x26a   :  { %9961 = vmatprep.subr.bf16.mxu0 %v10659_v21  ;;  %v10681_v21 = vld [vmem:[%s14868_s3 + $0x3d8] sm:$0xff]  }
 0x26c   :  { %9894 = vmatpush3.bf16.msra.mxu1 %v10658_v16  ;;  %v10683_v16 = vld [vmem:[%s14868_s3 + $0x550] sm:$0xff]  }
 0x26d   :  { %9962 = vmatpush3.bf16.msra.mxu0 %v10660_v22  ;;  %9895 = vmatprep.subr.bf16.mxu1 %v10661_v11  ;;  %v10682_v22 = vld [vmem:[%s14868_s3 + $0x398] sm:$0xff]   ;;  %v10684_v11 = vld [vmem:[%s14868_s3 + $0x510] sm:$0xff]  }
 0x26e   :  { %9991 = vmatprep.subr.bf16.mxu0 %v10663_v19  ;;  %v10685_v19 = vld [vmem:[%s14868_s3 + $0x3d0] sm:$0xff]  }
 0x270   :  { %9896 = vmatpush3.bf16.msra.mxu1 %v10662_v42  ;;  %7883 = vmatmul.mubr.bf16.vlgmr.msra.gmra.mxu0 %v3379_v6  ;;  %v10687_v42 = vld [vmem:[%s14868_s3 + $0x548] sm:$0xff]  }
 0x271   :  { %9992 = vmatpush3.bf16.msra.mxu0 %v10664_v56  ;;  %7962 = vmatprep.mubr.bf16.mxu0 %v3384_v55  ;;  %v10686_v56 = vld [vmem:[%s14868_s3 + $0x390] sm:$0xff]   ;;  %v10688_v6 = vld [vmem:[%s14868_s3 + $0x508] sm:$0xff]  }
 0x272   :  { %9925 = vmatprep.subr.bf16.mxu1 %v10665_v58  ;;  %9993 = vmatprep.subr.bf16.mxu0 %v10667_v20  ;;  %v10689_v58 = vld [vmem:[%s14868_s3 + $0x3c8] sm:$0xff]   ;;  %v10691_v20 = vld [vmem:[%s14868_s3 + $0x540] sm:$0xff]  }
 0x273   :  { %7763 = vmatmul.mubr.bf16.vlgmr.msra.gmra.mxu1 %v3373_v25  ;;  %v10690_v55 = vld [vmem:[%s14868_s3 + $0x388] sm:$0xff]   ;;  %v10693_v25 = vld [vmem:[%s14868_s3 + $0x3c0] sm:$0xff]  }
 0x274   :  { %9926 = vmatpush3.bf16.msra.mxu1 %v10666_v52  ;;  %7842 = vmatprep.mubr.bf16.mxu1 %v3378_v34  ;;  %v10692_v52 = vld [vmem:[%s14868_s3 + $0x500] sm:$0xff]   ;;  %v10696_v34 = vld [vmem:[%s14868_s3 + $0x638] sm:$0xff]  }
 0x275   :  { %9994 = vmatpush3.bf16.msra.mxu0 %v10668_v9  ;;  %9927 = vmatprep.subr.bf16.mxu1 %v10669_v12  ;;  %v10695_v9 = vld [vmem:[%s14868_s3 + $0x678] sm:$0xff]   ;;  %v10694_v12 = vld [vmem:[%s14868_s3 + $0x380] sm:$0xff]  }
 0x276   :  { %9995 = vmatprep.subr.bf16.mxu0 %v10671_v54  ;;  %v3383_v54 = vpack.c.bf16 %v12899_v14, %v12899_v14  ;;  %v3377_v14 = vpack.c.bf16 %v13227_v36, %v13227_v36  ;;  %v10702_v36 = vld [vmem:[%s14868_s3 + $0x4b0] sm:$0xff]  }
 0x278   :  { %9928 = vmatpush3.bf16.msra.mxu1 %v10670_v41  ;;  %v10697_v41 = vld [vmem:[%s14868_s3 + $0x4f8] sm:$0xff]  }
 0x279   :  { %9996 = vmatpush3.bf16.msra.mxu0 %v10672_v27  ;;  %9929 = vmatprep.subr.bf16.mxu1 %v10673_v32  ;;  %v10699_v27 = vld [vmem:[%s14868_s3 + $0x670] sm:$0xff]   ;;  %v3388_v32 = vpack.c.bf16 %v12903_v50, %v12903_v50  ;;  %v3382_v50 = vpack.c.bf16 %v13249_v37, %v13249_v37  ;;  %v10705_v37 = vld [vmem:[%s14868_s3 + $0x4e8] sm:$0xff]  }
 0x27a   :  { %9997 = vmatprep.subr.bf16.mxu0 %v10675_v61  ;;  %v10698_v61 = vld [vmem:[%s14868_s3 + $0x4b8] sm:$0xff]  }
 0x27c   :  { %9930 = vmatpush3.bf16.msra.mxu1 %v10674_v13  ;;  %v10700_v13 = vld [vmem:[%s14868_s3 + $0x630] sm:$0xff]  }
 0x27d   :  { %9998 = vmatpush3.bf16.msra.mxu0 %v10676_v33  ;;  %9931 = vmatprep.subr.bf16.mxu1 %v10677_v28  ;;  %v10701_v33 = vld [vmem:[%s14868_s3 + $0x4f0] sm:$0xff]   ;;  %v10703_v28 = vld [vmem:[%s14868_s3 + $0x668] sm:$0xff]  }
 0x27e   :  { %9999 = vmatprep.subr.bf16.mxu0 %v10679_v2  ;;  %v10704_v2 = vld [vmem:[%s14868_s3 + $0x628] sm:$0xff]  }
 0x280   :  { %9932 = vmatpush3.bf16.msra.mxu1 %v10678_v23  ;;  %v10707_v23 = vld [vmem:[%s14868_s3 + $0x660] sm:$0xff]  }
 0x281   :  { %10000 = vmatpush3.bf16.msra.mxu0 %v10680_v53  ;;  %9933 = vmatprep.subr.bf16.mxu1 %v10681_v21  ;;  %v10706_v53 = vld [vmem:[%s14868_s3 + $0x4a8] sm:$0xff]   ;;  %v10708_v21 = vld [vmem:[%s14868_s3 + $0x620] sm:$0xff]  }
 0x282   :  { %10001 = vmatprep.subr.bf16.mxu0 %v10683_v16  ;;  %v10709_v16 = vld [vmem:[%s14868_s3 + $0x4e0] sm:$0xff]  }
 0x284   :  { %9934 = vmatpush3.bf16.msra.mxu1 %v10682_v22  ;;  %v10711_v22 = vld [vmem:[%s14868_s3 + $0x658] sm:$0xff]  }
 0x285   :  { %10002 = vmatpush3.bf16.msra.mxu0 %v10684_v11  ;;  %9935 = vmatprep.subr.bf16.mxu1 %v10685_v19  ;;  %v10710_v11 = vld [vmem:[%s14868_s3 + $0x4a0] sm:$0xff]   ;;  %v10712_v19 = vld [vmem:[%s14868_s3 + $0x618] sm:$0xff]  }
 0x286   :  { %10003 = vmatprep.subr.bf16.mxu0 %v10687_v42  ;;  %v10713_v42 = vld [vmem:[%s14868_s3 + $0x4d8] sm:$0xff]  }
 0x288   :  { %9936 = vmatpush3.bf16.msra.mxu1 %v10686_v56  ;;  %v10715_v56 = vld [vmem:[%s14868_s3 + $0x650] sm:$0xff]  }
 0x289   :  { %10004 = vmatpush3.bf16.msra.mxu0 %v10688_v6  ;;  %9937 = vmatprep.subr.bf16.mxu1 %v10689_v58  ;;  %v10714_v6 = vld [vmem:[%s14868_s3 + $0x498] sm:$0xff]   ;;  %v10716_v58 = vld [vmem:[%s14868_s3 + $0x610] sm:$0xff]  }
 0x28a   :  { %10005 = vmatprep.subr.bf16.mxu0 %v10691_v20  ;;  %v10717_v20 = vld [vmem:[%s14868_s3 + $0x4d0] sm:$0xff]  }
 0x28c   :  { %9938 = vmatpush3.bf16.msra.mxu1 %v10690_v55  ;;  %v10719_v55 = vld [vmem:[%s14868_s3 + $0x648] sm:$0xff]  }
 0x28d   :  { %10006 = vmatpush3.bf16.msra.mxu0 %v10692_v52  ;;  %9939 = vmatprep.subr.bf16.mxu1 %v10693_v25  ;;  %v10718_v52 = vld [vmem:[%s14868_s3 + $0x490] sm:$0xff]   ;;  %v10720_v25 = vld [vmem:[%s14868_s3 + $0x608] sm:$0xff]  }
 0x28e   :  { %10035 = vmatprep.subr.bf16.mxu0 %v10695_v9  ;;  %v10721_v9 = vld [vmem:[%s14868_s3 + $0x4c8] sm:$0xff]  }
 0x290   :  { %9940 = vmatpush3.bf16.msra.mxu1 %v10694_v12  ;;  %7963 = vmatmul.mubr.bf16.vlgmr.msra.gmra.mxu0 %v3383_v54  ;;  %v10723_v12 = vld [vmem:[%s14868_s3 + $0x640] sm:$0xff]  }
 0x291   :  { %10036 = vmatpush3.bf16.msra.mxu0 %v10696_v34  ;;  %8042 = vmatprep.mubr.bf16.mxu0 %v3388_v32  ;;  %v10722_v34 = vld [vmem:[%s14868_s3 + $0x488] sm:$0xff]   ;;  %v10724_v54 = vld [vmem:[%s14868_s3 + $0x600] sm:$0xff]  }
 0x292   :  { %9969 = vmatprep.subr.bf16.mxu1 %v10697_v41  ;;  %10037 = vmatprep.subr.bf16.mxu0 %v10699_v27  ;;  %v10725_v41 = vld [vmem:[%s14868_s3 + $0x4c0] sm:$0xff]   ;;  %v10727_v27 = vld [vmem:[%s14868_s3 + $0x778] sm:$0xff]  }
 0x293   :  { %7843 = vmatmul.mubr.bf16.vlgmr.msra.gmra.mxu1 %v3377_v14  ;;  %v10726_v32 = vld [vmem:[%s14868_s3 + $0x480] sm:$0xff]   ;;  %v3387_v14 = vpack.c.bf16 %v12906_v45, %v12906_v45  ;;  %v3381_v45 = vpack.c.bf16 %v13231_v26, %v13231_v26 }
 0x294   :  { %9970 = vmatpush3.bf16.msra.mxu1 %v10698_v61  ;;  %7922 = vmatprep.mubr.bf16.mxu1 %v3382_v50  ;;  %v10728_v61 = vld [vmem:[%s14868_s3 + $0x738] sm:$0xff]   ;;  %v3392_v50 = vpack.c.bf16 %v12909_v5, %v12909_v5  ;;  %v10733_v5 = vld [vmem:[%s14868_s3 + $0x5f0] sm:$0xff]  }
 0x295   :  { %10038 = vmatpush3.bf16.msra.mxu0 %v10700_v13  ;;  %9971 = vmatprep.subr.bf16.mxu1 %v10701_v33  ;;  %v10729_v13 = vld [vmem:[%s14868_s3 + $0x5f8] sm:$0xff]   ;;  %v10731_v33 = vld [vmem:[%s14868_s3 + $0x770] sm:$0xff]  }
 0x296   :  { %10039 = vmatprep.subr.bf16.mxu0 %v10703_v28 }
 0x298   :  { %9972 = vmatpush3.bf16.msra.mxu1 %v10702_v36  ;;  %v10730_v36 = vld [vmem:[%s14868_s3 + $0x5b8] sm:$0xff]  }
 0x299   :  { %10040 = vmatpush3.bf16.msra.mxu0 %v10704_v2  ;;  %9973 = vmatprep.subr.bf16.mxu1 %v10705_v37  ;;  %v10732_v2 = vld [vmem:[%s14868_s3 + $0x730] sm:$0xff]  }
 0x29a   :  { %10041 = vmatprep.subr.bf16.mxu0 %v10707_v23  ;;  %v3386_v23 = vpack.c.bf16 %v13254_v24, %v13254_v24  ;;  %v10736_v24 = vld [vmem:[%s14868_s3 + $0x728] sm:$0xff]  }
 0x29c   :  { %9974 = vmatpush3.bf16.msra.mxu1 %v10706_v53  ;;  %v10735_v53 = vld [vmem:[%s14868_s3 + $0x768] sm:$0xff]  }
 0x29d   :  { %10042 = vmatpush3.bf16.msra.mxu0 %v10708_v21  ;;  %9975 = vmatprep.subr.bf16.mxu1 %v10709_v16  ;;  %v10734_v16 = vld [vmem:[%s14868_s3 + $0x5b0] sm:$0xff]  }
 0x29e   :  { %10043 = vmatprep.subr.bf16.mxu0 %v10711_v22  ;;  %v10737_v22 = vld [vmem:[%s14868_s3 + $0x5e8] sm:$0xff]  }
 0x2a0   :  { %9976 = vmatpush3.bf16.msra.mxu1 %v10710_v11 }
 0x2a1   :  { %10044 = vmatpush3.bf16.msra.mxu0 %v10712_v19  ;;  %9977 = vmatprep.subr.bf16.mxu1 %v10713_v42  ;;  %v10739_v19 = vld [vmem:[%s14868_s3 + $0x760] sm:$0xff]   ;;  %v10738_v42 = vld [vmem:[%s14868_s3 + $0x5a8] sm:$0xff]  }
 0x2a2   :  { %10045 = vmatprep.subr.bf16.mxu0 %v10715_v56  ;;  %v10740_v56 = vld [vmem:[%s14868_s3 + $0x720] sm:$0xff]  }
 0x2a4   :  { %9978 = vmatpush3.bf16.msra.mxu1 %v10714_v6  ;;  %v10741_v6 = vld [vmem:[%s14868_s3 + $0x5e0] sm:$0xff]  }
 0x2a5   :  { %10046 = vmatpush3.bf16.msra.mxu0 %v10716_v58  ;;  %9979 = vmatprep.subr.bf16.mxu1 %v10717_v20  ;;  %v10743_v58 = vld [vmem:[%s14868_s3 + $0x758] sm:$0xff]   ;;  %v10742_v20 = vld [vmem:[%s14868_s3 + $0x5a0] sm:$0xff]  }
 0x2a6   :  { %10047 = vmatprep.subr.bf16.mxu0 %v10719_v55  ;;  %v10744_v55 = vld [vmem:[%s14868_s3 + $0x718] sm:$0xff]  }
 0x2a8   :  { %9980 = vmatpush3.bf16.msra.mxu1 %v10718_v52  ;;  %v10745_v52 = vld [vmem:[%s14868_s3 + $0x5d8] sm:$0xff]  }
 0x2a9   :  { %10048 = vmatpush3.bf16.msra.mxu0 %v10720_v25  ;;  %9981 = vmatprep.subr.bf16.mxu1 %v10721_v9  ;;  %v10747_v25 = vld [vmem:[%s14868_s3 + $0x750] sm:$0xff]   ;;  %v10746_v9 = vld [vmem:[%s14868_s3 + $0x598] sm:$0xff]  }
 0x2aa   :  { %10049 = vmatprep.subr.bf16.mxu0 %v10723_v12  ;;  %v10748_v12 = vld [vmem:[%s14868_s3 + $0x710] sm:$0xff]  }
 0x2ac   :  { %9982 = vmatpush3.bf16.msra.mxu1 %v10722_v34  ;;  %v10749_v34 = vld [vmem:[%s14868_s3 + $0x5d0] sm:$0xff]  }
 0x2ad   :  { %10050 = vmatpush3.bf16.msra.mxu0 %v10724_v54  ;;  %9983 = vmatprep.subr.bf16.mxu1 %v10725_v41  ;;  %v10751_v54 = vld [vmem:[%s14868_s3 + $0x748] sm:$0xff]   ;;  %v10750_v41 = vld [vmem:[%s14868_s3 + $0x590] sm:$0xff]  }
 0x2ae   :  { %10079 = vmatprep.subr.bf16.mxu0 %v10727_v27  ;;  %v10752_v27 = vld [vmem:[%s14868_s3 + $0x708] sm:$0xff]  }
 0x2b0   :  { %9984 = vmatpush3.bf16.msra.mxu1 %v10726_v32  ;;  %8043 = vmatmul.mubr.bf16.vlgmr.msra.gmra.mxu0 %v3387_v14  ;;  %v9787_v28 = vpop.f32.mrf.mxu0  ;;  %v10753_v32 = vld [vmem:[%s14868_s3 + $0x5c8] sm:$0xff]  }
 0x2b1   :  { %10080 = vmatpush3.bf16.msra.mxu0 %v10728_v61  ;;  %8122 = vmatprep.mubr.bf16.mxu0 %v3392_v50  ;;  %v10755_v61 = vld [vmem:[%s14868_s3 + $0x740] sm:$0xff]   ;;  %v10754_v14 = vld [vmem:[%s14868_s3 + $0x588] sm:$0xff]   ;;  %v10759_v50 = vld [vmem:[%s14868_s3 + $0x878] sm:$0xff]  }
 0x2b2   :  { %10013 = vmatprep.subr.bf16.mxu1 %v10729_v13  ;;  %v9788_v37 = vpop.f32.mrf.mxu0  ;;  %10081 = vmatprep.subr.bf16.mxu0 %v10731_v33  ;;  %v10756_v13 = vld [vmem:[%s14868_s3 + $0x700] sm:$0xff]  }
 0x2b3   :  { %7923 = vmatmul.mubr.bf16.vlgmr.msra.gmra.mxu1 %v3381_v45  ;;  %v13772_v26 = vadd.f32 %v9788_v37, %v9787_v28  ;;  %v10757_v33 = vld [vmem:[%s14868_s3 + $0x5c0] sm:$0xff]   ;;  %v3391_v45 = vpack.c.bf16 %v12946_v15, %v12946_v15  ;;  %v3396_v37 = vpack.c.bf16 %v12950_v57, %v12950_v57  ;;  %v3385_v15 = vpack.c.bf16 %v13263_v10, %v13263_v10  ;;  %v10765_v57 = vld [vmem:[%s14868_s3 + $0x6f0] sm:$0xff]  }
 0x2b4   :  { %10014 = vmatpush3.bf16.msra.mxu1 %v10730_v36  ;;  %8002 = vmatprep.mubr.bf16.mxu1 %v3386_v23  ;;  %v9790_v21 = vpop.f32.mrf.mxu0  ;;  %v10758_v28 = vld [vmem:[%s14868_s3 + $0x580] sm:$0xff]   ;;  %v10760_v36 = vld [vmem:[%s14868_s3 + $0x838] sm:$0xff]  }
 0x2b5   :  { %10082 = vmatpush3.bf16.msra.mxu0 %v10732_v2  ;;  %10015 = vmatprep.subr.bf16.mxu1 %v10733_v5  ;;  %v10761_v2 = vld [vmem:[%s14868_s3 + $0x6f8] sm:$0xff]   ;;  %v10763_v5 = vld [vmem:[%s14868_s3 + $0x870] sm:$0xff]  }
 0x2b6   :  { %v9791_v11 = vpop.f32.mrf.mxu0  ;;  %10083 = vmatprep.subr.bf16.mxu0 %v10735_v53  ;;  %v10762_v53 = vld [vmem:[%s14868_s3 + $0x6b8] sm:$0xff]   ;;  %v10764_v21 = vld [vmem:[%s14868_s3 + $0x830] sm:$0xff]  }
 0x2b8   :  { %10016 = vmatpush3.bf16.msra.mxu1 %v10734_v16 }
 0x2b9   :  { %10084 = vmatpush3.bf16.msra.mxu0 %v10736_v24  ;;  %10017 = vmatprep.subr.bf16.mxu1 %v10737_v22  ;;  %v3390_v24 = vpack.c.bf16 %v13266_v29, %v13266_v29  ;;  %v10767_v22 = vld [vmem:[%s14868_s3 + $0x868] sm:$0xff]  }
 0x2ba   :  { %10085 = vmatprep.subr.bf16.mxu0 %v10739_v19  ;;  %v10766_v19 = vld [vmem:[%s14868_s3 + $0x6b0] sm:$0xff]   ;;  %v10768_v29 = vld [vmem:[%s14868_s3 + $0x828] sm:$0xff]  }
 0x2bc   :  { %10018 = vmatpush3.bf16.msra.mxu1 %v10738_v42  ;;  %v10769_v42 = vld [vmem:[%s14868_s3 + $0x6e8] sm:$0xff]  }
 0x2bd   :  { %10086 = vmatpush3.bf16.msra.mxu0 %v10740_v56  ;;  %10019 = vmatprep.subr.bf16.mxu1 %v10741_v6  ;;  %v10771_v6 = vld [vmem:[%s14868_s3 + $0x860] sm:$0xff]  }
 0x2be   :  { %10087 = vmatprep.subr.bf16.mxu0 %v10743_v58  ;;  %v10770_v58 = vld [vmem:[%s14868_s3 + $0x6a8] sm:$0xff]  }
 0x2c0   :  { %10020 = vmatpush3.bf16.msra.mxu1 %v10742_v20  ;;  %v10772_v20 = vld [vmem:[%s14868_s3 + $0x820] sm:$0xff]  }
 0x2c1   :  { %10088 = vmatpush3.bf16.msra.mxu0 %v10744_v55  ;;  %10021 = vmatprep.subr.bf16.mxu1 %v10745_v52  ;;  %v10773_v55 = vld [vmem:[%s14868_s3 + $0x6e0] sm:$0xff]   ;;  %v10775_v52 = vld [vmem:[%s14868_s3 + $0x858] sm:$0xff]  }
 0x2c2   :  { %10089 = vmatprep.subr.bf16.mxu0 %v10747_v25  ;;  %v10774_v25 = vld [vmem:[%s14868_s3 + $0x6a0] sm:$0xff]  }
 0x2c4   :  { %10022 = vmatpush3.bf16.msra.mxu1 %v10746_v9  ;;  %v10776_v9 = vld [vmem:[%s14868_s3 + $0x818] sm:$0xff]  }
 0x2c5   :  { %10090 = vmatpush3.bf16.msra.mxu0 %v10748_v12  ;;  %10023 = vmatprep.subr.bf16.mxu1 %v10749_v34  ;;  %v10777_v12 = vld [vmem:[%s14868_s3 + $0x6d8] sm:$0xff]   ;;  %v10779_v34 = vld [vmem:[%s14868_s3 + $0x850] sm:$0xff]  }
 0x2c6   :  { %10091 = vmatprep.subr.bf16.mxu0 %v10751_v54  ;;  %v10778_v54 = vld [vmem:[%s14868_s3 + $0x698] sm:$0xff]  }
 0x2c8   :  { %10024 = vmatpush3.bf16.msra.mxu1 %v10750_v41  ;;  %v10780_v41 = vld [vmem:[%s14868_s3 + $0x810] sm:$0xff]  }
 0x2c9   :  { %10092 = vmatpush3.bf16.msra.mxu0 %v10752_v27  ;;  %10025 = vmatprep.subr.bf16.mxu1 %v10753_v32  ;;  %v10781_v27 = vld [vmem:[%s14868_s3 + $0x6d0] sm:$0xff]   ;;  %v10783_v32 = vld [vmem:[%s14868_s3 + $0x848] sm:$0xff]  }
 0x2ca   :  { %10093 = vmatprep.subr.bf16.mxu0 %v10755_v61  ;;  %v10782_v61 = vld [vmem:[%s14868_s3 + $0x690] sm:$0xff]  }
 0x2cc   :  { %10026 = vmatpush3.bf16.msra.mxu1 %v10754_v14  ;;  %v10784_v14 = vld [vmem:[%s14868_s3 + $0x808] sm:$0xff]  }
 0x2cd   :  { %10094 = vmatpush3.bf16.msra.mxu0 %v10756_v13  ;;  %10027 = vmatprep.subr.bf16.mxu1 %v10757_v33  ;;  %v10785_v13 = vld [vmem:[%s14868_s3 + $0x6c8] sm:$0xff]   ;;  %v10787_v33 = vld [vmem:[%s14868_s3 + $0x840] sm:$0xff]  }
 0x2ce   :  { %10123 = vmatprep.subr.bf16.mxu0 %v10759_v50  ;;  %v10786_v50 = vld [vmem:[%s14868_s3 + $0x688] sm:$0xff]  }
 0x2d0   :  { %10028 = vmatpush3.bf16.msra.mxu1 %v10758_v28  ;;  %v9831_v23 = vpop.f32.mrf.mxu0  ;;  %8123 = vmatmul.mubr.bf16.vlgmr.msra.gmra.mxu0 %v3391_v45  ;;  %v10788_v28 = vld [vmem:[%s14868_s3 + $0x800] sm:$0xff]   ;;  %v10791_v45 = vld [vmem:[%s14868_s3 + $0x978] sm:$0xff]  }
 0x2d1   :  { %10124 = vmatpush3.bf16.msra.mxu0 %v10760_v36  ;;  %8202 = vmatprep.mubr.bf16.mxu0 %v3396_v37  ;;  %v10789_v36 = vld [vmem:[%s14868_s3 + $0x6c0] sm:$0xff]   ;;  %v3395_v37 = vpack.c.bf16 %v12954_v63, %v12954_v63  ;;  %v3389_v63 = vpack.c.bf16 %v13277_v43, %v13277_v43 }
 0x2d2   :  { %v9832_v16 = vpop.f32.mrf.mxu0  ;;  %10057 = vmatprep.subr.bf16.mxu1 %v10761_v2  ;;  %10125 = vmatprep.subr.bf16.mxu0 %v10763_v5  ;;  %v10790_v2 = vld [vmem:[%s14868_s3 + $0x680] sm:$0xff]   ;;  %v10792_v5 = vld [vmem:[%s14868_s3 + $0x938] sm:$0xff]  }
 0x2d3   :  { %v13878_v11 = vadd.f32 %v9832_v16, %v9831_v23  ;;  %8003 = vmatmul.mubr.bf16.vlgmr.msra.gmra.mxu1 %v3385_v15  ;;  %v10793_v23 = vld [vmem:[%s14868_s3 + $0x7f8] sm:$0xff]   ;;  %v3400_v15 = vpack.c.bf16 %v12929_v49, %v12929_v49  ;;  %v10796_v16 = vld [vmem:[%s14868_s3 + $0x930] sm:$0xff]   ;;  %v9256_v43 = vld [vmem:[%s14869_s4] ss:$0 sm:$0xff] }
 0x2d4   :  { %10058 = vmatpush3.bf16.msra.mxu1 %v10762_v53  ;;  %8082 = vmatprep.mubr.bf16.mxu1 %v3390_v24  ;;  %v9834_v10 = vpop.f32.mrf.mxu0  ;;  %v10795_v53 = vld [vmem:[%s14868_s3 + $0x970] sm:$0xff]  }
 0x2d5   :  { %10126 = vmatpush3.bf16.msra.mxu0 %v10764_v21  ;;  %10059 = vmatprep.subr.bf16.mxu1 %v10765_v57  ;;  %v10794_v57 = vld [vmem:[%s14868_s3 + $0x7b8] sm:$0xff]   ;;  %v10797_v49 = vld [vmem:[%s14868_s3 + $0x7f0] sm:$0xff]   ;;  %v10799_v10 = vld [vmem:[%s14868_s3 + $0x968] sm:$0xff]  }
 0x2d6   :  { %v9835_v56 = vpop.f32.mrf.mxu0  ;;  %10127 = vmatprep.subr.bf16.mxu0 %v10767_v22  ;;  %v3394_v22 = vpack.c.bf16 %v13285_v46, %v13285_v46  ;;  %v10798_v46 = vld [vmem:[%s14868_s3 + $0x7b0] sm:$0xff]  }
 0x2d8   :  { %10060 = vmatpush3.bf16.msra.mxu1 %v10766_v19 }
 0x2d9   :  { %10128 = vmatpush3.bf16.msra.mxu0 %v10768_v29  ;;  %10061 = vmatprep.subr.bf16.mxu1 %v10769_v42 }
 0x2da   :  { %10129 = vmatprep.subr.bf16.mxu0 %v10771_v6  ;;  %v10800_v6 = vld [vmem:[%s14868_s3 + $0x928] sm:$0xff]  }
 0x2dc   :  { %10062 = vmatpush3.bf16.msra.mxu1 %v10770_v58  ;;  %v10801_v58 = vld [vmem:[%s14868_s3 + $0x7e8] sm:$0xff]  }
 0x2dd   :  { %10130 = vmatpush3.bf16.msra.mxu0 %v10772_v20  ;;  %10063 = vmatprep.subr.bf16.mxu1 %v10773_v55  ;;  %v7565_v20 = vadd.f32 %v13772_v26, %v9256_v43  ;;  %v10804_v26 = vld [vmem:[%s14868_s3 + $0x920] sm:$0xff]   ;;  %v10826_v43 = vld [vmem:[%s14868_s3 + $0x8b8] sm:$0xff]  }
 0x2de   :  { %10131 = vmatprep.subr.bf16.mxu0 %v10775_v52 }
 0x2e0   :  { %10064 = vmatpush3.bf16.msra.mxu1 %v10774_v25  ;;  %v10803_v25 = vld [vmem:[%s14868_s3 + $0x960] sm:$0xff]  }
 0x2e1   :  { %10132 = vmatpush3.bf16.msra.mxu0 %v10776_v9  ;;  %10065 = vmatprep.subr.bf16.mxu1 %v10777_v12 }
 0x2e2   :  { %10133 = vmatprep.subr.bf16.mxu0 %v10779_v34  ;;  %v10802_v34 = vld [vmem:[%s14868_s3 + $0x7a8] sm:$0xff]  }
 0x2e4   :  { %10066 = vmatpush3.bf16.msra.mxu1 %v10778_v54 }
 0x2e5   :  { %10134 = vmatpush3.bf16.msra.mxu0 %v10780_v41  ;;  %10067 = vmatprep.subr.bf16.mxu1 %v10781_v27  ;;  %v10805_v41 = vld [vmem:[%s14868_s3 + $0x7e0] sm:$0xff]   ;;  %v10807_v27 = vld [vmem:[%s14868_s3 + $0x958] sm:$0xff]  }
 0x2e6   :  { %10135 = vmatprep.subr.bf16.mxu0 %v10783_v32 }
 0x2e8   :  { %10068 = vmatpush3.bf16.msra.mxu1 %v10782_v61  ;;  %v10806_v61 = vld [vmem:[%s14868_s3 + $0x7a0] sm:$0xff]  }
 0x2e9   :  { %10136 = vmatpush3.bf16.msra.mxu0 %v10784_v14  ;;  %10069 = vmatprep.subr.bf16.mxu1 %v10785_v13  ;;  %v10808_v14 = vld [vmem:[%s14868_s3 + $0x918] sm:$0xff]  }
 0x2ea   :  { %10137 = vmatprep.subr.bf16.mxu0 %v10787_v33  ;;  %v10809_v13 = vld [vmem:[%s14868_s3 + $0x7d8] sm:$0xff]  }
 0x2eb   :  { %v10810_v33 = vld [vmem:[%s14868_s3 + $0x798] sm:$0xff]  }
 0x2ec   :  { %10070 = vmatpush3.bf16.msra.mxu1 %v10786_v50  ;;  %v10812_v50 = vld [vmem:[%s14868_s3 + $0x910] sm:$0xff]  }
 0x2ed   :  { %10138 = vmatpush3.bf16.msra.mxu0 %v10788_v28  ;;  %10071 = vmatprep.subr.bf16.mxu1 %v10789_v36  ;;  %v10813_v28 = vld [vmem:[%s14868_s3 + $0x7d0] sm:$0xff]   ;;  %v10815_v36 = vld [vmem:[%s14868_s3 + $0x948] sm:$0xff]  }
 0x2ee   :  { %10167 = vmatprep.subr.bf16.mxu0 %v10791_v45  ;;  %v10814_v45 = vld [vmem:[%s14868_s3 + $0x790] sm:$0xff]  }
 0x2f0   :  { %10072 = vmatpush3.bf16.msra.mxu1 %v10790_v2  ;;  %v9875_v21 = vpop.f32.mrf.mxu0  ;;  %8203 = vmatmul.mubr.bf16.vlgmr.msra.gmra.mxu0 %v3395_v37  ;;  %v10816_v2 = vld [vmem:[%s14868_s3 + $0x908] sm:$0xff]   ;;  %v10819_v37 = vld [vmem:[%s14868_s3 + $0x940] sm:$0xff]  }
 0x2f1   :  { %10168 = vmatpush3.bf16.msra.mxu0 %v10792_v5  ;;  %8282 = vmatprep.mubr.bf16.mxu0 %v3400_v15  ;;  %v10817_v5 = vld [vmem:[%s14868_s3 + $0x7c8] sm:$0xff]   ;;  %v10821_v15 = vld [vmem:[%s14868_s3 + $0x7c0] sm:$0xff]  }
 0x2f2   :  { %v9876_v24 = vpop.f32.mrf.mxu0  ;;  %10101 = vmatprep.subr.bf16.mxu1 %v10793_v23  ;;  %10169 = vmatprep.subr.bf16.mxu0 %v10795_v53  ;;  %v10818_v23 = vld [vmem:[%s14868_s3 + $0x788] sm:$0xff]   ;;  %v10820_v53 = vld [vmem:[%s14868_s3 + $0x900] sm:$0xff]  }
 0x2f3   :  { %v13987_v19 = vadd.f32 %v9876_v24, %v9875_v21  ;;  %8083 = vmatmul.mubr.bf16.vlgmr.msra.gmra.mxu1 %v3389_v63  ;;  %v9809_v29 = vpop.f32.mrf.mxu1  ;;  %v10823_v21 = vld [vmem:[%s14868_s3 + $0xa78] sm:$0xff]   ;;  %v10827_v24 = vld [vmem:[%s14868_s3 + $0xa70] sm:$0xff]  }
 0x2f4   :  { %10102 = vmatpush3.bf16.msra.mxu1 %v10794_v57  ;;  %8162 = vmatprep.mubr.bf16.mxu1 %v3394_v22  ;;  %v9878_v42 = vpop.f32.mrf.mxu0  ;;  %v10822_v57 = vld [vmem:[%s14868_s3 + $0x780] sm:$0xff]   ;;  %v10824_v63 = vld [vmem:[%s14868_s3 + $0xa38] sm:$0xff]   ;;  %v3404_v22 = vpack.c.bf16 %v12967_v39, %v12967_v39  ;;  %v10829_v39 = vld [vmem:[%s14868_s3 + $0x8f0] sm:$0xff]  }
 0x2f5   :  { %v9810_v56 = vpop.f32.mrf.mxu1  ;;  %10170 = vmatpush3.bf16.msra.mxu0 %v10796_v16  ;;  %10103 = vmatprep.subr.bf16.mxu1 %v10797_v49  ;;  %v3399_v16 = vpack.c.bf16 %v12936_v47, %v12936_v47  ;;  %v10825_v49 = vld [vmem:[%s14868_s3 + $0x8f8] sm:$0xff]   ;;  %v3393_v47 = vpack.c.bf16 %v13288_v7, %v13288_v7 }
 0x2f6   :  { %v9811_v55 = vadd.f32 %v9810_v56, %v9809_v29  ;;  %v9879_v52 = vpop.f32.mrf.mxu0  ;;  %10171 = vmatprep.subr.bf16.mxu0 %v10799_v10  ;;  %v10828_v29 = vld [vmem:[%s14868_s3 + $0xa30] sm:$0xff]   ;;  %v10831_v56 = vld [vmem:[%s14868_s3 + $0xa68] sm:$0xff]  }
 0x2f7   :  { %v9812_v9 = vpop.f32.mrf.mxu1  ;;  %v10833_v52 = vld [vmem:[%s14868_s3 + $0x8e8] sm:$0xff]  }
 0x2f8   :  { %v7605_v12 = vadd.f32 %v9811_v55, %v7565_v20  ;;  %10104 = vmatpush3.bf16.msra.mxu1 %v10798_v46  ;;  %v3398_v46 = vpack.c.bf16 %v13294_v0, %v13294_v0  ;;  %v10830_v20 = vld [vmem:[%s14868_s3 + $0x8b0] sm:$0xff]   ;;  %v10832_v0 = vld [vmem:[%s14868_s3 + $0xa28] sm:$0xff]  }
 0x2f9   :  { %v9813_v54 = vpop.f32.mrf.mxu1  ;;  %10172 = vmatpush3.bf16.msra.mxu0 %v10800_v6  ;;  %10105 = vmatprep.subr.bf16.mxu1 %v10801_v58 }
 0x2fa   :  { %10173 = vmatprep.subr.bf16.mxu0 %v10803_v25  ;;  %v14015_v32 = vadd.f32 %v13878_v11, %v7605_v12  ;;  %v10811_v11 = vld [vmem:[%s14868_s3 + $0x950] sm:$0xff]   ;;  %v10835_v12 = vld [vmem:[%s14868_s3 + $0xa60] sm:$0xff]  }
 0x2fc   :  { %10106 = vmatpush3.bf16.msra.mxu1 %v10802_v34 }
 0x2fd   :  { %10174 = vmatpush3.bf16.msra.mxu0 %v10804_v26  ;;  %10107 = vmatprep.subr.bf16.mxu1 %v10805_v41  ;;  %v10834_v26 = vld [vmem:[%s14868_s3 + $0x8a8] sm:$0xff]  }
 0x2fe   :  { %10175 = vmatprep.subr.bf16.mxu0 %v10807_v27  ;;  %v10836_v27 = vld [vmem:[%s14868_s3 + $0xa20] sm:$0xff]  }
 0x300   :  { %10108 = vmatpush3.bf16.msra.mxu1 %v10806_v61  ;;  %v10837_v61 = vld [vmem:[%s14868_s3 + $0x8e0] sm:$0xff]  }
 0x301   :  { %10176 = vmatpush3.bf16.msra.mxu0 %v10808_v14  ;;  %10109 = vmatprep.subr.bf16.mxu1 %v10809_v13  ;;  %v10838_v13 = vld [vmem:[%s14868_s3 + $0x8a0] sm:$0xff]  }
 0x302   :  { %10177 = vmatprep.subr.bf16.mxu0 %v10811_v11  ;;  %v10840_v11 = vld [vmem:[%s14868_s3 + $0xa18] sm:$0xff]  }
 0x304   :  { %10110 = vmatpush3.bf16.msra.mxu1 %v10810_v33  ;;  %v10841_v33 = vld [vmem:[%s14868_s3 + $0x8d8] sm:$0xff]  }
 0x305   :  { %10178 = vmatpush3.bf16.msra.mxu0 %v10812_v50  ;;  %10111 = vmatprep.subr.bf16.mxu1 %v10813_v28  ;;  %v10842_v50 = vld [vmem:[%s14868_s3 + $0x898] sm:$0xff]   ;;  %v10844_v28 = vld [vmem:[%s14868_s3 + $0xa10] sm:$0xff]  }
 0x306   :  { %10179 = vmatprep.subr.bf16.mxu0 %v10815_v36  ;;  %v10845_v36 = vld [vmem:[%s14868_s3 + $0x8d0] sm:$0xff]  }
 0x308   :  { %10112 = vmatpush3.bf16.msra.mxu1 %v10814_v45  ;;  %v10847_v45 = vld [vmem:[%s14868_s3 + $0xa48] sm:$0xff]  }
 0x309   :  { %10180 = vmatpush3.bf16.msra.mxu0 %v10816_v2  ;;  %10113 = vmatprep.subr.bf16.mxu1 %v10817_v5  ;;  %v10846_v2 = vld [vmem:[%s14868_s3 + $0x890] sm:$0xff]   ;;  %v10848_v5 = vld [vmem:[%s14868_s3 + $0xa08] sm:$0xff]  }
 0x30a   :  { %10181 = vmatprep.subr.bf16.mxu0 %v10819_v37  ;;  %v10849_v37 = vld [vmem:[%s14868_s3 + $0x8c8] sm:$0xff]  }
 0x30c   :  { %10114 = vmatpush3.bf16.msra.mxu1 %v10818_v23  ;;  %v10851_v23 = vld [vmem:[%s14868_s3 + $0xa40] sm:$0xff]  }
 0x30d   :  { %10182 = vmatpush3.bf16.msra.mxu0 %v10820_v53  ;;  %10115 = vmatprep.subr.bf16.mxu1 %v10821_v15  ;;  %v10850_v53 = vld [vmem:[%s14868_s3 + $0x888] sm:$0xff]   ;;  %v10852_v15 = vld [vmem:[%s14868_s3 + $0xa00] sm:$0xff]  }
 0x30e   :  { %10211 = vmatprep.subr.bf16.mxu0 %v10823_v21  ;;  %v10853_v21 = vld [vmem:[%s14868_s3 + $0x8c0] sm:$0xff]  }
 0x310   :  { %10116 = vmatpush3.bf16.msra.mxu1 %v10822_v57  ;;  %v9919_v10 = vpop.f32.mrf.mxu0  ;;  %8283 = vmatmul.mubr.bf16.vlgmr.msra.gmra.mxu0 %v3399_v16  ;;  %v10855_v57 = vld [vmem:[%s14868_s3 + $0xb78] sm:$0xff]  }
 0x311   :  { %10212 = vmatpush3.bf16.msra.mxu0 %v10824_v63  ;;  %8362 = vmatprep.mubr.bf16.mxu0 %v3404_v22  ;;  %v10854_v63 = vld [vmem:[%s14868_s3 + $0x880] sm:$0xff]   ;;  %v10856_v16 = vld [vmem:[%s14868_s3 + $0xb38] sm:$0xff]   ;;  %v10859_v22 = vld [vmem:[%s14868_s3 + $0xb70] sm:$0xff]  }
 0x312   :  { %v9920_v42 = vpop.f32.mrf.mxu0  ;;  %10145 = vmatprep.subr.bf16.mxu1 %v10825_v49  ;;  %10213 = vmatprep.subr.bf16.mxu0 %v10827_v24  ;;  %v3403_v49 = vpack.c.bf16 %v12975_v60, %v12975_v60  ;;  %v10857_v24 = vld [vmem:[%s14868_s3 + $0x9f8] sm:$0xff]   ;;  %v3397_v60 = vpack.c.bf16 %v13307_v4, %v13307_v4 }
 0x313   :  { %v9853_v6 = vpop.f32.mrf.mxu1  ;;  %v14097_v7 = vadd.f32 %v9920_v42, %v9919_v10  ;;  %8163 = vmatmul.mubr.bf16.vlgmr.msra.gmra.mxu1 %v3393_v47  ;;  %v3408_v10 = vpack.c.bf16 %v12978_v8, %v12978_v8  ;;  %v10858_v47 = vld [vmem:[%s14868_s3 + $0x9b8] sm:$0xff]   ;;  %v10861_v8 = vld [vmem:[%s14868_s3 + $0x9f0] sm:$0xff]   ;;  %v3402_v42 = vpack.c.bf16 %v13298_v44, %v13298_v44  ;;  %v10864_v44 = vld [vmem:[%s14868_s3 + $0xb28] sm:$0xff]  }
 0x314   :  { %10146 = vmatpush3.bf16.msra.mxu1 %v10826_v43  ;;  %8242 = vmatprep.mubr.bf16.mxu1 %v3398_v46  ;;  %v9922_v58 = vpop.f32.mrf.mxu0  ;;  %v10863_v46 = vld [vmem:[%s14868_s3 + $0xb68] sm:$0xff]  }
 0x315   :  { %v9854_v55 = vpop.f32.mrf.mxu1  ;;  %10214 = vmatpush3.bf16.msra.mxu0 %v10828_v29  ;;  %10147 = vmatprep.subr.bf16.mxu1 %v10829_v39  ;;  %v10860_v29 = vld [vmem:[%s14868_s3 + $0xb30] sm:$0xff]  }
 0x316   :  { %v9855_v25 = vadd.f32 %v9854_v55, %v9853_v6  ;;  %v9923_v9 = vpop.f32.mrf.mxu0  ;;  %10215 = vmatprep.subr.bf16.mxu0 %v10831_v56  ;;  %v10862_v58 = vld [vmem:[%s14868_s3 + $0x9b0] sm:$0xff]   ;;  %v10865_v55 = vld [vmem:[%s14868_s3 + $0x9e8] sm:$0xff]  }
 0x317   :  { %v9856_v34 = vpop.f32.mrf.mxu1 }
 0x318   :  { %v7685_v54 = vadd.f32 %v9855_v25, %v14015_v32  ;;  %10148 = vmatpush3.bf16.msra.mxu1 %v10830_v20  ;;  %v10839_v32 = vld [vmem:[%s14868_s3 + $0xa58] sm:$0xff]   ;;  %v10867_v25 = vld [vmem:[%s14868_s3 + $0xb60] sm:$0xff]   ;;  %v10866_v34 = vld [vmem:[%s14868_s3 + $0x9a8] sm:$0xff]  }
 0x319   :  { %v9857_v41 = vpop.f32.mrf.mxu1  ;;  %10216 = vmatpush3.bf16.msra.mxu0 %v10832_v0  ;;  %10149 = vmatprep.subr.bf16.mxu1 %v10833_v52 }
 0x31a   :  { %10217 = vmatprep.subr.bf16.mxu0 %v10835_v12  ;;  %v14125_v14 = vadd.f32 %v13987_v19, %v7685_v54  ;;  %v10843_v19 = vld [vmem:[%s14868_s3 + $0xa50] sm:$0xff]   ;;  %v10869_v41 = vld [vmem:[%s14868_s3 + $0x9e0] sm:$0xff]  }
 0x31c   :  { %10150 = vmatpush3.bf16.msra.mxu1 %v10834_v26  ;;  %v10868_v26 = vld [vmem:[%s14868_s3 + $0xb20] sm:$0xff]  }
 0x31d   :  { %10218 = vmatpush3.bf16.msra.mxu0 %v10836_v27  ;;  %10151 = vmatprep.subr.bf16.mxu1 %v10837_v61  ;;  %v10871_v27 = vld [vmem:[%s14868_s3 + $0xb58] sm:$0xff]  }
 0x31e   :  { %10219 = vmatprep.subr.bf16.mxu0 %v10839_v32  ;;  %v10870_v32 = vld [vmem:[%s14868_s3 + $0x9a0] sm:$0xff]  }
 0x320   :  { %10152 = vmatpush3.bf16.msra.mxu1 %v10838_v13  ;;  %v10873_v13 = vld [vmem:[%s14868_s3 + $0x9d8] sm:$0xff]  }
 0x321   :  { %10220 = vmatpush3.bf16.msra.mxu0 %v10840_v11  ;;  %10153 = vmatprep.subr.bf16.mxu1 %v10841_v33  ;;  %v10874_v11 = vld [vmem:[%s14868_s3 + $0x998] sm:$0xff]   ;;  %v10876_v33 = vld [vmem:[%s14868_s3 + $0xb10] sm:$0xff]  }
 0x322   :  { %10221 = vmatprep.subr.bf16.mxu0 %v10843_v19  ;;  %v10877_v19 = vld [vmem:[%s14868_s3 + $0x9d0] sm:$0xff]  }
 0x324   :  { %10154 = vmatpush3.bf16.msra.mxu1 %v10842_v50  ;;  %v10879_v50 = vld [vmem:[%s14868_s3 + $0xb48] sm:$0xff]  }
 0x325   :  { %10222 = vmatpush3.bf16.msra.mxu0 %v10844_v28  ;;  %10155 = vmatprep.subr.bf16.mxu1 %v10845_v36  ;;  %v10878_v28 = vld [vmem:[%s14868_s3 + $0x990] sm:$0xff]   ;;  %v10880_v36 = vld [vmem:[%s14868_s3 + $0xb08] sm:$0xff]  }
 0x326   :  { %10223 = vmatprep.subr.bf16.mxu0 %v10847_v45  ;;  %v10881_v45 = vld [vmem:[%s14868_s3 + $0x9c8] sm:$0xff]  }
 0x328   :  { %10156 = vmatpush3.bf16.msra.mxu1 %v10846_v2  ;;  %v10883_v2 = vld [vmem:[%s14868_s3 + $0xb40] sm:$0xff]  }
 0x329   :  { %10224 = vmatpush3.bf16.msra.mxu0 %v10848_v5  ;;  %10157 = vmatprep.subr.bf16.mxu1 %v10849_v37  ;;  %v10882_v5 = vld [vmem:[%s14868_s3 + $0x988] sm:$0xff]   ;;  %v10884_v37 = vld [vmem:[%s14868_s3 + $0xb00] sm:$0xff]  }
 0x32a   :  { %10225 = vmatprep.subr.bf16.mxu0 %v10851_v23  ;;  %v10885_v23 = vld [vmem:[%s14868_s3 + $0x9c0] sm:$0xff]  }
 0x32c   :  { %10158 = vmatpush3.bf16.msra.mxu1 %v10850_v53  ;;  %v10887_v53 = vld [vmem:[%s14868_s3 + $0xc78] sm:$0xff]  }
 0x32d   :  { %10226 = vmatpush3.bf16.msra.mxu0 %v10852_v15  ;;  %10159 = vmatprep.subr.bf16.mxu1 %v10853_v21  ;;  %v10886_v15 = vld [vmem:[%s14868_s3 + $0x980] sm:$0xff]   ;;  %v10888_v21 = vld [vmem:[%s14868_s3 + $0xc38] sm:$0xff]  }
 0x32e   :  { %10255 = vmatprep.subr.bf16.mxu0 %v10855_v57  ;;  %v14922_v57 = vld [vmem:[#allocation24_spill] sm:$0xff] }
 0x330   :  { %10160 = vmatpush3.bf16.msra.mxu1 %v10854_v63  ;;  %v9963_v43 = vpop.f32.mrf.mxu0  ;;  %8363 = vmatmul.mubr.bf16.vlgmr.msra.gmra.mxu0 %v3403_v49  ;;  %v3407_v63 = vpack.c.bf16 %v14922_v57, %v14922_v57  ;;  %v10891_v49 = vld [vmem:[%s14868_s3 + $0xc70] sm:$0xff]  }
 0x331   :  { %10256 = vmatpush3.bf16.msra.mxu0 %v10856_v16  ;;  %8442 = vmatprep.mubr.bf16.mxu0 %v3408_v10  ;;  %v10889_v16 = vld [vmem:[%s14868_s3 + $0xaf8] sm:$0xff]   ;;  %v10923_v57 = vld [vmem:[%s14868_s3 + $0xd70] sm:$0xff]  }
 0x332   :  { %v9964_v39 = vpop.f32.mrf.mxu0  ;;  %10189 = vmatprep.subr.bf16.mxu1 %v10857_v24  ;;  %10257 = vmatprep.subr.bf16.mxu0 %v10859_v22  ;;  %v14923_v24 = vld [vmem:[#allocation25_spill] sm:$0xff] }
 0x333   :  { %v9897_v56 = vpop.f32.mrf.mxu1  ;;  %v14207_v4 = vadd.f32 %v9964_v39, %v9963_v43  ;;  %8243 = vmatmul.mubr.bf16.vlgmr.msra.gmra.mxu1 %v3397_v60  ;;  %v3412_v22 = vpack.c.bf16 %v14923_v24, %v14923_v24  ;;  %v10890_v43 = vld [vmem:[%s14868_s3 + $0xab8] sm:$0xff]   ;;  %v10892_v60 = vld [vmem:[%s14868_s3 + $0xc30] sm:$0xff]   ;;  %v3406_v39 = vpack.c.bf16 %v13333_v40, %v13333_v40  ;;  %v10896_v40 = vld [vmem:[%s14868_s3 + $0xc28] sm:$0xff]  }
 0x334   :  { %10190 = vmatpush3.bf16.msra.mxu1 %v10858_v47  ;;  %8322 = vmatprep.mubr.bf16.mxu1 %v3402_v42  ;;  %v9966_v6 = vpop.f32.mrf.mxu0  ;;  %v3401_v47 = vpack.c.bf16 %v13311_v38, %v13311_v38  ;;  %v10895_v42 = vld [vmem:[%s14868_s3 + $0xc68] sm:$0xff]   ;;  %v10922_v24 = vld [vmem:[%s14868_s3 + $0xbb8] sm:$0xff]  }
 0x335   :  { %v9898_v20 = vpop.f32.mrf.mxu1  ;;  %10258 = vmatpush3.bf16.msra.mxu0 %v10860_v29  ;;  %10191 = vmatprep.subr.bf16.mxu1 %v10861_v8  ;;  %v10893_v29 = vld [vmem:[%s14868_s3 + $0xaf0] sm:$0xff]  }
 0x336   :  { %v9899_v0 = vadd.f32 %v9898_v20, %v9897_v56  ;;  %v9967_v52 = vpop.f32.mrf.mxu0  ;;  %10259 = vmatprep.subr.bf16.mxu0 %v10863_v46  ;;  %v10894_v6 = vld [vmem:[%s14868_s3 + $0xab0] sm:$0xff]   ;;  %v10897_v20 = vld [vmem:[%s14868_s3 + $0xae8] sm:$0xff]  }
 0x337   :  { %v9900_v9 = vpop.f32.mrf.mxu1 }
 0x338   :  { %v7765_v12 = vadd.f32 %v9899_v0, %v14125_v14  ;;  %10192 = vmatpush3.bf16.msra.mxu1 %v10862_v58  ;;  %v10872_v14 = vld [vmem:[%s14868_s3 + $0xb18] sm:$0xff]   ;;  %v10899_v0 = vld [vmem:[%s14868_s3 + $0xc60] sm:$0xff]   ;;  %v10898_v9 = vld [vmem:[%s14868_s3 + $0xaa8] sm:$0xff]  }
 0x339   :  { %v9901_v54 = vpop.f32.mrf.mxu1  ;;  %10260 = vmatpush3.bf16.msra.mxu0 %v10864_v44  ;;  %10193 = vmatprep.subr.bf16.mxu1 %v10865_v55 }
 0x33a   :  { %10261 = vmatprep.subr.bf16.mxu0 %v10867_v25  ;;  %v14235_v61 = vadd.f32 %v14097_v7, %v7765_v12  ;;  %v10875_v7 = vld [vmem:[%s14868_s3 + $0xb50] sm:$0xff]   ;;  %v10901_v54 = vld [vmem:[%s14868_s3 + $0xae0] sm:$0xff]  }
 0x33c   :  { %10194 = vmatpush3.bf16.msra.mxu1 %v10866_v34  ;;  %v10900_v34 = vld [vmem:[%s14868_s3 + $0xc20] sm:$0xff]  }
 0x33d   :  { %10262 = vmatpush3.bf16.msra.mxu0 %v10868_v26  ;;  %10195 = vmatprep.subr.bf16.mxu1 %v10869_v41  ;;  %v10903_v26 = vld [vmem:[%s14868_s3 + $0xc58] sm:$0xff]  }
 0x33e   :  { %10263 = vmatprep.subr.bf16.mxu0 %v10871_v27  ;;  %v10902_v27 = vld [vmem:[%s14868_s3 + $0xaa0] sm:$0xff]  }
 0x340   :  { %10196 = vmatpush3.bf16.msra.mxu1 %v10870_v32  ;;  %v10905_v32 = vld [vmem:[%s14868_s3 + $0xad8] sm:$0xff]  }
 0x341   :  { %10264 = vmatpush3.bf16.msra.mxu0 %v10872_v14  ;;  %10197 = vmatprep.subr.bf16.mxu1 %v10873_v13  ;;  %v10906_v14 = vld [vmem:[%s14868_s3 + $0xa98] sm:$0xff]   ;;  %v10908_v13 = vld [vmem:[%s14868_s3 + $0xc10] sm:$0xff]  }
 0x342   :  { %10265 = vmatprep.subr.bf16.mxu0 %v10875_v7  ;;  %v10909_v7 = vld [vmem:[%s14868_s3 + $0xad0] sm:$0xff]  }
 0x344   :  { %10198 = vmatpush3.bf16.msra.mxu1 %v10874_v11  ;;  %v10911_v11 = vld [vmem:[%s14868_s3 + $0xc48] sm:$0xff]  }
 0x345   :  { %10266 = vmatpush3.bf16.msra.mxu0 %v10876_v33  ;;  %10199 = vmatprep.subr.bf16.mxu1 %v10877_v19  ;;  %v10910_v33 = vld [vmem:[%s14868_s3 + $0xa90] sm:$0xff]   ;;  %v10912_v19 = vld [vmem:[%s14868_s3 + $0xc08] sm:$0xff]  }
 0x346   :  { %10267 = vmatprep.subr.bf16.mxu0 %v10879_v50  ;;  %v10913_v50 = vld [vmem:[%s14868_s3 + $0xac8] sm:$0xff]  }
 0x348   :  { %10200 = vmatpush3.bf16.msra.mxu1 %v10878_v28  ;;  %v10915_v28 = vld [vmem:[%s14868_s3 + $0xc40] sm:$0xff]  }
 0x349   :  { %10268 = vmatpush3.bf16.msra.mxu0 %v10880_v36  ;;  %10201 = vmatprep.subr.bf16.mxu1 %v10881_v45  ;;  %v10914_v36 = vld [vmem:[%s14868_s3 + $0xa88] sm:$0xff]   ;;  %v10916_v45 = vld [vmem:[%s14868_s3 + $0xc00] sm:$0xff]  }
 0x34a   :  { %10269 = vmatprep.subr.bf16.mxu0 %v10883_v2  ;;  %v10917_v2 = vld [vmem:[%s14868_s3 + $0xac0] sm:$0xff]  }
 0x34c   :  { %10202 = vmatpush3.bf16.msra.mxu1 %v10882_v5  ;;  %v10919_v5 = vld [vmem:[%s14868_s3 + $0xd78] sm:$0xff]  }
 0x34d   :  { %10270 = vmatpush3.bf16.msra.mxu0 %v10884_v37  ;;  %10203 = vmatprep.subr.bf16.mxu1 %v10885_v23  ;;  %v10918_v37 = vld [vmem:[%s14868_s3 + $0xa80] sm:$0xff]   ;;  %v10920_v23 = vld [vmem:[%s14868_s3 + $0xd38] sm:$0xff]  }
 0x34e   :  { %10299 = vmatprep.subr.bf16.mxu0 %v10887_v53  ;;  %v14924_v53 = vld [vmem:[#allocation26_spill] sm:$0xff] }
 0x350   :  { %10204 = vmatpush3.bf16.msra.mxu1 %v10886_v15  ;;  %v10007_v10 = vpop.f32.mrf.mxu0  ;;  %8443 = vmatmul.mubr.bf16.vlgmr.msra.gmra.mxu0 %v3407_v63  ;;  %v3411_v15 = vpack.c.bf16 %v14924_v53, %v14924_v53  ;;  %v14925_v63 = vld [vmem:[#allocation27_spill] sm:$0xff] }
 0x351   :  { %10300 = vmatpush3.bf16.msra.mxu0 %v10888_v21  ;;  %8522 = vmatprep.mubr.bf16.mxu0 %v3412_v22  ;;  %v10921_v21 = vld [vmem:[%s14868_s3 + $0xbf8] sm:$0xff]   ;;  %v3405_v22 = vpack.c.bf16 %v13336_v59, %v13336_v59 }
 0x352   :  { %v10008_v8 = vpop.f32.mrf.mxu0  ;;  %10233 = vmatprep.subr.bf16.mxu1 %v10889_v16  ;;  %10301 = vmatprep.subr.bf16.mxu0 %v10891_v49  ;;  %v3416_v16 = vpack.c.bf16 %v14925_v63, %v14925_v63  ;;  %v10956_v63 = vld [vmem:[%s14868_s3 + $0xe30] sm:$0xff]  }
 0x353   :  { %v9941_v46 = vpop.f32.mrf.mxu1  ;;  %v14317_v38 = vadd.f32 %v10008_v8, %v10007_v10  ;;  %8323 = vmatmul.mubr.bf16.vlgmr.msra.gmra.mxu1 %v3401_v47  ;;  %v10924_v10 = vld [vmem:[%s14868_s3 + $0xd30] sm:$0xff]  }
 0x354   :  { %10234 = vmatpush3.bf16.msra.mxu1 %v10890_v43  ;;  %8402 = vmatprep.mubr.bf16.mxu1 %v3406_v39  ;;  %v10010_v56 = vpop.f32.mrf.mxu0  ;;  %v10925_v43 = vld [vmem:[%s14868_s3 + $0xbf0] sm:$0xff]  }
 0x355   :  { %v9942_v58 = vpop.f32.mrf.mxu1  ;;  %10302 = vmatpush3.bf16.msra.mxu0 %v10892_v60  ;;  %10235 = vmatprep.subr.bf16.mxu1 %v10893_v29  ;;  %v3410_v60 = vpack.c.bf16 %v13344_v31, %v13344_v31  ;;  %v10927_v29 = vld [vmem:[%s14868_s3 + $0xd68] sm:$0xff]  }
 0x356   :  { %v9943_v44 = vadd.f32 %v9942_v58, %v9941_v46  ;;  %v10011_v55 = vpop.f32.mrf.mxu0  ;;  %10303 = vmatprep.subr.bf16.mxu0 %v10895_v42  ;;  %v10926_v42 = vld [vmem:[%s14868_s3 + $0xbb0] sm:$0xff]   ;;  %v10928_v31 = vld [vmem:[%s14868_s3 + $0xd28] sm:$0xff]  }
 0x357   :  { %v9944_v52 = vpop.f32.mrf.mxu1  ;;  %v10929_v56 = vld [vmem:[%s14868_s3 + $0xbe8] sm:$0xff]  }
 0x358   :  { %v7845_v25 = vadd.f32 %v9943_v44, %v14235_v61  ;;  %10236 = vmatpush3.bf16.msra.mxu1 %v10894_v6  ;;  %v10904_v61 = vld [vmem:[%s14868_s3 + $0xc18] sm:$0xff]   ;;  %v10930_v55 = vld [vmem:[%s14868_s3 + $0xba8] sm:$0xff]   ;;  %v10932_v52 = vld [vmem:[%s14868_s3 + $0xd20] sm:$0xff]  }
 0x359   :  { %v9945_v12 = vpop.f32.mrf.mxu1  ;;  %10304 = vmatpush3.bf16.msra.mxu0 %v10896_v40  ;;  %10237 = vmatprep.subr.bf16.mxu1 %v10897_v20  ;;  %v10931_v40 = vld [vmem:[%s14868_s3 + $0xd60] sm:$0xff]  }
 0x35a   :  { %10305 = vmatprep.subr.bf16.mxu0 %v10899_v0  ;;  %v14345_v41 = vadd.f32 %v14207_v4, %v7845_v25  ;;  %v10907_v4 = vld [vmem:[%s14868_s3 + $0xc50] sm:$0xff]   ;;  %v10933_v25 = vld [vmem:[%s14868_s3 + $0xbe0] sm:$0xff]  }
 0x35c   :  { %10238 = vmatpush3.bf16.msra.mxu1 %v10898_v9  ;;  %v10935_v9 = vld [vmem:[%s14868_s3 + $0xd58] sm:$0xff]  }
 0x35d   :  { %10306 = vmatpush3.bf16.msra.mxu0 %v10900_v34  ;;  %10239 = vmatprep.subr.bf16.mxu1 %v10901_v54  ;;  %v10934_v34 = vld [vmem:[%s14868_s3 + $0xba0] sm:$0xff]   ;;  %v10936_v54 = vld [vmem:[%s14868_s3 + $0xd18] sm:$0xff]  }
 0x35e   :  { %10307 = vmatprep.subr.bf16.mxu0 %v10903_v26  ;;  %v10937_v26 = vld [vmem:[%s14868_s3 + $0xbd8] sm:$0xff]  }
 0x360   :  { %10240 = vmatpush3.bf16.msra.mxu1 %v10902_v27  ;;  %v10940_v27 = vld [vmem:[%s14868_s3 + $0xd10] sm:$0xff]  }
 0x361   :  { %10308 = vmatpush3.bf16.msra.mxu0 %v10904_v61  ;;  %10241 = vmatprep.subr.bf16.mxu1 %v10905_v32  ;;  %v10941_v61 = vld [vmem:[%s14868_s3 + $0xbd0] sm:$0xff]   ;;  %v10943_v32 = vld [vmem:[%s14868_s3 + $0xd48] sm:$0xff]  }
 0x362   :  { %10309 = vmatprep.subr.bf16.mxu0 %v10907_v4  ;;  %v10942_v4 = vld [vmem:[%s14868_s3 + $0xb90] sm:$0xff]  }
 0x364   :  { %10242 = vmatpush3.bf16.msra.mxu1 %v10906_v14  ;;  %v10944_v14 = vld [vmem:[%s14868_s3 + $0xd08] sm:$0xff]  }
 0x365   :  { %10310 = vmatpush3.bf16.msra.mxu0 %v10908_v13  ;;  %10243 = vmatprep.subr.bf16.mxu1 %v10909_v7  ;;  %v10945_v13 = vld [vmem:[%s14868_s3 + $0xbc8] sm:$0xff]   ;;  %v10947_v7 = vld [vmem:[%s14868_s3 + $0xd40] sm:$0xff]  }
 0x366   :  { %10311 = vmatprep.subr.bf16.mxu0 %v10911_v11  ;;  %v10946_v11 = vld [vmem:[%s14868_s3 + $0xb88] sm:$0xff]  }
 0x368   :  { %10244 = vmatpush3.bf16.msra.mxu1 %v10910_v33  ;;  %v10948_v33 = vld [vmem:[%s14868_s3 + $0xd00] sm:$0xff]  }
 0x369   :  { %10312 = vmatpush3.bf16.msra.mxu0 %v10912_v19  ;;  %10245 = vmatprep.subr.bf16.mxu1 %v10913_v50  ;;  %v10949_v19 = vld [vmem:[%s14868_s3 + $0xbc0] sm:$0xff]   ;;  %v10951_v50 = vld [vmem:[%s14868_s3 + $0xe78] sm:$0xff]  }
 0x36a   :  { %10313 = vmatprep.subr.bf16.mxu0 %v10915_v28  ;;  %v10950_v28 = vld [vmem:[%s14868_s3 + $0xb80] sm:$0xff]  }
 0x36c   :  { %10246 = vmatpush3.bf16.msra.mxu1 %v10914_v36  ;;  %v10952_v36 = vld [vmem:[%s14868_s3 + $0xe38] sm:$0xff]  }
 0x36d   :  { %10314 = vmatpush3.bf16.msra.mxu0 %v10916_v45  ;;  %10247 = vmatprep.subr.bf16.mxu1 %v10917_v2  ;;  %v14926_v45 = vld [vmem:[#allocation28_spill] sm:$0xff] }
 0x36e   :  { %10343 = vmatprep.subr.bf16.mxu0 %v10919_v5  ;;  %v3415_v2 = vpack.c.bf16 %v14926_v45, %v14926_v45  ;;  %v10953_v5 = vld [vmem:[%s14868_s3 + $0xcf8] sm:$0xff]  }
 0x36f   :  { %v10986_v45 = vld [vmem:[%s14868_s3 + $0xdb8] sm:$0xff]  }
 0x370   :  { %10248 = vmatpush3.bf16.msra.mxu1 %v10918_v37  ;;  %v10051_v49 = vpop.f32.mrf.mxu0  ;;  %8523 = vmatmul.mubr.bf16.vlgmr.msra.gmra.mxu0 %v3411_v15  ;;  %v10955_v37 = vld [vmem:[%s14868_s3 + $0xe70] sm:$0xff]  }
 0x371   :  { %10344 = vmatpush3.bf16.msra.mxu0 %v10920_v23  ;;  %8602 = vmatprep.mubr.bf16.mxu0 %v3416_v16  ;;  %v14927_v23 = vld [vmem:[#allocation29_spill] sm:$0xff]  ;;  %v10957_v16 = vld [vmem:[%s14868_s3 + $0xcf0] sm:$0xff]  }
 0x372   :  { %v10052_v47 = vpop.f32.mrf.mxu0  ;;  %10277 = vmatprep.subr.bf16.mxu1 %v10921_v21  ;;  %10345 = vmatprep.subr.bf16.mxu0 %v10923_v57  ;;  %v3420_v53 = vpack.c.bf16 %v14927_v23, %v14927_v23  ;;  %v10954_v21 = vld [vmem:[%s14868_s3 + $0xcb8] sm:$0xff]   ;;  %v3409_v57 = vpack.c.bf16 %v13347_v48, %v13347_v48 }
 0x373   :  { %v9985_v8 = vpop.f32.mrf.mxu1  ;;  %v14427_v59 = vadd.f32 %v10052_v47, %v10051_v49  ;;  %8403 = vmatmul.mubr.bf16.vlgmr.msra.gmra.mxu1 %v3405_v22  ;;  %v10959_v22 = vld [vmem:[%s14868_s3 + $0xe68] sm:$0xff]   ;;  %v10958_v47 = vld [vmem:[%s14868_s3 + $0xcb0] sm:$0xff]  }
 0x374   :  { %10278 = vmatpush3.bf16.msra.mxu1 %v10922_v24  ;;  %8482 = vmatprep.mubr.bf16.mxu1 %v3410_v60  ;;  %v10054_v39 = vpop.f32.mrf.mxu0  ;;  %v3414_v24 = vpack.c.bf16 %v13358_v1, %v13358_v1  ;;  %v10960_v1 = vld [vmem:[%s14868_s3 + $0xe28] sm:$0xff]  }
 0x375   :  { %v9986_v46 = vpop.f32.mrf.mxu1  ;;  %10346 = vmatpush3.bf16.msra.mxu0 %v10924_v10  ;;  %10279 = vmatprep.subr.bf16.mxu1 %v10925_v43 }
 0x376   :  { %v9987_v6 = vadd.f32 %v9986_v46, %v9985_v8  ;;  %v10055_v58 = vpop.f32.mrf.mxu0  ;;  %10347 = vmatprep.subr.bf16.mxu0 %v10927_v29  ;;  %v10961_v29 = vld [vmem:[%s14868_s3 + $0xce8] sm:$0xff]  }
 0x377   :  { %v9988_v20 = vpop.f32.mrf.mxu1  ;;  %v10964_v58 = vld [vmem:[%s14868_s3 + $0xe20] sm:$0xff]  }
 0x378   :  { %v7925_v44 = vadd.f32 %v9987_v6, %v14345_v41  ;;  %10280 = vmatpush3.bf16.msra.mxu1 %v10926_v42  ;;  %v10938_v41 = vld [vmem:[%s14868_s3 + $0xb98] sm:$0xff]   ;;  %v10963_v42 = vld [vmem:[%s14868_s3 + $0xe60] sm:$0xff]  }
 0x379   :  { %v9989_v0 = vpop.f32.mrf.mxu1  ;;  %10348 = vmatpush3.bf16.msra.mxu0 %v10928_v31  ;;  %10281 = vmatprep.subr.bf16.mxu1 %v10929_v56  ;;  %v10962_v56 = vld [vmem:[%s14868_s3 + $0xca8] sm:$0xff]   ;;  %v10967_v20 = vld [vmem:[%s14868_s3 + $0xe58] sm:$0xff]  }
 0x37a   :  { %10349 = vmatprep.subr.bf16.mxu0 %v10931_v40  ;;  %v14455_v12 = vadd.f32 %v14317_v38, %v7925_v44  ;;  %v10939_v38 = vld [vmem:[%s14868_s3 + $0xd50] sm:$0xff]   ;;  %v10965_v40 = vld [vmem:[%s14868_s3 + $0xce0] sm:$0xff]   ;;  %v10968_v0 = vld [vmem:[%s14868_s3 + $0xe18] sm:$0xff]  }
 0x37c   :  { %10282 = vmatpush3.bf16.msra.mxu1 %v10930_v55  ;;  %v10966_v55 = vld [vmem:[%s14868_s3 + $0xca0] sm:$0xff]  }
 0x37d   :  { %10350 = vmatpush3.bf16.msra.mxu0 %v10932_v52  ;;  %10283 = vmatprep.subr.bf16.mxu1 %v10933_v25  ;;  %v10969_v52 = vld [vmem:[%s14868_s3 + $0xcd8] sm:$0xff]  }
 0x37e   :  { %10351 = vmatprep.subr.bf16.mxu0 %v10935_v9  ;;  %v10970_v25 = vld [vmem:[%s14868_s3 + $0xc98] sm:$0xff]   ;;  %v10972_v9 = vld [vmem:[%s14868_s3 + $0xe10] sm:$0xff]  }
 0x380   :  { %10284 = vmatpush3.bf16.msra.mxu1 %v10934_v34  ;;  %v10975_v34 = vld [vmem:[%s14868_s3 + $0xe48] sm:$0xff]  }
 0x381   :  { %10352 = vmatpush3.bf16.msra.mxu0 %v10936_v54  ;;  %10285 = vmatprep.subr.bf16.mxu1 %v10937_v26  ;;  %v10974_v54 = vld [vmem:[%s14868_s3 + $0xc90] sm:$0xff]   ;;  %v10976_v26 = vld [vmem:[%s14868_s3 + $0xe08] sm:$0xff]  }
 0x382   :  { %10353 = vmatprep.subr.bf16.mxu0 %v10939_v38  ;;  %v10977_v38 = vld [vmem:[%s14868_s3 + $0xcc8] sm:$0xff]  }
 0x384   :  { %10286 = vmatpush3.bf16.msra.mxu1 %v10938_v41  ;;  %v10979_v41 = vld [vmem:[%s14868_s3 + $0xe40] sm:$0xff]  }
 0x385   :  { %10354 = vmatpush3.bf16.msra.mxu0 %v10940_v27  ;;  %10287 = vmatprep.subr.bf16.mxu1 %v10941_v61  ;;  %v10978_v27 = vld [vmem:[%s14868_s3 + $0xc88] sm:$0xff]   ;;  %v10980_v61 = vld [vmem:[%s14868_s3 + $0xe00] sm:$0xff]  }
 0x386   :  { %10355 = vmatprep.subr.bf16.mxu0 %v10943_v32  ;;  %v10981_v32 = vld [vmem:[%s14868_s3 + $0xcc0] sm:$0xff]  }
 0x388   :  { %10288 = vmatpush3.bf16.msra.mxu1 %v10942_v4  ;;  %v10983_v4 = vld [vmem:[%s14868_s3 + $0xf78] sm:$0xff]  }
 0x389   :  { %10356 = vmatpush3.bf16.msra.mxu0 %v10944_v14  ;;  %10289 = vmatprep.subr.bf16.mxu1 %v10945_v13  ;;  %v10982_v14 = vld [vmem:[%s14868_s3 + $0xc80] sm:$0xff]   ;;  %v10984_v13 = vld [vmem:[%s14868_s3 + $0xf38] sm:$0xff]  }
 0x38a   :  { %10357 = vmatprep.subr.bf16.mxu0 %v10947_v7  ;;  %v14928_v7 = vld [vmem:[#allocation30_spill] sm:$0xff] }
 0x38c   :  { %10290 = vmatpush3.bf16.msra.mxu1 %v10946_v11  ;;  %v3419_v11 = vpack.c.bf16 %v14928_v7, %v14928_v7 }
 0x38d   :  { %10358 = vmatpush3.bf16.msra.mxu0 %v10948_v33  ;;  %10291 = vmatprep.subr.bf16.mxu1 %v10949_v19  ;;  %v10985_v33 = vld [vmem:[%s14868_s3 + $0xdf8] sm:$0xff]   ;;  %v10987_v19 = vld [vmem:[%s14868_s3 + $0xf70] sm:$0xff]  }
 0x38e   :  { %10387 = vmatprep.subr.bf16.mxu0 %v10951_v50  ;;  %v14929_v50 = vld [vmem:[#allocation31_spill] sm:$0xff] }
 0x390   :  { %10292 = vmatpush3.bf16.msra.mxu1 %v10950_v28  ;;  %v10095_v15 = vpop.f32.mrf.mxu0  ;;  %8603 = vmatmul.mubr.bf16.vlgmr.msra.gmra.mxu0 %v3415_v2  ;;  %v3424_v28 = vpack.c.bf16 %v14929_v50, %v14929_v50  ;;  %v3413_v2 = vpack.c.bf16 %v13366_v3, %v13366_v3 }
 0x391   :  { %10388 = vmatpush3.bf16.msra.mxu0 %v10952_v36  ;;  %8682 = vmatprep.mubr.bf16.mxu0 %v3420_v53  ;;  %v3418_v53 = vpack.c.bf16 %v13369_v51, %v13369_v51  ;;  %v10992_v51 = vld [vmem:[%s14868_s3 + $0xf28] sm:$0xff]  }
 0x392   :  { %v10096_v49 = vpop.f32.mrf.mxu0  ;;  %10321 = vmatprep.subr.bf16.mxu1 %v10953_v5  ;;  %10389 = vmatprep.subr.bf16.mxu0 %v10955_v37  ;;  %v10988_v5 = vld [vmem:[%s14868_s3 + $0xf30] sm:$0xff]  }
 0x393   :  { %v10029_v10 = vpop.f32.mrf.mxu1  ;;  %v14537_v48 = vadd.f32 %v10096_v49, %v10095_v15  ;;  %8483 = vmatmul.mubr.bf16.vlgmr.msra.gmra.mxu1 %v3409_v57  ;;  %v10989_v37 = vld [vmem:[%s14868_s3 + $0xdf0] sm:$0xff]   ;;  %v10991_v15 = vld [vmem:[%s14868_s3 + $0xf68] sm:$0xff]  }
 0x394   :  { %10322 = vmatpush3.bf16.msra.mxu1 %v10954_v21  ;;  %8562 = vmatprep.mubr.bf16.mxu1 %v3414_v24  ;;  %v10098_v43 = vpop.f32.mrf.mxu0  ;;  %v10993_v49 = vld [vmem:[%s14868_s3 + $0xde8] sm:$0xff]  }
 0x395   :  { %v10030_v60 = vpop.f32.mrf.mxu1  ;;  %10390 = vmatpush3.bf16.msra.mxu0 %v10956_v63  ;;  %10323 = vmatprep.subr.bf16.mxu1 %v10957_v16  ;;  %v10990_v63 = vld [vmem:[%s14868_s3 + $0xdb0] sm:$0xff]  }
 0x396   :  { %v10031_v8 = vadd.f32 %v10030_v60, %v10029_v10  ;;  %v10099_v39 = vpop.f32.mrf.mxu0  ;;  %10391 = vmatprep.subr.bf16.mxu0 %v10959_v22  ;;  %v10995_v10 = vld [vmem:[%s14868_s3 + $0xf60] sm:$0xff]   ;;  %v10994_v60 = vld [vmem:[%s14868_s3 + $0xda8] sm:$0xff]  }
 0x397   :  { %v10032_v46 = vpop.f32.mrf.mxu1  ;;  %v10999_v39 = vld [vmem:[%s14868_s3 + $0xf58] sm:$0xff]  }
 0x398   :  { %v8005_v31 = vadd.f32 %v10031_v8, %v14455_v12  ;;  %10324 = vmatpush3.bf16.msra.mxu1 %v10958_v47  ;;  %v10973_v12 = vld [vmem:[%s14868_s3 + $0xcd0] sm:$0xff]   ;;  %v10997_v8 = vld [vmem:[%s14868_s3 + $0xde0] sm:$0xff]  }
 0x399   :  { %v10033_v6 = vpop.f32.mrf.mxu1  ;;  %10392 = vmatpush3.bf16.msra.mxu0 %v10960_v1  ;;  %10325 = vmatprep.subr.bf16.mxu1 %v10961_v29  ;;  %v10996_v29 = vld [vmem:[%s14868_s3 + $0xf20] sm:$0xff]  }
 0x39a   :  { %10393 = vmatprep.subr.bf16.mxu0 %v10963_v42  ;;  %v14565_v44 = vadd.f32 %v14427_v59, %v8005_v31  ;;  %v10971_v59 = vld [vmem:[%s14868_s3 + $0xe50] sm:$0xff]   ;;  %v10998_v46 = vld [vmem:[%s14868_s3 + $0xda0] sm:$0xff]   ;;  %v11000_v31 = vld [vmem:[%s14868_s3 + $0xf18] sm:$0xff]  }
 0x39b   :  { %v11002_v6 = vld [vmem:[%s14868_s3 + $0xd98] sm:$0xff]  }
 0x39c   :  { %10326 = vmatpush3.bf16.msra.mxu1 %v10962_v56  ;;  %v11001_v56 = vld [vmem:[%s14868_s3 + $0xdd8] sm:$0xff]  }
 0x39d   :  { %10394 = vmatpush3.bf16.msra.mxu0 %v10964_v58  ;;  %10327 = vmatprep.subr.bf16.mxu1 %v10965_v40  ;;  %v11004_v58 = vld [vmem:[%s14868_s3 + $0xf10] sm:$0xff]  }
 0x39e   :  { %10395 = vmatprep.subr.bf16.mxu0 %v10967_v20  ;;  %v11005_v40 = vld [vmem:[%s14868_s3 + $0xdd0] sm:$0xff]   ;;  %v11007_v20 = vld [vmem:[%s14868_s3 + $0xf48] sm:$0xff]  }
 0x3a0   :  { %10328 = vmatpush3.bf16.msra.mxu1 %v10966_v55  ;;  %v11008_v55 = vld [vmem:[%s14868_s3 + $0xf08] sm:$0xff]  }
 0x3a1   :  { %10396 = vmatpush3.bf16.msra.mxu0 %v10968_v0  ;;  %10329 = vmatprep.subr.bf16.mxu1 %v10969_v52  ;;  %v11009_v0 = vld [vmem:[%s14868_s3 + $0xdc8] sm:$0xff]   ;;  %v11011_v52 = vld [vmem:[%s14868_s3 + $0xf40] sm:$0xff]  }
 0x3a2   :  { %10397 = vmatprep.subr.bf16.mxu0 %v10971_v59  ;;  %v11010_v59 = vld [vmem:[%s14868_s3 + $0xd88] sm:$0xff]  }
 0x3a4   :  { %10330 = vmatpush3.bf16.msra.mxu1 %v10970_v25  ;;  %v11012_v25 = vld [vmem:[%s14868_s3 + $0xf00] sm:$0xff]  }
 0x3a5   :  { %10398 = vmatpush3.bf16.msra.mxu0 %v10972_v9  ;;  %10331 = vmatprep.subr.bf16.mxu1 %v10973_v12  ;;  %v11013_v9 = vld [vmem:[%s14868_s3 + $0xdc0] sm:$0xff]  }
 0x3a6   :  { %10399 = vmatprep.subr.bf16.mxu0 %v10975_v34  ;;  %v11014_v12 = vld [vmem:[%s14868_s3 + $0xd80] sm:$0xff]   ;;  %v11015_v34 = vld [vmem:[%s14868_s3 + $0xef8] sm:$0xff]  }
 0x3a8   :  { %10332 = vmatpush3.bf16.msra.mxu1 %v10974_v54  ;;  %v14930_v54 = vld [vmem:[#allocation32_spill] sm:$0xff] }
 0x3a9   :  { %10400 = vmatpush3.bf16.msra.mxu0 %v10976_v26  ;;  %10333 = vmatprep.subr.bf16.mxu1 %v10977_v38  ;;  %v3423_v26 = vpack.c.bf16 %v14930_v54, %v14930_v54 }
 0x3aa   :  { %10401 = vmatprep.subr.bf16.mxu0 %v10979_v41  ;;  %v11016_v41 = vld [vmem:[%s14868_s3 + $0xeb8] sm:$0xff]  }
 0x3ac   :  { %10334 = vmatpush3.bf16.msra.mxu1 %v10978_v27  ;;  %v3417_v27 = vpack.c.bf16 %v13372_v17, %v13372_v17  ;;  %v11018_v17 = vld [vmem:[%s14868_s3 + $0xeb0] sm:$0xff]  }
 0x3ad   :  { %10402 = vmatpush3.bf16.msra.mxu0 %v10980_v61  ;;  %10335 = vmatprep.subr.bf16.mxu1 %v10981_v32  ;;  %v11017_v61 = vld [vmem:[%s14868_s3 + $0xef0] sm:$0xff]  }
 0x3ae   :  { %10431 = vmatprep.subr.bf16.mxu0 %v10983_v4  ;;  %v3422_v4 = vpack.c.bf16 %v13375_v18, %v13375_v18 }
 0x3b0   :  { %10336 = vmatpush3.bf16.msra.mxu1 %v10982_v14  ;;  %v10139_v36 = vpop.f32.mrf.mxu0  ;;  %8683 = vmatmul.mubr.bf16.vlgmr.msra.gmra.mxu0 %v3419_v11 }
 0x3b1   :  { %10432 = vmatpush3.bf16.msra.mxu0 %v10984_v13  ;;  %8762 = vmatprep.mubr.bf16.mxu0 %v3424_v28 }
 0x3b2   :  { %v10140_v23 = vpop.f32.mrf.mxu0  ;;  %10365 = vmatprep.subr.bf16.mxu1 %v10985_v33  ;;  %10433 = vmatprep.subr.bf16.mxu0 %v10987_v19  ;;  %v11019_v33 = vld [vmem:[%s14868_s3 + $0xee8] sm:$0xff]  }
 0x3b3   :  { %v10073_v21 = vpop.f32.mrf.mxu1  ;;  %v14647_v3 = vadd.f32 %v10140_v23, %v10139_v36  ;;  %8563 = vmatmul.mubr.bf16.vlgmr.msra.gmra.mxu1 %v3413_v2  ;;  %v11020_v36 = vld [vmem:[%s14868_s3 + $0xea8] sm:$0xff]   ;;  %v11021_v2 = vld [vmem:[%s14868_s3 + $0xee0] sm:$0xff]   ;;  %v11023_v23 = vld [vmem:[%s14868_s3 + $0xed8] sm:$0xff]  }
 0x3b4   :  { %10366 = vmatpush3.bf16.msra.mxu1 %v10986_v45  ;;  %8642 = vmatprep.mubr.bf16.mxu1 %v3418_v53  ;;  %v10142_v57 = vpop.f32.mrf.mxu0  ;;  %v11024_v53 = vld [vmem:[%s14868_s3 + $0xe98] sm:$0xff]  }
 0x3b5   :  { %v10074_v16 = vpop.f32.mrf.mxu1  ;;  %10434 = vmatpush3.bf16.msra.mxu0 %v10988_v5  ;;  %10367 = vmatprep.subr.bf16.mxu1 %v10989_v37  ;;  %v11022_v37 = vld [vmem:[%s14868_s3 + $0xea0] sm:$0xff]   ;;  %v11028_v57 = vld [vmem:[%s14868_s3 + $0xe88] sm:$0xff]  }
 0x3b6   :  { %v10075_v24 = vadd.f32 %v10074_v16, %v10073_v21  ;;  %v10143_v22 = vpop.f32.mrf.mxu0  ;;  %10435 = vmatprep.subr.bf16.mxu0 %v10991_v15  ;;  %v11025_v15 = vld [vmem:[%s14868_s3 + $0xed0] sm:$0xff]   ;;  %v11030_v16 = vld [vmem:[%s14868_s3 + $0xe80] sm:$0xff]  }
 0x3b7   :  { %v10076_v43 = vpop.f32.mrf.mxu1  ;;  %v11026_v21 = vld [vmem:[%s14868_s3 + $0xe90] sm:$0xff]   ;;  %v3421_v22 = vpack.c.bf16 %v13396_v30, %v13396_v30 }
 0x3b8   :  { %v8085_v47 = vadd.f32 %v10075_v24, %v14565_v44  ;;  %10368 = vmatpush3.bf16.msra.mxu1 %v10990_v63  ;;  %v11006_v44 = vld [vmem:[%s14868_s3 + $0xd90] sm:$0xff]   ;;  %v11029_v63 = vld [vmem:[%s14868_s3 + $0xec0] sm:$0xff]   ;;  %v11032_v24 = vld [vmem:[%s14868_s3 + $0xfb8] sm:$0xff]  }
 0x3b9   :  { %v10077_v1 = vpop.f32.mrf.mxu1  ;;  %10436 = vmatpush3.bf16.msra.mxu0 %v10992_v51  ;;  %10369 = vmatprep.subr.bf16.mxu1 %v10993_v49  ;;  %v11031_v51 = vld [vmem:[%s14868_s3 + $0xff8] sm:$0xff]  }
 0x3ba   :  { %10437 = vmatprep.subr.bf16.mxu0 %v10995_v10  ;;  %v8125_v42 = vadd.f32 %v14537_v48, %v8085_v47  ;;  %v11003_v48 = vld [vmem:[%s14868_s3 + $0xf50] sm:$0xff]   ;;  %v3426_v47 = vpack.c.bf16 %v13399_v35, %v13399_v35 }
 0x3bb   :  { %v11033_v10 = vld [vmem:[%s14868_s3 + $0xff0] sm:$0xff]  }
 0x3bc   :  { %10370 = vmatpush3.bf16.msra.mxu1 %v10994_v60 }
 0x3bd   :  { %10438 = vmatpush3.bf16.msra.mxu0 %v10996_v29  ;;  %10371 = vmatprep.subr.bf16.mxu1 %v10997_v8  ;;  %v11034_v8 = vld [vmem:[%s14868_s3 + $0xfb0] sm:$0xff]  }
 0x3be   :  { %10439 = vmatprep.subr.bf16.mxu0 %v10999_v39  ;;  %v11035_v39 = vld [vmem:[%s14868_s3 + $0xfe8] sm:$0xff]  }
 0x3c0   :  { %10372 = vmatpush3.bf16.msra.mxu1 %v10998_v46 }
 0x3c1   :  { %10440 = vmatpush3.bf16.msra.mxu0 %v11000_v31  ;;  %10373 = vmatprep.subr.bf16.mxu1 %v11001_v56  ;;  %v11036_v56 = vld [vmem:[%s14868_s3 + $0xfa8] sm:$0xff]  }
 0x3c2   :  { %10441 = vmatprep.subr.bf16.mxu0 %v11003_v48 }
 0x3c4   :  { %10374 = vmatpush3.bf16.msra.mxu1 %v11002_v6  ;;  %v11037_v6 = vld [vmem:[%s14868_s3 + $0xfe0] sm:$0xff]  }
 0x3c5   :  { %10442 = vmatpush3.bf16.msra.mxu0 %v11004_v58  ;;  %10375 = vmatprep.subr.bf16.mxu1 %v11005_v40  ;;  %v11038_v40 = vld [vmem:[%s14868_s3 + $0xfa0] sm:$0xff]  }
 0x3c6   :  { %10443 = vmatprep.subr.bf16.mxu0 %v11007_v20  ;;  %v11039_v20 = vld [vmem:[%s14868_s3 + $0xfd8] sm:$0xff]  }
 0x3c8   :  { %10376 = vmatpush3.bf16.msra.mxu1 %v11006_v44  ;;  %v11040_v44 = vld [vmem:[%s14868_s3 + $0xf98] sm:$0xff]  }
 0x3c9   :  { %10444 = vmatpush3.bf16.msra.mxu0 %v11008_v55  ;;  %10377 = vmatprep.subr.bf16.mxu1 %v11009_v0  ;;  %v11041_v55 = vld [vmem:[%s14868_s3 + $0xfd0] sm:$0xff]  }
 0x3ca   :  { %10445 = vmatprep.subr.bf16.mxu0 %v11011_v52  ;;  %v11042_v0 = vld [vmem:[%s14868_s3 + $0xf90] sm:$0xff]   ;;  %v11043_v52 = vld [vmem:[%s14868_s3 + $0xfc8] sm:$0xff]  }
 0x3cc   :  { %10378 = vmatpush3.bf16.msra.mxu1 %v11010_v59  ;;  %v11044_v59 = vld [vmem:[%s14868_s3 + $0xf88] sm:$0xff]  }
 0x3cd   :  { %10446 = vmatpush3.bf16.msra.mxu0 %v11012_v25  ;;  %10379 = vmatprep.subr.bf16.mxu1 %v11013_v9  ;;  %v11045_v25 = vld [vmem:[%s14868_s3 + $0xfc0] sm:$0xff]  }
 0x3ce   :  { %v11046_v9 = vld [vmem:[%s14868_s3 + $0xf80] sm:$0xff]  }
 0x3d0   :  { %10380 = vmatpush3.bf16.msra.mxu1 %v11014_v12  ;;  %v10183_v38 = vpop.f32.mrf.mxu0  ;;  %8763 = vmatmul.mubr.bf16.vlgmr.msra.gmra.mxu0 %v3423_v26 }
 0x3d1   :  { %10409 = vmatprep.subr.bf16.mxu1 %v11015_v34  ;;  %v3425_v34 = vpack.c.bf16 %v13402_v62, %v13402_v62 }
 0x3d2   :  { %v10184_v32 = vpop.f32.mrf.mxu0 }
 0x3d3   :  { %v10117_v14 = vpop.f32.mrf.mxu1  ;;  %v14738_v13 = vadd.f32 %v10184_v32, %v10183_v38  ;;  %8643 = vmatmul.mubr.bf16.vlgmr.msra.gmra.mxu1 %v3417_v27 }
 0x3d4   :  { %10410 = vmatpush3.bf16.msra.mxu1 %v11016_v41  ;;  %8722 = vmatprep.mubr.bf16.mxu1 %v3422_v4  ;;  %v10186_v7 = vpop.f32.mrf.mxu0 }
 0x3d5   :  { %v10118_v11 = vpop.f32.mrf.mxu1  ;;  %10411 = vmatprep.subr.bf16.mxu1 %v11017_v61 }
 0x3d6   :  { %v10119_v19 = vadd.f32 %v10118_v11, %v10117_v14  ;;  %v10187_v50 = vpop.f32.mrf.mxu0 }
 0x3d7   :  { %v10120_v18 = vpop.f32.mrf.mxu1 }
 0x3d8   :  { %v8165_v28 = vadd.f32 %v10119_v19, %v8125_v42  ;;  %10412 = vmatpush3.bf16.msra.mxu1 %v11018_v17 }
 0x3d9   :  { %v10121_v45 = vpop.f32.mrf.mxu1  ;;  %10413 = vmatprep.subr.bf16.mxu1 %v11019_v33 }
 0x3da   :  { %v8205_v5 = vadd.f32 %v14647_v3, %v8165_v28  ;;  %v11027_v3 = vld [vmem:[%s14868_s3 + $0xec8] sm:$0xff]  }
 0x3dc   :  { %10414 = vmatpush3.bf16.msra.mxu1 %v11020_v36 }
 0x3dd   :  { %10415 = vmatprep.subr.bf16.mxu1 %v11021_v2 }
 0x3e0   :  { %10416 = vmatpush3.bf16.msra.mxu1 %v11022_v37 }
 0x3e1   :  { %10417 = vmatprep.subr.bf16.mxu1 %v11023_v23  ;;  %v11100_v23 = vmov 0.0  }
 0x3e2   :  { %10484 = vmatprep.subr.mxu0 %v11100_v23  ;;  %10500 = vmatprep.mubr.msk.f32.mxu0 %vm11101_vm1, %v11100_v23 }
 0x3e4   :  { %10418 = vmatpush3.bf16.msra.mxu1 %v11024_v53  ;;  %v8817_v53 = vld [vmem:[%s14870_s5 + $0x30] sm:$0xff] }
 0x3e5   :  { %10419 = vmatprep.subr.bf16.mxu1 %v11025_v15  ;;  %v8816_v15 = vld [vmem:[%s14870_s5 + $0x28] sm:$0xff] }
 0x3e8   :  { %10420 = vmatpush3.bf16.msra.mxu1 %v11026_v21 }
 0x3e9   :  { %10421 = vmatprep.subr.bf16.mxu1 %v11027_v3 }
 0x3ec   :  { %10422 = vmatpush3.bf16.msra.mxu1 %v11028_v57 }
 0x3ed   :  { %10423 = vmatprep.subr.bf16.mxu1 %v11029_v63 }
 0x3f0   :  { %10424 = vmatpush3.bf16.msra.mxu1 %v11030_v16  ;;  %v10227_v49 = vpop.f32.mrf.mxu0  ;;  %v8815_v16 = vld [vmem:[%s14870_s5 + $0x20] sm:$0xff] }
 0x3f1   :  { %10453 = vmatprep.subr.bf16.mxu1 %v11031_v51 }
 0x3f2   :  { %v10228_v43 = vpop.f32.mrf.mxu0 }
 0x3f3   :  { %v10161_v60 = vpop.f32.mrf.mxu1  ;;  %v10229_v1 = vadd.f32 %v10228_v43, %v10227_v49  ;;  %8723 = vmatmul.mubr.bf16.vlgmr.msra.gmra.mxu1 %v3421_v22 }
 0x3f4   :  { %10454 = vmatpush3.bf16.msra.mxu1 %v11032_v24  ;;  %8802 = vmatprep.mubr.bf16.mxu1 %v3426_v47  ;;  %v10230_v29 = vpop.f32.mrf.mxu0 }
 0x3f5   :  { %v10162_v30 = vpop.f32.mrf.mxu1  ;;  %10455 = vmatprep.subr.bf16.mxu1 %v11033_v10  ;;  %v8813_v29 = vld [vmem:[%s14870_s5 + $0x10] sm:$0xff] }
 0x3f6   :  { %v10163_v42 = vadd.f32 %v10162_v30, %v10161_v60  ;;  %v10231_v46 = vpop.f32.mrf.mxu0  ;;  %v8811_v30 = vld [vmem:[%s14870_s5] sm:$0xff] }
 0x3f7   :  { %v10164_v31 = vpop.f32.mrf.mxu1 }
 0x3f8   :  { %v8245_v35 = vadd.f32 %v10163_v42, %v8205_v5  ;;  %10456 = vmatpush3.bf16.msra.mxu1 %v11034_v8  ;;  %v8818_v5 = vld [vmem:[%s14870_s5 + $0x38] sm:$0xff]  ;;  %v8812_v8 = vld [vmem:[%s14870_s5 + $0x8] sm:$0xff] }
 0x3f9   :  { %v10165_v48 = vpop.f32.mrf.mxu1  ;;  %10457 = vmatprep.subr.bf16.mxu1 %v11035_v39  ;;  %10485 = vmatpush3.msra.mxu0 %v8818_v5 }
 0x3fa   :  { %v8285_v58 = vadd.f32 %v14738_v13, %v8245_v35  ;;  %10486 = vmatprep.subr.mxu0 %v11100_v23 }
 0x3fb   :  { %10487 = vmatpush3.msra.mxu0 %v8817_v53 }
 0x3fc   :  { %10458 = vmatpush3.bf16.msra.mxu1 %v11036_v56  ;;  %10488 = vmatprep.subr.mxu0 %v11100_v23 }
 0x3fd   :  { %10459 = vmatprep.subr.bf16.mxu1 %v11037_v6  ;;  %10489 = vmatpush3.msra.mxu0 %v8816_v15 }
 0x3fe   :  { %10490 = vmatprep.subr.mxu0 %v11100_v23 }
 0x3ff   :  { %10491 = vmatpush3.msra.mxu0 %v8815_v16 }
 0x400   :  { %10460 = vmatpush3.bf16.msra.mxu1 %v11038_v40  ;;  %10492 = vmatprep.subr.mxu0 %v11100_v23 }
 0x401   :  { %10461 = vmatprep.subr.bf16.mxu1 %v11039_v20 }
 0x404   :  { %10462 = vmatpush3.bf16.msra.mxu1 %v11040_v44 }
 0x405   :  { %10463 = vmatprep.subr.bf16.mxu1 %v11041_v55 }
 0x408   :  { %10464 = vmatpush3.bf16.msra.mxu1 %v11042_v0 }
 0x409   :  { %10465 = vmatprep.subr.bf16.mxu1 %v11043_v52 }
 0x40c   :  { %10466 = vmatpush3.bf16.msra.mxu1 %v11044_v59 }
 0x40d   :  { %10467 = vmatprep.subr.bf16.mxu1 %v11045_v25 }
 0x410   :  { %10468 = vmatpush3.bf16.msra.mxu1 %v11046_v9  ;;  %v10271_v12 = vpop.f32.mrf.mxu0 }
 0x412   :  { %v10272_v54 = vpop.f32.mrf.mxu0 }
 0x413   :  { %v10205_v26 = vpop.f32.mrf.mxu1  ;;  %v10273_v38 = vadd.f32 %v10272_v54, %v10271_v12  ;;  %8803 = vmatmul.mubr.bf16.vlgmr.msra.gmra.mxu1 %v3425_v34 }
 0x414   :  { %v10274_v41 = vpop.f32.mrf.mxu0 }
 0x415   :  { %v10206_v27 = vpop.f32.mrf.mxu1 }
 0x416   :  { %v10207_v61 = vadd.f32 %v10206_v27, %v10205_v26  ;;  %v10275_v32 = vpop.f32.mrf.mxu0 }
 0x417   :  { %v10208_v4 = vpop.f32.mrf.mxu1 }
 0x418   :  { %v8325_v14 = vadd.f32 %v10207_v61, %v8285_v58 }
 0x419   :  { %v10209_v13 = vpop.f32.mrf.mxu1 }
 0x41a   :  { %v8365_v7 = vadd.f32 %v10229_v1, %v8325_v14  ;;  %v8814_v1 = vld [vmem:[%s14870_s5 + $0x18] sm:$0xff] }
 0x41b   :  { %10493 = vmatpush3.msra.mxu0 %v8814_v1 }
 0x41c   :  { %10494 = vmatprep.subr.mxu0 %v11100_v23 }
 0x41d   :  { %10495 = vmatpush3.msra.mxu0 %v8813_v29 }
 0x41e   :  { %10496 = vmatprep.subr.mxu0 %v11100_v23 }
 0x41f   :  { %10497 = vmatpush3.msra.mxu0 %v8812_v8 }
 0x420   :  { %10498 = vmatprep.subr.mxu0 %v11100_v23 }
 0x421   :  { %10499 = vmatpush3.msra.mxu0 %v8811_v30 }
 0x430   :  { %v10315_v17 = vpop.f32.mrf.mxu0 }
 0x432   :  { %v10316_v11 = vpop.f32.mrf.mxu0 }
 0x433   :  { %v10249_v33 = vpop.f32.mrf.mxu1  ;;  %v10317_v19 = vadd.f32 %v10316_v11, %v10315_v17 }
 0x434   :  { %v10318_v50 = vpop.f32.mrf.mxu0 }
 0x435   :  { %v10250_v18 = vpop.f32.mrf.mxu1 }
 0x436   :  { %v10251_v28 = vadd.f32 %v10250_v18, %v10249_v33  ;;  %v10319_v62 = vpop.f32.mrf.mxu0 }
 0x437   :  { %v10252_v36 = vpop.f32.mrf.mxu1  ;;  %v9769_v62 = vld [vmem:[%s14871_s6] ss:$0 sm:$0xff] }
 0x438   :  { %v8405_v45 = vadd.f32 %v10251_v28, %v8365_v7 }
 0x439   :  { %v10253_v2 = vpop.f32.mrf.mxu1 }
 0x43a   :  { %v8445_v37 = vadd.f32 %v10273_v38, %v8405_v45 }
 0x450   :  { %v10359_v21 = vpop.f32.mrf.mxu0 }
 0x452   :  { %v10360_v3 = vpop.f32.mrf.mxu0 }
 0x453   :  { %v10293_v57 = vpop.f32.mrf.mxu1  ;;  %v10361_v63 = vadd.f32 %v10360_v3, %v10359_v21 }
 0x454   :  { %v10362_v51 = vpop.f32.mrf.mxu0 }
 0x455   :  { %v10294_v49 = vpop.f32.mrf.mxu1 }
 0x456   :  { %v10295_v24 = vadd.f32 %v10294_v49, %v10293_v57  ;;  %v10363_v22 = vpop.f32.mrf.mxu0 }
 0x457   :  { %v10296_v10 = vpop.f32.mrf.mxu1 }
 0x458   :  { %v8485_v43 = vadd.f32 %v10295_v24, %v8445_v37 }
 0x459   :  { %v10297_v47 = vpop.f32.mrf.mxu1 }
 0x45a   :  { %v8525_v60 = vadd.f32 %v10317_v19, %v8485_v43 }
 0x470   :  { %v10403_v39 = vpop.f32.mrf.mxu0 }
 0x472   :  { %v10404_v42 = vpop.f32.mrf.mxu0 }
 0x473   :  { %v10337_v46 = vpop.f32.mrf.mxu1  ;;  %v10405_v31 = vadd.f32 %v10404_v42, %v10403_v39 }
 0x474   :  { %v10406_v35 = vpop.f32.mrf.mxu0 }
 0x475   :  { %v10338_v56 = vpop.f32.mrf.mxu1 }
 0x476   :  { %v10339_v48 = vadd.f32 %v10338_v56, %v10337_v46  ;;  %v10407_v6 = vpop.f32.mrf.mxu0 }
 0x477   :  { %v10340_v58 = vpop.f32.mrf.mxu1 }
 0x478   :  { %v8565_v40 = vadd.f32 %v10339_v48, %v8525_v60 }
 0x479   :  { %v10341_v20 = vpop.f32.mrf.mxu1 }
 0x47a   :  { %v8605_v44 = vadd.f32 %v10361_v63, %v8565_v40 }
 0x490   :  { %v10447_v55 = vpop.f32.mrf.mxu0 }
 0x492   :  { %v10448_v0 = vpop.f32.mrf.mxu0 }
 0x493   :  { %v10381_v52 = vpop.f32.mrf.mxu1  ;;  %v10449_v59 = vadd.f32 %v10448_v0, %v10447_v55 }
 0x494   :  { %v10450_v25 = vpop.f32.mrf.mxu0 }
 0x495   :  { %v10382_v9 = vpop.f32.mrf.mxu1 }
 0x496   :  { %v10383_v12 = vadd.f32 %v10382_v9, %v10381_v52  ;;  %v10451_v34 = vpop.f32.mrf.mxu0 }
 0x497   :  { %v10384_v54 = vpop.f32.mrf.mxu1 }
 0x498   :  { %v8645_v26 = vadd.f32 %v10383_v12, %v8605_v44 }
 0x499   :  { %v10385_v38 = vpop.f32.mrf.mxu1 }
 0x49a   :  { %v8685_v41 = vadd.f32 %v10405_v31, %v8645_v26 }
 0x4b3   :  { %v10425_v27 = vpop.f32.mrf.mxu1 }
 0x4b5   :  { %v10426_v61 = vpop.f32.mrf.mxu1 }
 0x4b6   :  { %v10427_v32 = vadd.f32 %v10426_v61, %v10425_v27 }
 0x4b7   :  { %v10428_v4 = vpop.f32.mrf.mxu1 }
 0x4b8   :  { %v8725_v14 = vadd.f32 %v10427_v32, %v8685_v41 }
 0x4b9   :  { %v10429_v13 = vpop.f32.mrf.mxu1 }
 0x4ba   :  { %v8765_v7 = vadd.f32 %v10449_v59, %v8725_v14 }
 0x4d3   :  { %v10469_v17 = vpop.f32.mrf.mxu1 }
 0x4d5   :  { %v10470_v11 = vpop.f32.mrf.mxu1 }
 0x4d6   :  { %v10471_v33 = vadd.f32 %v10470_v11, %v10469_v17 }
 0x4d7   :  { %v10472_v19 = vpop.f32.mrf.mxu1 }
 0x4d8   :  { %v8805_v50 = vadd.f32 %v10471_v33, %v8765_v7 }
 0x4d9   :  { %v10473_v18 = vpop.f32.mrf.mxu1 }
 0x4da   :  { %v8810_v28 = vmax.f32 %v8805_v50, 0.0 }
 0x4dc   :  { %10501 = vmatmul.mubr.msk.f32.vlgmr.msra.gmra.mxu0 %vm8826_vm2, %v8810_v28 }
 0x59c   :  { %v8896_v36 = vpop.f32.mrf.mxu0 }
 0x59d   :  { %v8897_v45 = vadd.f32 %v9769_v62, %v8896_v36 }
 0x59e   :  { %v10502_v2 = vpop.f32.mrf.mxu0 }
 0x59f   :  { %8901 = vst.msk [vmem:[#allocation2] sm:$0x3] %vm8900_vm3, %v8897_v45 }
 0x5a0   :  { %11088 = shalt.err (!%p11085_p4)
}
 0x5a1   :  { %8911 = dma.vmem_to_hbm [thread:$0]  %s8909_s17, 32, %s14872_s7, [#allocation3]  }
 0x5a2   :  { %11097 = dma.done.wait [#allocation3], 32  }
 0x5a3   :  { %11098 = vsyncadd [#allocation3], 4294967264 }
 0x5a4   :  { %8915 = vsyncpa [#allocation3], 1 }

</bundles_post_ra>
